<compile_context>
chip_gen: v7x
topology: tpu7x:2x2x1
jax: 0.10.0
libtpu: 0.0.40
codegen_flags: <defaults>
</compile_context>

<pallas_src>
import functools

import jax
import jax.numpy as jnp
import numpy as np
from jax import lax
from jax.experimental import pallas as pl
from jax.experimental.pallas import tpu as pltpu

GELU_SCALE = 1.7015043497085571  # VPGELU scale
PAD = 128                        # lane-aligned halo margin inside the VMEM pad buffer


# ----------------------------------------------------------------------------
# In-kernel math helpers
# ----------------------------------------------------------------------------
def _erf(x):
    # float32 erf approximation (Abramowitz & Stegun 7.1.26, |err| ~ 1.5e-7),
    # built from mul/add/exp + an EUP approximate reciprocal refined by one
    # Newton step (the divide leaves the VALU slot without losing accuracy).
    a1, a2, a3, a4, a5 = 0.254829592, -0.284496736, 1.421413741, -1.453152027, 1.061405429
    p = 0.3275911
    ax = jnp.abs(x)
    d = 1.0 + p * ax
    r = pl.reciprocal(d, approx=True)
    t = r * (2.0 - d * r)                      # one Newton-Raphson refinement
    poly = ((((a5 * t + a4) * t + a3) * t + a2) * t + a1) * t
    y = 1.0 - poly * jnp.exp(-ax * ax)
    return jnp.where(x >= 0, y, -y)


def _gelu(x):
    # exact (erf-based) gelu, matching torch.nn.functional.gelu default
    return 0.5 * x * (1.0 + _erf(x * 0.7071067811865475))


# ----------------------------------------------------------------------------
# Fused NFBlock kernel (one grid step = one batch tile of NB images)
# ----------------------------------------------------------------------------
def _nf_block_kernel(x_ref, mask_ref, wcat_ref, bcat_ref, w1_ref, b1_ref,
                     w1b_ref, b1b_ref, w2_ref, b2_ref, sew1_ref, seb1_ref,
                     sew2_ref, seb2_ref, gain_ref, o_ref, pad_ref,
                     *, W, HW, NB, Cout, width, beta):
    NHW = NB * HW

    # ---- pre-activation: gelu(x) * 1.7015 * beta (computed exactly once) ----
    x = x_ref[...].astype(jnp.float32)                       # (Cin, NB*HW)
    pre = _gelu(x) * (GELU_SCALE * beta)

    # ---- merged shortcut conv + conv0 (single wide MXU matmul) ---------------
    z = jnp.dot(wcat_ref[...], pre, preferred_element_type=jnp.float32)
    z = z + bcat_ref[...]                                    # (Cout+width, NB*HW)
    shortcut = z[:Cout, :]                                   # (Cout, NB*HW)
    h = _gelu(z[Cout:Cout + width, :]) * GELU_SCALE          # (width, NB*HW)

    # ---- depthwise 3x3 convs via lane shifts of a VMEM halo buffer -----------
    # Only the 128-lane margins need zeroing (interior is overwritten each use);
    # per-tap masks kill row-edge / column-edge / image-junction contributions.
    zero_margin = jnp.zeros((width, PAD), jnp.float32)
    pad_ref[:, :PAD] = zero_margin
    pad_ref[:, PAD + NHW:] = zero_margin

    def dwconv3x3(hin, w_ref_k, b_ref_k):
        pad_ref[:, PAD:PAD + NHW] = hin                      # interior
        acc = jnp.zeros((width, NHW), jnp.float32)
        for k in range(9):                                   # static unroll: 9 taps
            r, c = k // 3 - 1, k % 3 - 1
            s = r * W + c                                    # flattened spatial offset
            src = pad_ref[:, PAD + s:PAD + s + NHW]          # static lane-offset slice
            if not (r == 0 and c == 0):                      # center tap needs no mask
                src = src * mask_ref[k:k + 1, :]
            acc = acc + src * w_ref_k[:, k:k + 1]
        return _gelu(acc + b_ref_k[...]) * GELU_SCALE

    h = dwconv3x3(h, w1_ref, b1_ref)
    h = dwconv3x3(h, w1b_ref, b1b_ref)

    # ---- conv2 (1x1) ----------------------------------------------------------
    y = jnp.dot(w2_ref[...], h, preferred_element_type=jnp.float32) + b2_ref[...]

    # ---- squeeze-excite: per-image global average pool (lane reductions) ------
    m_cols = [jnp.sum(y[:, n * HW:(n + 1) * HW], axis=1, keepdims=True)
              for n in range(NB)]
    m = jnp.concatenate(m_cols, axis=1) * (1.0 / HW)         # (Cout, NB)
    hid = _gelu(jnp.dot(sew1_ref[...], m, preferred_element_type=jnp.float32)
                + seb1_ref[...]) * GELU_SCALE                # (hidden, NB)
    gate = jax.nn.sigmoid(jnp.dot(sew2_ref[...], hid, preferred_element_type=jnp.float32)
                          + seb2_ref[...])                   # (Cout, NB)

    # ---- combine: SE(out)*2*out * alpha*skip_gain + shortcut ------------------
    g2 = 2.0 * gain_ref[0, 0]
    for n in range(NB):                                      # aligned 256-lane stores
        lo, hi = n * HW, (n + 1) * HW
        o_ref[:, lo:hi] = (g2 * gate[:, n:n + 1] * y[:, lo:hi]
                           + shortcut[:, lo:hi]).astype(o_ref.dtype)


# ----------------------------------------------------------------------------
# Parameter glue (WSConv2D weight standardization; torch.var is unbiased)
# ----------------------------------------------------------------------------
def ws_standardize(w, gain, eps=1e-4):
    # w: (Cout, Cin/groups, kh, kw), gain: (Cout,)
    fan_in = float(np.prod(w.shape[1:]))
    mean = jnp.mean(w, axis=(1, 2, 3), keepdims=True)
    var = jnp.var(w, axis=(1, 2, 3), keepdims=True, ddof=1)   # unbiased, like torch.var
    scale = lax.rsqrt(jnp.maximum(var * fan_in, eps))
    return (w - mean) * scale * gain.reshape(-1, 1, 1, 1)


def _pick_batch_tile(n, hw, max_lanes=4096):
    """Largest divisor of n with nb*hw <= max_lanes (keeps the whole tile in VMEM)."""
    nb = max(1, min(n, max_lanes // max(hw, 1)))
    while n % nb:
        nb -= 1
    return nb


@functools.partial(jax.jit, static_argnames=("beta", "alpha"))
def nf_block_forward(x_nchw, p, *, beta=1.0, alpha=0.2):
    # TODO(synk): stride>1 (shortcut avg-pool + strided conv1), group_size>1
    #             grouped convs, and the identity-shortcut (in_ch==out_ch) path
    #             are not implemented (module defaults: stride=1, group_size=1
    #             -> depthwise, in_ch != out_ch -> projection shortcut).
    # TODO(synk): at production NFNet shapes, tile the fused lane axis into
    #             image groups / spatial row bands with a 1-row halo and round
    #             channels to 128 multiples (v7x 64 MiB VMEM / MXU alignment);
    #             the whole-batch tile here is sized for the small test shapes.
    N, Cin, H, W = x_nchw.shape
    HW = H * W
    assert W + 1 <= PAD
    width = p['w0'].shape[0]
    Cout = p['w2'].shape[0]
    hidden = p['se_w1'].shape[0]

    NB = _pick_batch_tile(N, HW)        # images per grid step (whole batch here)
    NHW = NB * HW

    # lane-dense layout plumbing: channels on sublanes, (image, spatial) on lanes
    x2d = jnp.transpose(x_nchw.reshape(N, Cin, HW), (1, 0, 2)) \
             .reshape(Cin, N * HW).astype(jnp.float32)

    # weight standardization + repacking (tiny per-parameter glue)
    wsc = ws_standardize(p['wsc'], p['gsc'])[:, :, 0, 0]          # (Cout, Cin)
    w0 = ws_standardize(p['w0'], p['g0'])[:, :, 0, 0]             # (width, Cin)
    wcat = jnp.concatenate([wsc, w0], axis=0)                     # merged shortcut+conv0
    bcat = jnp.concatenate([p['bsc'], p['b0']]).reshape(-1, 1)
    w1 = ws_standardize(p['w1'], p['g1']).reshape(width, 9)       # taps k = 3*kh + kw
    w1b = ws_standardize(p['w1b'], p['g1b']).reshape(width, 9)
    w2 = ws_standardize(p['w2'], p['g2'])[:, :, 0, 0]             # (Cout, width)

    # per-tap validity masks on the fused (image, spatial) lane axis: kill taps
    # that cross a row edge, a column edge, or an image boundary in one multiply.
    idx = np.arange(NHW)
    hh, ww = (idx // W) % H, idx % W
    masks = np.empty((9, NHW), np.float32)
    for k in range(9):
        r, c = k // 3 - 1, k % 3 - 1
        masks[k] = ((hh + r >= 0) & (hh + r < H) &
                    (ww + c >= 0) & (ww + c < W)).astype(np.float32)
    masks = jnp.asarray(masks)

    gain = (alpha * p['skip_gain']).astype(jnp.float32).reshape(1, 1)

    kernel = functools.partial(_nf_block_kernel, W=W, HW=HW, NB=NB,
                               Cout=Cout, width=width, beta=float(beta))
    const2d = lambda t: (0, 0)
    out2d = pl.pallas_call(
        kernel,
        out_shape=jax.ShapeDtypeStruct((Cout, N * HW), jnp.float32),
        grid=(N // NB,),
        in_specs=[
            pl.BlockSpec((Cin, NHW), lambda t: (0, t)),          # x (per batch tile)
            pl.BlockSpec((9, NHW), const2d),                     # per-tap masks
            pl.BlockSpec((Cout + width, Cin), const2d),          # [wsc; w0]
            pl.BlockSpec((Cout + width, 1), const2d),            # [bsc; b0]
            pl.BlockSpec((width, 9), const2d),                   # w1 taps
            pl.BlockSpec((width, 1), const2d),                   # b1
            pl.BlockSpec((width, 9), const2d),                   # w1b taps
            pl.BlockSpec((width, 1), const2d),                   # b1b
            pl.BlockSpec((Cout, width), const2d),                # w2
            pl.BlockSpec((Cout, 1), const2d),                    # b2
            pl.BlockSpec((hidden, Cout), const2d),               # SE linear
            pl.BlockSpec((hidden, 1), const2d),
            pl.BlockSpec((Cout, hidden), const2d),               # SE linear_1
            pl.BlockSpec((Cout, 1), const2d),
            pl.BlockSpec((1, 1), const2d),                       # alpha * skip_gain
        ],
        out_specs=pl.BlockSpec((Cout, NHW), lambda t: (0, t)),
        scratch_shapes=[pltpu.VMEM((width, NHW + 2 * PAD), jnp.float32)],
        compiler_params=pltpu.CompilerParams(
            dimension_semantics=("parallel",),
            vmem_limit_bytes=32 * 1024 * 1024,
        ),
    )(x2d, masks, wcat, bcat,
      w1, jnp.reshape(p['b1'], (-1, 1)),
      w1b, jnp.reshape(p['b1b'], (-1, 1)),
      w2, jnp.reshape(p['b2'], (-1, 1)),
      p['se_w1'], jnp.reshape(p['se_b1'], (-1, 1)),
      p['se_w2'], jnp.reshape(p['se_b2'], (-1, 1)),
      gain)

    return jnp.transpose(out2d.reshape(Cout, N, HW), (1, 0, 2)).reshape(N, Cout, H, W)


# ----------------------------------------------------------------------------
# Pure-JAX reference (correctness check)
# ----------------------------------------------------------------------------
def nf_block_reference(x_nchw, p, *, beta=1.0, alpha=0.2):
    x = jnp.transpose(x_nchw, (0, 2, 3, 1)).astype(jnp.float32)
    act = lambda v: jax.nn.gelu(v, approximate=False) * GELU_SCALE
    pre = act(x) * beta
    wsc = ws_standardize(p['wsc'], p['gsc'])[:, :, 0, 0]
    shortcut = jnp.einsum('nhwc,oc->nhwo', pre, wsc) + p['bsc']
    w0 = ws_standardize(p['w0'], p['g0'])[:, :, 0, 0]
    h = act(jnp.einsum('nhwc,oc->nhwo', pre, w0) + p['b0'])

    def dw(hin, w, g, b):
        wstd = ws_standardize(w, g)                       # (width, 1, 3, 3)
        rhs = jnp.transpose(wstd, (2, 3, 1, 0))           # HWIO
        yy = lax.conv_general_dilated(hin, rhs, (1, 1), 'SAME',
                                      dimension_numbers=('NHWC', 'HWIO', 'NHWC'),
                                      feature_group_count=hin.shape[-1])
        return act(yy + b)

    h = dw(h, p['w1'], p['g1'], p['b1'])
    h = dw(h, p['w1b'], p['g1b'], p['b1b'])
    w2 = ws_standardize(p['w2'], p['g2'])[:, :, 0, 0]
    y = jnp.einsum('nhwc,oc->nhwo', h, w2) + p['b2']
    m = jnp.mean(y, axis=(1, 2))
    hh = act(m @ p['se_w1'].T + p['se_b1'])
    s = jax.nn.sigmoid(hh @ p['se_w2'].T + p['se_b2'])
    out = s[:, None, None, :] * 2.0 * y
    out = out * alpha * p['skip_gain'] + shortcut
    return jnp.transpose(out, (0, 3, 1, 2))


def init_params(key, in_ch, out_ch, width, hidden):
    ks = jax.random.split(key, 14)
    nrm = lambda k, s: jax.random.normal(k, s, jnp.float32) * 0.2
    return dict(
        w0=nrm(ks[0], (width, in_ch, 1, 1)),  b0=nrm(ks[1], (width,)),
        g0=jnp.ones((width,), jnp.float32),
        w1=nrm(ks[2], (width, 1, 3, 3)),      b1=nrm(ks[3], (width,)),
        g1=jnp.ones((width,), jnp.float32),
        w1b=nrm(ks[4], (width, 1, 3, 3)),     b1b=nrm(ks[5], (width,)),
        g1b=jnp.ones((width,), jnp.float32),
        w2=nrm(ks[6], (out_ch, width, 1, 1)), b2=nrm(ks[7], (out_ch,)),
        g2=jnp.ones((out_ch,), jnp.float32),
        wsc=nrm(ks[8], (out_ch, in_ch, 1, 1)), bsc=nrm(ks[9], (out_ch,)),
        gsc=jnp.ones((out_ch,), jnp.float32),
        se_w1=nrm(ks[10], (hidden, out_ch)),  se_b1=nrm(ks[11], (hidden,)),
        se_w2=nrm(ks[12], (out_ch, hidden)),  se_b2=nrm(ks[13], (out_ch,)),
        # module inits skip_gain to 0 (zero residual branch); a nonzero value
        # exercises the full compute path, the zero path is checked separately.
        skip_gain=jnp.array(1.0, jnp.float32),
    )


if __name__ == "__main__":
    in_ch, out_ch = 8, 16
    expansion, se_ratio, group_size = 0.5, 0.5, 1
    width = int(out_ch * expansion)                 # 8 ; groups = width (depthwise)
    hidden = max(1, int(out_ch * se_ratio))         # 8
    N, H, W = 2, 16, 16

    key = jax.random.PRNGKey(0)
    kx, kp = jax.random.split(key)
    x = jax.random.normal(kx, (N, in_ch, H, W), jnp.float32)
    params = init_params(kp, in_ch, out_ch, width, hidden)

    out = jax.block_until_ready(nf_block_forward(x, params, beta=1.0, alpha=0.2))
    ref = jax.block_until_ready(nf_block_reference(x, params, beta=1.0, alpha=0.2))
    np.testing.assert_allclose(np.asarray(out), np.asarray(ref), rtol=1e-3, atol=1e-3)

    # also exercise the zero-residual path (the module initializes skip_gain to 0)
    params0 = dict(params, skip_gain=jnp.array(0.0, jnp.float32))
    out0 = jax.block_until_ready(nf_block_forward(x, params0, beta=1.0, alpha=0.2))
    ref0 = jax.block_until_ready(nf_block_reference(x, params0, beta=1.0, alpha=0.2))
    np.testing.assert_allclose(np.asarray(out0), np.asarray(ref0), rtol=1e-3, atol=1e-3)

    print("KERNEL_OK")
</pallas_src>

<mosaic_0001>
module attributes {stable_mosaic.version = 11 : i64} {
  func.func @_nf_block_kernel(%arg0: i32, %arg1: memref<8x512xf32, #tpu.memory_space<vmem>>, %arg2: memref<9x512xf32, #tpu.memory_space<vmem>>, %arg3: memref<24x8xf32, #tpu.memory_space<vmem>>, %arg4: memref<24x1xf32, #tpu.memory_space<vmem>>, %arg5: memref<8x9xf32, #tpu.memory_space<vmem>>, %arg6: memref<8x1xf32, #tpu.memory_space<vmem>>, %arg7: memref<8x9xf32, #tpu.memory_space<vmem>>, %arg8: memref<8x1xf32, #tpu.memory_space<vmem>>, %arg9: memref<16x8xf32, #tpu.memory_space<vmem>>, %arg10: memref<16x1xf32, #tpu.memory_space<vmem>>, %arg11: memref<8x16xf32, #tpu.memory_space<vmem>>, %arg12: memref<8x1xf32, #tpu.memory_space<vmem>>, %arg13: memref<16x8xf32, #tpu.memory_space<vmem>>, %arg14: memref<16x1xf32, #tpu.memory_space<vmem>>, %arg15: memref<1x1xf32, #tpu.memory_space<vmem>>, %arg16: memref<16x512xf32, #tpu.memory_space<vmem>>, %arg17: memref<8x768xf32, #tpu.memory_space<vmem>>) attributes {dimension_semantics = [#tpu.dimension_semantics<parallel>], iteration_bounds = array<i64: 1>, scalar_prefetch = 0 : i64, scratch_operands = 1 : i64, tpu.core_type = #tpu.core_type<tc>, window_params = [{transform_indices = @transform_0, window_bounds = array<i64: 8, 512>}, {pipeline_mode = #tpu.pipeline_mode<synchronous>, transform_indices = @transform_1, window_bounds = array<i64: 9, 512>}, {pipeline_mode = #tpu.pipeline_mode<synchronous>, transform_indices = @transform_2, window_bounds = array<i64: 24, 8>}, {pipeline_mode = #tpu.pipeline_mode<synchronous>, transform_indices = @transform_3, window_bounds = array<i64: 24, 1>}, {pipeline_mode = #tpu.pipeline_mode<synchronous>, transform_indices = @transform_4, window_bounds = array<i64: 8, 9>}, {pipeline_mode = #tpu.pipeline_mode<synchronous>, transform_indices = @transform_5, window_bounds = array<i64: 8, 1>}, {pipeline_mode = #tpu.pipeline_mode<synchronous>, transform_indices = @transform_6, window_bounds = array<i64: 8, 9>}, {pipeline_mode = #tpu.pipeline_mode<synchronous>, transform_indices = @transform_7, window_bounds = array<i64: 8, 1>}, {pipeline_mode = #tpu.pipeline_mode<synchronous>, transform_indices = @transform_8, window_bounds = array<i64: 16, 8>}, {pipeline_mode = #tpu.pipeline_mode<synchronous>, transform_indices = @transform_9, window_bounds = array<i64: 16, 1>}, {pipeline_mode = #tpu.pipeline_mode<synchronous>, transform_indices = @transform_10, window_bounds = array<i64: 8, 16>}, {pipeline_mode = #tpu.pipeline_mode<synchronous>, transform_indices = @transform_11, window_bounds = array<i64: 8, 1>}, {pipeline_mode = #tpu.pipeline_mode<synchronous>, transform_indices = @transform_12, window_bounds = array<i64: 16, 8>}, {pipeline_mode = #tpu.pipeline_mode<synchronous>, transform_indices = @transform_13, window_bounds = array<i64: 16, 1>}, {pipeline_mode = #tpu.pipeline_mode<synchronous>, transform_indices = @transform_14, window_bounds = array<i64: 1, 1>}, {transform_indices = @transform_15, window_bounds = array<i64: 16, 512>}]} {
    %c0 = arith.constant 0 : index
    %c0_0 = arith.constant 0 : index
    %0 = vector.load %arg1[%c0, %c0_0] : memref<8x512xf32, #tpu.memory_space<vmem>>, vector<8x512xf32>
    %cst = arith.constant 5.000000e-01 : f32
    %1 = vector.broadcast %cst : f32 to vector<8x512xf32>
    %2 = arith.mulf %1, %0 : vector<8x512xf32>
    %cst_1 = arith.constant 0.707106769 : f32
    %3 = vector.broadcast %cst_1 : f32 to vector<8x512xf32>
    %4 = arith.mulf %0, %3 : vector<8x512xf32>
    %5 = math.absf %4 : vector<8x512xf32>
    %cst_2 = arith.constant 0.327591091 : f32
    %6 = vector.broadcast %cst_2 : f32 to vector<8x512xf32>
    %7 = arith.mulf %6, %5 : vector<8x512xf32>
    %cst_3 = arith.constant 1.000000e+00 : f32
    %8 = vector.broadcast %cst_3 : f32 to vector<8x512xf32>
    %9 = arith.addf %8, %7 : vector<8x512xf32>
    %10 = tpu.reciprocal %9 {approx = true} : vector<8x512xf32> -> vector<8x512xf32>
    %11 = arith.mulf %9, %10 : vector<8x512xf32>
    %cst_4 = arith.constant 2.000000e+00 : f32
    %12 = vector.broadcast %cst_4 : f32 to vector<8x512xf32>
    %13 = arith.subf %12, %11 : vector<8x512xf32>
    %14 = arith.mulf %10, %13 : vector<8x512xf32>
    %cst_5 = arith.constant 1.06140542 : f32
    %15 = vector.broadcast %cst_5 : f32 to vector<8x512xf32>
    %16 = arith.mulf %15, %14 : vector<8x512xf32>
    %cst_6 = arith.constant -1.45315206 : f32
    %17 = vector.broadcast %cst_6 : f32 to vector<8x512xf32>
    %18 = arith.addf %16, %17 : vector<8x512xf32>
    %19 = arith.mulf %18, %14 : vector<8x512xf32>
    %cst_7 = arith.constant 1.42141378 : f32
    %20 = vector.broadcast %cst_7 : f32 to vector<8x512xf32>
    %21 = arith.addf %19, %20 : vector<8x512xf32>
    %22 = arith.mulf %21, %14 : vector<8x512xf32>
    %cst_8 = arith.constant -0.284496725 : f32
    %23 = vector.broadcast %cst_8 : f32 to vector<8x512xf32>
    %24 = arith.addf %22, %23 : vector<8x512xf32>
    %25 = arith.mulf %24, %14 : vector<8x512xf32>
    %cst_9 = arith.constant 0.254829586 : f32
    %26 = vector.broadcast %cst_9 : f32 to vector<8x512xf32>
    %27 = arith.addf %25, %26 : vector<8x512xf32>
    %28 = arith.mulf %27, %14 : vector<8x512xf32>
    %cst_10 = arith.constant 0.000000e+00 : f32
    %29 = vector.broadcast %cst_10 : f32 to vector<8x512xf32>
    %30 = arith.subf %29, %5 : vector<8x512xf32>
    %31 = arith.mulf %30, %5 : vector<8x512xf32>
    %32 = math.exp %31 : vector<8x512xf32>
    %33 = arith.mulf %28, %32 : vector<8x512xf32>
    %cst_11 = arith.constant 1.000000e+00 : f32
    %34 = vector.broadcast %cst_11 : f32 to vector<8x512xf32>
    %35 = arith.subf %34, %33 : vector<8x512xf32>
    %cst_12 = arith.constant 0.000000e+00 : f32
    %36 = vector.broadcast %cst_12 : f32 to vector<8x512xf32>
    %37 = arith.cmpf oge, %4, %36 : vector<8x512xf32>
    %cst_13 = arith.constant 0.000000e+00 : f32
    %38 = vector.broadcast %cst_13 : f32 to vector<8x512xf32>
    %39 = arith.subf %38, %35 : vector<8x512xf32>
    %40 = arith.select %37, %35, %39 : vector<8x512xi1>, vector<8x512xf32>
    %cst_14 = arith.constant 1.000000e+00 : f32
    %41 = vector.broadcast %cst_14 : f32 to vector<8x512xf32>
    %42 = arith.addf %41, %40 : vector<8x512xf32>
    %43 = arith.mulf %2, %42 : vector<8x512xf32>
    %cst_15 = arith.constant 1.70150435 : f32
    %44 = vector.broadcast %cst_15 : f32 to vector<8x512xf32>
    %45 = arith.mulf %43, %44 : vector<8x512xf32>
    %c0_16 = arith.constant 0 : index
    %c0_17 = arith.constant 0 : index
    %46 = vector.load %arg3[%c0_16, %c0_17] : memref<24x8xf32, #tpu.memory_space<vmem>>, vector<24x8xf32>
    %cst_18 = arith.constant dense<0.000000e+00> : vector<24x512xf32>
    %47 = tpu.matmul %46, %45, %cst_18 {dimension_numbers = #tpu.dot_dimension_numbers<[1], [0], [0], [1], [0, 0, 1, 1], [], []>} : vector<24x8xf32>, vector<8x512xf32>, vector<24x512xf32> -> vector<24x512xf32>
    %c0_19 = arith.constant 0 : index
    %c0_20 = arith.constant 0 : index
    %48 = vector.load %arg4[%c0_19, %c0_20] : memref<24x1xf32, #tpu.memory_space<vmem>>, vector<24x1xf32>
    %49 = vector.broadcast %48 : vector<24x1xf32> to vector<24x512xf32>
    %50 = arith.addf %47, %49 : vector<24x512xf32>
    %51 = vector.extract_strided_slice %50 {offsets = [0, 0], sizes = [16, 512], strides = [1, 1]} : vector<24x512xf32> to vector<16x512xf32>
    %52 = vector.extract_strided_slice %50 {offsets = [16, 0], sizes = [8, 512], strides = [1, 1]} : vector<24x512xf32> to vector<8x512xf32>
    %cst_21 = arith.constant 5.000000e-01 : f32
    %53 = vector.broadcast %cst_21 : f32 to vector<8x512xf32>
    %54 = arith.mulf %53, %52 : vector<8x512xf32>
    %cst_22 = arith.constant 0.707106769 : f32
    %55 = vector.broadcast %cst_22 : f32 to vector<8x512xf32>
    %56 = arith.mulf %52, %55 : vector<8x512xf32>
    %57 = math.absf %56 : vector<8x512xf32>
    %cst_23 = arith.constant 0.327591091 : f32
    %58 = vector.broadcast %cst_23 : f32 to vector<8x512xf32>
    %59 = arith.mulf %58, %57 : vector<8x512xf32>
    %cst_24 = arith.constant 1.000000e+00 : f32
    %60 = vector.broadcast %cst_24 : f32 to vector<8x512xf32>
    %61 = arith.addf %60, %59 : vector<8x512xf32>
    %62 = tpu.reciprocal %61 {approx = true} : vector<8x512xf32> -> vector<8x512xf32>
    %63 = arith.mulf %61, %62 : vector<8x512xf32>
    %cst_25 = arith.constant 2.000000e+00 : f32
    %64 = vector.broadcast %cst_25 : f32 to vector<8x512xf32>
    %65 = arith.subf %64, %63 : vector<8x512xf32>
    %66 = arith.mulf %62, %65 : vector<8x512xf32>
    %cst_26 = arith.constant 1.06140542 : f32
    %67 = vector.broadcast %cst_26 : f32 to vector<8x512xf32>
    %68 = arith.mulf %67, %66 : vector<8x512xf32>
    %cst_27 = arith.constant -1.45315206 : f32
    %69 = vector.broadcast %cst_27 : f32 to vector<8x512xf32>
    %70 = arith.addf %68, %69 : vector<8x512xf32>
    %71 = arith.mulf %70, %66 : vector<8x512xf32>
    %cst_28 = arith.constant 1.42141378 : f32
    %72 = vector.broadcast %cst_28 : f32 to vector<8x512xf32>
    %73 = arith.addf %71, %72 : vector<8x512xf32>
    %74 = arith.mulf %73, %66 : vector<8x512xf32>
    %cst_29 = arith.constant -0.284496725 : f32
    %75 = vector.broadcast %cst_29 : f32 to vector<8x512xf32>
    %76 = arith.addf %74, %75 : vector<8x512xf32>
    %77 = arith.mulf %76, %66 : vector<8x512xf32>
    %cst_30 = arith.constant 0.254829586 : f32
    %78 = vector.broadcast %cst_30 : f32 to vector<8x512xf32>
    %79 = arith.addf %77, %78 : vector<8x512xf32>
    %80 = arith.mulf %79, %66 : vector<8x512xf32>
    %cst_31 = arith.constant 0.000000e+00 : f32
    %81 = vector.broadcast %cst_31 : f32 to vector<8x512xf32>
    %82 = arith.subf %81, %57 : vector<8x512xf32>
    %83 = arith.mulf %82, %57 : vector<8x512xf32>
    %84 = math.exp %83 : vector<8x512xf32>
    %85 = arith.mulf %80, %84 : vector<8x512xf32>
    %cst_32 = arith.constant 1.000000e+00 : f32
    %86 = vector.broadcast %cst_32 : f32 to vector<8x512xf32>
    %87 = arith.subf %86, %85 : vector<8x512xf32>
    %cst_33 = arith.constant 0.000000e+00 : f32
    %88 = vector.broadcast %cst_33 : f32 to vector<8x512xf32>
    %89 = arith.cmpf oge, %56, %88 : vector<8x512xf32>
    %cst_34 = arith.constant 0.000000e+00 : f32
    %90 = vector.broadcast %cst_34 : f32 to vector<8x512xf32>
    %91 = arith.subf %90, %87 : vector<8x512xf32>
    %92 = arith.select %89, %87, %91 : vector<8x512xi1>, vector<8x512xf32>
    %cst_35 = arith.constant 1.000000e+00 : f32
    %93 = vector.broadcast %cst_35 : f32 to vector<8x512xf32>
    %94 = arith.addf %93, %92 : vector<8x512xf32>
    %95 = arith.mulf %54, %94 : vector<8x512xf32>
    %cst_36 = arith.constant 1.70150435 : f32
    %96 = vector.broadcast %cst_36 : f32 to vector<8x512xf32>
    %97 = arith.mulf %95, %96 : vector<8x512xf32>
    %cst_37 = arith.constant 0.000000e+00 : f32
    %98 = vector.broadcast %cst_37 : f32 to vector<8x128xf32>
    %c0_38 = arith.constant 0 : index
    %c0_39 = arith.constant 0 : index
    %99 = vector.load %arg17[%c0_38, %c0_39] : memref<8x768xf32, #tpu.memory_space<vmem>>, vector<8x128xf32>
    tpu.vector_store %arg17[%c0_38, %c0_39], %98 {strides = array<i32>} : memref<8x768xf32, #tpu.memory_space<vmem>>, vector<8x128xf32>,
    %c0_40 = arith.constant 0 : index
    %c640 = arith.constant 640 : index
    %100 = vector.load %arg17[%c0_40, %c640] : memref<8x768xf32, #tpu.memory_space<vmem>>, vector<8x128xf32>
    tpu.vector_store %arg17[%c0_40, %c640], %98 {strides = array<i32>} : memref<8x768xf32, #tpu.memory_space<vmem>>, vector<8x128xf32>,
    %c0_41 = arith.constant 0 : index
    %c128 = arith.constant 128 : index
    %101 = vector.load %arg17[%c0_41, %c128] : memref<8x768xf32, #tpu.memory_space<vmem>>, vector<8x512xf32>
    tpu.vector_store %arg17[%c0_41, %c128], %97 {strides = array<i32>} : memref<8x768xf32, #tpu.memory_space<vmem>>, vector<8x512xf32>,
    %cst_42 = arith.constant 0.000000e+00 : f32
    %102 = vector.broadcast %cst_42 : f32 to vector<8x512xf32>
    %c0_43 = arith.constant 0 : index
    %c111 = arith.constant 111 : index
    %103 = vector.load %arg17[%c0_43, %c111] : memref<8x768xf32, #tpu.memory_space<vmem>>, vector<8x512xf32>
    %c0_44 = arith.constant 0 : index
    %c0_45 = arith.constant 0 : index
    %104 = vector.load %arg2[%c0_44, %c0_45] : memref<9x512xf32, #tpu.memory_space<vmem>>, vector<1x512xf32>
    %105 = vector.broadcast %104 : vector<1x512xf32> to vector<8x512xf32>
    %106 = arith.mulf %103, %105 : vector<8x512xf32>
    %c0_46 = arith.constant 0 : index
    %c0_47 = arith.constant 0 : index
    %107 = vector.load %arg5[%c0_46, %c0_47] : memref<8x9xf32, #tpu.memory_space<vmem>>, vector<8x1xf32>
    %108 = vector.broadcast %107 : vector<8x1xf32> to vector<8x512xf32>
    %109 = arith.mulf %106, %108 : vector<8x512xf32>
    %110 = arith.addf %102, %109 : vector<8x512xf32>
    %c0_48 = arith.constant 0 : index
    %c112 = arith.constant 112 : index
    %111 = vector.load %arg17[%c0_48, %c112] : memref<8x768xf32, #tpu.memory_space<vmem>>, vector<8x512xf32>
    %c1 = arith.constant 1 : index
    %c0_49 = arith.constant 0 : index
    %112 = vector.load %arg2[%c1, %c0_49] : memref<9x512xf32, #tpu.memory_space<vmem>>, vector<1x512xf32>
    %113 = vector.broadcast %112 : vector<1x512xf32> to vector<8x512xf32>
    %114 = arith.mulf %111, %113 : vector<8x512xf32>
    %c0_50 = arith.constant 0 : index
    %c1_51 = arith.constant 1 : index
    %115 = vector.load %arg5[%c0_50, %c1_51] : memref<8x9xf32, #tpu.memory_space<vmem>>, vector<8x1xf32>
    %116 = vector.broadcast %115 : vector<8x1xf32> to vector<8x512xf32>
    %117 = arith.mulf %114, %116 : vector<8x512xf32>
    %118 = arith.addf %110, %117 : vector<8x512xf32>
    %c0_52 = arith.constant 0 : index
    %c113 = arith.constant 113 : index
    %119 = vector.load %arg17[%c0_52, %c113] : memref<8x768xf32, #tpu.memory_space<vmem>>, vector<8x512xf32>
    %c2 = arith.constant 2 : index
    %c0_53 = arith.constant 0 : index
    %120 = vector.load %arg2[%c2, %c0_53] : memref<9x512xf32, #tpu.memory_space<vmem>>, vector<1x512xf32>
    %121 = vector.broadcast %120 : vector<1x512xf32> to vector<8x512xf32>
    %122 = arith.mulf %119, %121 : vector<8x512xf32>
    %c0_54 = arith.constant 0 : index
    %c2_55 = arith.constant 2 : index
    %123 = vector.load %arg5[%c0_54, %c2_55] : memref<8x9xf32, #tpu.memory_space<vmem>>, vector<8x1xf32>
    %124 = vector.broadcast %123 : vector<8x1xf32> to vector<8x512xf32>
    %125 = arith.mulf %122, %124 : vector<8x512xf32>
    %126 = arith.addf %118, %125 : vector<8x512xf32>
    %c0_56 = arith.constant 0 : index
    %c127 = arith.constant 127 : index
    %127 = vector.load %arg17[%c0_56, %c127] : memref<8x768xf32, #tpu.memory_space<vmem>>, vector<8x512xf32>
    %c3 = arith.constant 3 : index
    %c0_57 = arith.constant 0 : index
    %128 = vector.load %arg2[%c3, %c0_57] : memref<9x512xf32, #tpu.memory_space<vmem>>, vector<1x512xf32>
    %129 = vector.broadcast %128 : vector<1x512xf32> to vector<8x512xf32>
    %130 = arith.mulf %127, %129 : vector<8x512xf32>
    %c0_58 = arith.constant 0 : index
    %c3_59 = arith.constant 3 : index
    %131 = vector.load %arg5[%c0_58, %c3_59] : memref<8x9xf32, #tpu.memory_space<vmem>>, vector<8x1xf32>
    %132 = vector.broadcast %131 : vector<8x1xf32> to vector<8x512xf32>
    %133 = arith.mulf %130, %132 : vector<8x512xf32>
    %134 = arith.addf %126, %133 : vector<8x512xf32>
    %c0_60 = arith.constant 0 : index
    %c128_61 = arith.constant 128 : index
    %135 = vector.load %arg17[%c0_60, %c128_61] : memref<8x768xf32, #tpu.memory_space<vmem>>, vector<8x512xf32>
    %c0_62 = arith.constant 0 : index
    %c4 = arith.constant 4 : index
    %136 = vector.load %arg5[%c0_62, %c4] : memref<8x9xf32, #tpu.memory_space<vmem>>, vector<8x1xf32>
    %137 = vector.broadcast %136 : vector<8x1xf32> to vector<8x512xf32>
    %138 = arith.mulf %135, %137 : vector<8x512xf32>
    %139 = arith.addf %134, %138 : vector<8x512xf32>
    %c0_63 = arith.constant 0 : index
    %c129 = arith.constant 129 : index
    %140 = vector.load %arg17[%c0_63, %c129] : memref<8x768xf32, #tpu.memory_space<vmem>>, vector<8x512xf32>
    %c5 = arith.constant 5 : index
    %c0_64 = arith.constant 0 : index
    %141 = vector.load %arg2[%c5, %c0_64] : memref<9x512xf32, #tpu.memory_space<vmem>>, vector<1x512xf32>
    %142 = vector.broadcast %141 : vector<1x512xf32> to vector<8x512xf32>
    %143 = arith.mulf %140, %142 : vector<8x512xf32>
    %c0_65 = arith.constant 0 : index
    %c5_66 = arith.constant 5 : index
    %144 = vector.load %arg5[%c0_65, %c5_66] : memref<8x9xf32, #tpu.memory_space<vmem>>, vector<8x1xf32>
    %145 = vector.broadcast %144 : vector<8x1xf32> to vector<8x512xf32>
    %146 = arith.mulf %143, %145 : vector<8x512xf32>
    %147 = arith.addf %139, %146 : vector<8x512xf32>
    %c0_67 = arith.constant 0 : index
    %c143 = arith.constant 143 : index
    %148 = vector.load %arg17[%c0_67, %c143] : memref<8x768xf32, #tpu.memory_space<vmem>>, vector<8x512xf32>
    %c6 = arith.constant 6 : index
    %c0_68 = arith.constant 0 : index
    %149 = vector.load %arg2[%c6, %c0_68] : memref<9x512xf32, #tpu.memory_space<vmem>>, vector<1x512xf32>
    %150 = vector.broadcast %149 : vector<1x512xf32> to vector<8x512xf32>
    %151 = arith.mulf %148, %150 : vector<8x512xf32>
    %c0_69 = arith.constant 0 : index
    %c6_70 = arith.constant 6 : index
    %152 = vector.load %arg5[%c0_69, %c6_70] : memref<8x9xf32, #tpu.memory_space<vmem>>, vector<8x1xf32>
    %153 = vector.broadcast %152 : vector<8x1xf32> to vector<8x512xf32>
    %154 = arith.mulf %151, %153 : vector<8x512xf32>
    %155 = arith.addf %147, %154 : vector<8x512xf32>
    %c0_71 = arith.constant 0 : index
    %c144 = arith.constant 144 : index
    %156 = vector.load %arg17[%c0_71, %c144] : memref<8x768xf32, #tpu.memory_space<vmem>>, vector<8x512xf32>
    %c7 = arith.constant 7 : index
    %c0_72 = arith.constant 0 : index
    %157 = vector.load %arg2[%c7, %c0_72] : memref<9x512xf32, #tpu.memory_space<vmem>>, vector<1x512xf32>
    %158 = vector.broadcast %157 : vector<1x512xf32> to vector<8x512xf32>
    %159 = arith.mulf %156, %158 : vector<8x512xf32>
    %c0_73 = arith.constant 0 : index
    %c7_74 = arith.constant 7 : index
    %160 = vector.load %arg5[%c0_73, %c7_74] : memref<8x9xf32, #tpu.memory_space<vmem>>, vector<8x1xf32>
    %161 = vector.broadcast %160 : vector<8x1xf32> to vector<8x512xf32>
    %162 = arith.mulf %159, %161 : vector<8x512xf32>
    %163 = arith.addf %155, %162 : vector<8x512xf32>
    %c0_75 = arith.constant 0 : index
    %c145 = arith.constant 145 : index
    %164 = vector.load %arg17[%c0_75, %c145] : memref<8x768xf32, #tpu.memory_space<vmem>>, vector<8x512xf32>
    %c8 = arith.constant 8 : index
    %c0_76 = arith.constant 0 : index
    %165 = vector.load %arg2[%c8, %c0_76] : memref<9x512xf32, #tpu.memory_space<vmem>>, vector<1x512xf32>
    %166 = vector.broadcast %165 : vector<1x512xf32> to vector<8x512xf32>
    %167 = arith.mulf %164, %166 : vector<8x512xf32>
    %c0_77 = arith.constant 0 : index
    %c8_78 = arith.constant 8 : index
    %168 = vector.load %arg5[%c0_77, %c8_78] : memref<8x9xf32, #tpu.memory_space<vmem>>, vector<8x1xf32>
    %169 = vector.broadcast %168 : vector<8x1xf32> to vector<8x512xf32>
    %170 = arith.mulf %167, %169 : vector<8x512xf32>
    %171 = arith.addf %163, %170 : vector<8x512xf32>
    %c0_79 = arith.constant 0 : index
    %c0_80 = arith.constant 0 : index
    %172 = vector.load %arg6[%c0_79, %c0_80] : memref<8x1xf32, #tpu.memory_space<vmem>>, vector<8x1xf32>
    %173 = vector.broadcast %172 : vector<8x1xf32> to vector<8x512xf32>
    %174 = arith.addf %171, %173 : vector<8x512xf32>
    %cst_81 = arith.constant 5.000000e-01 : f32
    %175 = vector.broadcast %cst_81 : f32 to vector<8x512xf32>
    %176 = arith.mulf %175, %174 : vector<8x512xf32>
    %cst_82 = arith.constant 0.707106769 : f32
    %177 = vector.broadcast %cst_82 : f32 to vector<8x512xf32>
    %178 = arith.mulf %174, %177 : vector<8x512xf32>
    %179 = math.absf %178 : vector<8x512xf32>
    %cst_83 = arith.constant 0.327591091 : f32
    %180 = vector.broadcast %cst_83 : f32 to vector<8x512xf32>
    %181 = arith.mulf %180, %179 : vector<8x512xf32>
    %cst_84 = arith.constant 1.000000e+00 : f32
    %182 = vector.broadcast %cst_84 : f32 to vector<8x512xf32>
    %183 = arith.addf %182, %181 : vector<8x512xf32>
    %184 = tpu.reciprocal %183 {approx = true} : vector<8x512xf32> -> vector<8x512xf32>
    %185 = arith.mulf %183, %184 : vector<8x512xf32>
    %cst_85 = arith.constant 2.000000e+00 : f32
    %186 = vector.broadcast %cst_85 : f32 to vector<8x512xf32>
    %187 = arith.subf %186, %185 : vector<8x512xf32>
    %188 = arith.mulf %184, %187 : vector<8x512xf32>
    %cst_86 = arith.constant 1.06140542 : f32
    %189 = vector.broadcast %cst_86 : f32 to vector<8x512xf32>
    %190 = arith.mulf %189, %188 : vector<8x512xf32>
    %cst_87 = arith.constant -1.45315206 : f32
    %191 = vector.broadcast %cst_87 : f32 to vector<8x512xf32>
    %192 = arith.addf %190, %191 : vector<8x512xf32>
    %193 = arith.mulf %192, %188 : vector<8x512xf32>
    %cst_88 = arith.constant 1.42141378 : f32
    %194 = vector.broadcast %cst_88 : f32 to vector<8x512xf32>
    %195 = arith.addf %193, %194 : vector<8x512xf32>
    %196 = arith.mulf %195, %188 : vector<8x512xf32>
    %cst_89 = arith.constant -0.284496725 : f32
    %197 = vector.broadcast %cst_89 : f32 to vector<8x512xf32>
    %198 = arith.addf %196, %197 : vector<8x512xf32>
    %199 = arith.mulf %198, %188 : vector<8x512xf32>
    %cst_90 = arith.constant 0.254829586 : f32
    %200 = vector.broadcast %cst_90 : f32 to vector<8x512xf32>
    %201 = arith.addf %199, %200 : vector<8x512xf32>
    %202 = arith.mulf %201, %188 : vector<8x512xf32>
    %cst_91 = arith.constant 0.000000e+00 : f32
    %203 = vector.broadcast %cst_91 : f32 to vector<8x512xf32>
    %204 = arith.subf %203, %179 : vector<8x512xf32>
    %205 = arith.mulf %204, %179 : vector<8x512xf32>
    %206 = math.exp %205 : vector<8x512xf32>
    %207 = arith.mulf %202, %206 : vector<8x512xf32>
    %cst_92 = arith.constant 1.000000e+00 : f32
    %208 = vector.broadcast %cst_92 : f32 to vector<8x512xf32>
    %209 = arith.subf %208, %207 : vector<8x512xf32>
    %cst_93 = arith.constant 0.000000e+00 : f32
    %210 = vector.broadcast %cst_93 : f32 to vector<8x512xf32>
    %211 = arith.cmpf oge, %178, %210 : vector<8x512xf32>
    %cst_94 = arith.constant 0.000000e+00 : f32
    %212 = vector.broadcast %cst_94 : f32 to vector<8x512xf32>
    %213 = arith.subf %212, %209 : vector<8x512xf32>
    %214 = arith.select %211, %209, %213 : vector<8x512xi1>, vector<8x512xf32>
    %cst_95 = arith.constant 1.000000e+00 : f32
    %215 = vector.broadcast %cst_95 : f32 to vector<8x512xf32>
    %216 = arith.addf %215, %214 : vector<8x512xf32>
    %217 = arith.mulf %176, %216 : vector<8x512xf32>
    %cst_96 = arith.constant 1.70150435 : f32
    %218 = vector.broadcast %cst_96 : f32 to vector<8x512xf32>
    %219 = arith.mulf %217, %218 : vector<8x512xf32>
    %c0_97 = arith.constant 0 : index
    %c128_98 = arith.constant 128 : index
    %220 = vector.load %arg17[%c0_97, %c128_98] : memref<8x768xf32, #tpu.memory_space<vmem>>, vector<8x512xf32>
    tpu.vector_store %arg17[%c0_97, %c128_98], %219 {strides = array<i32>} : memref<8x768xf32, #tpu.memory_space<vmem>>, vector<8x512xf32>,
    %cst_99 = arith.constant 0.000000e+00 : f32
    %221 = vector.broadcast %cst_99 : f32 to vector<8x512xf32>
    %c0_100 = arith.constant 0 : index
    %c111_101 = arith.constant 111 : index
    %222 = vector.load %arg17[%c0_100, %c111_101] : memref<8x768xf32, #tpu.memory_space<vmem>>, vector<8x512xf32>
    %c0_102 = arith.constant 0 : index
    %c0_103 = arith.constant 0 : index
    %223 = vector.load %arg2[%c0_102, %c0_103] : memref<9x512xf32, #tpu.memory_space<vmem>>, vector<1x512xf32>
    %224 = vector.broadcast %223 : vector<1x512xf32> to vector<8x512xf32>
    %225 = arith.mulf %222, %224 : vector<8x512xf32>
    %c0_104 = arith.constant 0 : index
    %c0_105 = arith.constant 0 : index
    %226 = vector.load %arg7[%c0_104, %c0_105] : memref<8x9xf32, #tpu.memory_space<vmem>>, vector<8x1xf32>
    %227 = vector.broadcast %226 : vector<8x1xf32> to vector<8x512xf32>
    %228 = arith.mulf %225, %227 : vector<8x512xf32>
    %229 = arith.addf %221, %228 : vector<8x512xf32>
    %c0_106 = arith.constant 0 : index
    %c112_107 = arith.constant 112 : index
    %230 = vector.load %arg17[%c0_106, %c112_107] : memref<8x768xf32, #tpu.memory_space<vmem>>, vector<8x512xf32>
    %c1_108 = arith.constant 1 : index
    %c0_109 = arith.constant 0 : index
    %231 = vector.load %arg2[%c1_108, %c0_109] : memref<9x512xf32, #tpu.memory_space<vmem>>, vector<1x512xf32>
    %232 = vector.broadcast %231 : vector<1x512xf32> to vector<8x512xf32>
    %233 = arith.mulf %230, %232 : vector<8x512xf32>
    %c0_110 = arith.constant 0 : index
    %c1_111 = arith.constant 1 : index
    %234 = vector.load %arg7[%c0_110, %c1_111] : memref<8x9xf32, #tpu.memory_space<vmem>>, vector<8x1xf32>
    %235 = vector.broadcast %234 : vector<8x1xf32> to vector<8x512xf32>
    %236 = arith.mulf %233, %235 : vector<8x512xf32>
    %237 = arith.addf %229, %236 : vector<8x512xf32>
    %c0_112 = arith.constant 0 : index
    %c113_113 = arith.constant 113 : index
    %238 = vector.load %arg17[%c0_112, %c113_113] : memref<8x768xf32, #tpu.memory_space<vmem>>, vector<8x512xf32>
    %c2_114 = arith.constant 2 : index
    %c0_115 = arith.constant 0 : index
    %239 = vector.load %arg2[%c2_114, %c0_115] : memref<9x512xf32, #tpu.memory_space<vmem>>, vector<1x512xf32>
    %240 = vector.broadcast %239 : vector<1x512xf32> to vector<8x512xf32>
    %241 = arith.mulf %238, %240 : vector<8x512xf32>
    %c0_116 = arith.constant 0 : index
    %c2_117 = arith.constant 2 : index
    %242 = vector.load %arg7[%c0_116, %c2_117] : memref<8x9xf32, #tpu.memory_space<vmem>>, vector<8x1xf32>
    %243 = vector.broadcast %242 : vector<8x1xf32> to vector<8x512xf32>
    %244 = arith.mulf %241, %243 : vector<8x512xf32>
    %245 = arith.addf %237, %244 : vector<8x512xf32>
    %c0_118 = arith.constant 0 : index
    %c127_119 = arith.constant 127 : index
    %246 = vector.load %arg17[%c0_118, %c127_119] : memref<8x768xf32, #tpu.memory_space<vmem>>, vector<8x512xf32>
    %c3_120 = arith.constant 3 : index
    %c0_121 = arith.constant 0 : index
    %247 = vector.load %arg2[%c3_120, %c0_121] : memref<9x512xf32, #tpu.memory_space<vmem>>, vector<1x512xf32>
    %248 = vector.broadcast %247 : vector<1x512xf32> to vector<8x512xf32>
    %249 = arith.mulf %246, %248 : vector<8x512xf32>
    %c0_122 = arith.constant 0 : index
    %c3_123 = arith.constant 3 : index
    %250 = vector.load %arg7[%c0_122, %c3_123] : memref<8x9xf32, #tpu.memory_space<vmem>>, vector<8x1xf32>
    %251 = vector.broadcast %250 : vector<8x1xf32> to vector<8x512xf32>
    %252 = arith.mulf %249, %251 : vector<8x512xf32>
    %253 = arith.addf %245, %252 : vector<8x512xf32>
    %c0_124 = arith.constant 0 : index
    %c128_125 = arith.constant 128 : index
    %254 = vector.load %arg17[%c0_124, %c128_125] : memref<8x768xf32, #tpu.memory_space<vmem>>, vector<8x512xf32>
    %c0_126 = arith.constant 0 : index
    %c4_127 = arith.constant 4 : index
    %255 = vector.load %arg7[%c0_126, %c4_127] : memref<8x9xf32, #tpu.memory_space<vmem>>, vector<8x1xf32>
    %256 = vector.broadcast %255 : vector<8x1xf32> to vector<8x512xf32>
    %257 = arith.mulf %254, %256 : vector<8x512xf32>
    %258 = arith.addf %253, %257 : vector<8x512xf32>
    %c0_128 = arith.constant 0 : index
    %c129_129 = arith.constant 129 : index
    %259 = vector.load %arg17[%c0_128, %c129_129] : memref<8x768xf32, #tpu.memory_space<vmem>>, vector<8x512xf32>
    %c5_130 = arith.constant 5 : index
    %c0_131 = arith.constant 0 : index
    %260 = vector.load %arg2[%c5_130, %c0_131] : memref<9x512xf32, #tpu.memory_space<vmem>>, vector<1x512xf32>
    %261 = vector.broadcast %260 : vector<1x512xf32> to vector<8x512xf32>
    %262 = arith.mulf %259, %261 : vector<8x512xf32>
    %c0_132 = arith.constant 0 : index
    %c5_133 = arith.constant 5 : index
    %263 = vector.load %arg7[%c0_132, %c5_133] : memref<8x9xf32, #tpu.memory_space<vmem>>, vector<8x1xf32>
    %264 = vector.broadcast %263 : vector<8x1xf32> to vector<8x512xf32>
    %265 = arith.mulf %262, %264 : vector<8x512xf32>
    %266 = arith.addf %258, %265 : vector<8x512xf32>
    %c0_134 = arith.constant 0 : index
    %c143_135 = arith.constant 143 : index
    %267 = vector.load %arg17[%c0_134, %c143_135] : memref<8x768xf32, #tpu.memory_space<vmem>>, vector<8x512xf32>
    %c6_136 = arith.constant 6 : index
    %c0_137 = arith.constant 0 : index
    %268 = vector.load %arg2[%c6_136, %c0_137] : memref<9x512xf32, #tpu.memory_space<vmem>>, vector<1x512xf32>
    %269 = vector.broadcast %268 : vector<1x512xf32> to vector<8x512xf32>
    %270 = arith.mulf %267, %269 : vector<8x512xf32>
    %c0_138 = arith.constant 0 : index
    %c6_139 = arith.constant 6 : index
    %271 = vector.load %arg7[%c0_138, %c6_139] : memref<8x9xf32, #tpu.memory_space<vmem>>, vector<8x1xf32>
    %272 = vector.broadcast %271 : vector<8x1xf32> to vector<8x512xf32>
    %273 = arith.mulf %270, %272 : vector<8x512xf32>
    %274 = arith.addf %266, %273 : vector<8x512xf32>
    %c0_140 = arith.constant 0 : index
    %c144_141 = arith.constant 144 : index
    %275 = vector.load %arg17[%c0_140, %c144_141] : memref<8x768xf32, #tpu.memory_space<vmem>>, vector<8x512xf32>
    %c7_142 = arith.constant 7 : index
    %c0_143 = arith.constant 0 : index
    %276 = vector.load %arg2[%c7_142, %c0_143] : memref<9x512xf32, #tpu.memory_space<vmem>>, vector<1x512xf32>
    %277 = vector.broadcast %276 : vector<1x512xf32> to vector<8x512xf32>
    %278 = arith.mulf %275, %277 : vector<8x512xf32>
    %c0_144 = arith.constant 0 : index
    %c7_145 = arith.constant 7 : index
    %279 = vector.load %arg7[%c0_144, %c7_145] : memref<8x9xf32, #tpu.memory_space<vmem>>, vector<8x1xf32>
    %280 = vector.broadcast %279 : vector<8x1xf32> to vector<8x512xf32>
    %281 = arith.mulf %278, %280 : vector<8x512xf32>
    %282 = arith.addf %274, %281 : vector<8x512xf32>
    %c0_146 = arith.constant 0 : index
    %c145_147 = arith.constant 145 : index
    %283 = vector.load %arg17[%c0_146, %c145_147] : memref<8x768xf32, #tpu.memory_space<vmem>>, vector<8x512xf32>
    %c8_148 = arith.constant 8 : index
    %c0_149 = arith.constant 0 : index
    %284 = vector.load %arg2[%c8_148, %c0_149] : memref<9x512xf32, #tpu.memory_space<vmem>>, vector<1x512xf32>
    %285 = vector.broadcast %284 : vector<1x512xf32> to vector<8x512xf32>
    %286 = arith.mulf %283, %285 : vector<8x512xf32>
    %c0_150 = arith.constant 0 : index
    %c8_151 = arith.constant 8 : index
    %287 = vector.load %arg7[%c0_150, %c8_151] : memref<8x9xf32, #tpu.memory_space<vmem>>, vector<8x1xf32>
    %288 = vector.broadcast %287 : vector<8x1xf32> to vector<8x512xf32>
    %289 = arith.mulf %286, %288 : vector<8x512xf32>
    %290 = arith.addf %282, %289 : vector<8x512xf32>
    %c0_152 = arith.constant 0 : index
    %c0_153 = arith.constant 0 : index
    %291 = vector.load %arg8[%c0_152, %c0_153] : memref<8x1xf32, #tpu.memory_space<vmem>>, vector<8x1xf32>
    %292 = vector.broadcast %291 : vector<8x1xf32> to vector<8x512xf32>
    %293 = arith.addf %290, %292 : vector<8x512xf32>
    %cst_154 = arith.constant 5.000000e-01 : f32
    %294 = vector.broadcast %cst_154 : f32 to vector<8x512xf32>
    %295 = arith.mulf %294, %293 : vector<8x512xf32>
    %cst_155 = arith.constant 0.707106769 : f32
    %296 = vector.broadcast %cst_155 : f32 to vector<8x512xf32>
    %297 = arith.mulf %293, %296 : vector<8x512xf32>
    %298 = math.absf %297 : vector<8x512xf32>
    %cst_156 = arith.constant 0.327591091 : f32
    %299 = vector.broadcast %cst_156 : f32 to vector<8x512xf32>
    %300 = arith.mulf %299, %298 : vector<8x512xf32>
    %cst_157 = arith.constant 1.000000e+00 : f32
    %301 = vector.broadcast %cst_157 : f32 to vector<8x512xf32>
    %302 = arith.addf %301, %300 : vector<8x512xf32>
    %303 = tpu.reciprocal %302 {approx = true} : vector<8x512xf32> -> vector<8x512xf32>
    %304 = arith.mulf %302, %303 : vector<8x512xf32>
    %cst_158 = arith.constant 2.000000e+00 : f32
    %305 = vector.broadcast %cst_158 : f32 to vector<8x512xf32>
    %306 = arith.subf %305, %304 : vector<8x512xf32>
    %307 = arith.mulf %303, %306 : vector<8x512xf32>
    %cst_159 = arith.constant 1.06140542 : f32
    %308 = vector.broadcast %cst_159 : f32 to vector<8x512xf32>
    %309 = arith.mulf %308, %307 : vector<8x512xf32>
    %cst_160 = arith.constant -1.45315206 : f32
    %310 = vector.broadcast %cst_160 : f32 to vector<8x512xf32>
    %311 = arith.addf %309, %310 : vector<8x512xf32>
    %312 = arith.mulf %311, %307 : vector<8x512xf32>
    %cst_161 = arith.constant 1.42141378 : f32
    %313 = vector.broadcast %cst_161 : f32 to vector<8x512xf32>
    %314 = arith.addf %312, %313 : vector<8x512xf32>
    %315 = arith.mulf %314, %307 : vector<8x512xf32>
    %cst_162 = arith.constant -0.284496725 : f32
    %316 = vector.broadcast %cst_162 : f32 to vector<8x512xf32>
    %317 = arith.addf %315, %316 : vector<8x512xf32>
    %318 = arith.mulf %317, %307 : vector<8x512xf32>
    %cst_163 = arith.constant 0.254829586 : f32
    %319 = vector.broadcast %cst_163 : f32 to vector<8x512xf32>
    %320 = arith.addf %318, %319 : vector<8x512xf32>
    %321 = arith.mulf %320, %307 : vector<8x512xf32>
    %cst_164 = arith.constant 0.000000e+00 : f32
    %322 = vector.broadcast %cst_164 : f32 to vector<8x512xf32>
    %323 = arith.subf %322, %298 : vector<8x512xf32>
    %324 = arith.mulf %323, %298 : vector<8x512xf32>
    %325 = math.exp %324 : vector<8x512xf32>
    %326 = arith.mulf %321, %325 : vector<8x512xf32>
    %cst_165 = arith.constant 1.000000e+00 : f32
    %327 = vector.broadcast %cst_165 : f32 to vector<8x512xf32>
    %328 = arith.subf %327, %326 : vector<8x512xf32>
    %cst_166 = arith.constant 0.000000e+00 : f32
    %329 = vector.broadcast %cst_166 : f32 to vector<8x512xf32>
    %330 = arith.cmpf oge, %297, %329 : vector<8x512xf32>
    %cst_167 = arith.constant 0.000000e+00 : f32
    %331 = vector.broadcast %cst_167 : f32 to vector<8x512xf32>
    %332 = arith.subf %331, %328 : vector<8x512xf32>
    %333 = arith.select %330, %328, %332 : vector<8x512xi1>, vector<8x512xf32>
    %cst_168 = arith.constant 1.000000e+00 : f32
    %334 = vector.broadcast %cst_168 : f32 to vector<8x512xf32>
    %335 = arith.addf %334, %333 : vector<8x512xf32>
    %336 = arith.mulf %295, %335 : vector<8x512xf32>
    %cst_169 = arith.constant 1.70150435 : f32
    %337 = vector.broadcast %cst_169 : f32 to vector<8x512xf32>
    %338 = arith.mulf %336, %337 : vector<8x512xf32>
    %c0_170 = arith.constant 0 : index
    %c0_171 = arith.constant 0 : index
    %339 = vector.load %arg9[%c0_170, %c0_171] : memref<16x8xf32, #tpu.memory_space<vmem>>, vector<16x8xf32>
    %cst_172 = arith.constant dense<0.000000e+00> : vector<16x512xf32>
    %340 = tpu.matmul %339, %338, %cst_172 {dimension_numbers = #tpu.dot_dimension_numbers<[1], [0], [0], [1], [0, 0, 1, 1], [], []>} : vector<16x8xf32>, vector<8x512xf32>, vector<16x512xf32> -> vector<16x512xf32>
    %c0_173 = arith.constant 0 : index
    %c0_174 = arith.constant 0 : index
    %341 = vector.load %arg10[%c0_173, %c0_174] : memref<16x1xf32, #tpu.memory_space<vmem>>, vector<16x1xf32>
    %342 = vector.broadcast %341 : vector<16x1xf32> to vector<16x512xf32>
    %343 = arith.addf %340, %342 : vector<16x512xf32>
    %344 = vector.extract_strided_slice %343 {offsets = [0, 0], sizes = [16, 256], strides = [1, 1]} : vector<16x512xf32> to vector<16x256xf32>
    %cst_175 = arith.constant dense<0.000000e+00> : vector<16xf32>
    %345 = vector.multi_reduction <add>, %344, %cst_175 [1] : vector<16x256xf32> to vector<16xf32>
    %346 = vector.shape_cast %345 : vector<16xf32> to vector<16x1xf32>
    %347 = vector.extract_strided_slice %343 {offsets = [0, 256], sizes = [16, 256], strides = [1, 1]} : vector<16x512xf32> to vector<16x256xf32>
    %cst_176 = arith.constant dense<0.000000e+00> : vector<16xf32>
    %348 = vector.multi_reduction <add>, %347, %cst_176 [1] : vector<16x256xf32> to vector<16xf32>
    %349 = vector.shape_cast %348 : vector<16xf32> to vector<16x1xf32>
    %350 = tpu.concatenate %346, %349 in 1 : vector<16x1xf32>, vector<16x1xf32> -> vector<16x2xf32>
    %cst_177 = arith.constant 3.906250e-03 : f32
    %351 = vector.broadcast %cst_177 : f32 to vector<16x2xf32>
    %352 = arith.mulf %350, %351 : vector<16x2xf32>
    %c0_178 = arith.constant 0 : index
    %c0_179 = arith.constant 0 : index
    %353 = vector.load %arg11[%c0_178, %c0_179] : memref<8x16xf32, #tpu.memory_space<vmem>>, vector<8x16xf32>
    %cst_180 = arith.constant dense<0.000000e+00> : vector<8x2xf32>
    %354 = tpu.matmul %353, %352, %cst_180 {dimension_numbers = #tpu.dot_dimension_numbers<[1], [0], [0], [1], [0, 0, 1, 1], [], []>} : vector<8x16xf32>, vector<16x2xf32>, vector<8x2xf32> -> vector<8x2xf32>
    %c0_181 = arith.constant 0 : index
    %c0_182 = arith.constant 0 : index
    %355 = vector.load %arg12[%c0_181, %c0_182] : memref<8x1xf32, #tpu.memory_space<vmem>>, vector<8x1xf32>
    %356 = vector.broadcast %355 : vector<8x1xf32> to vector<8x2xf32>
    %357 = arith.addf %354, %356 : vector<8x2xf32>
    %cst_183 = arith.constant 5.000000e-01 : f32
    %358 = vector.broadcast %cst_183 : f32 to vector<8x2xf32>
    %359 = arith.mulf %358, %357 : vector<8x2xf32>
    %cst_184 = arith.constant 0.707106769 : f32
    %360 = vector.broadcast %cst_184 : f32 to vector<8x2xf32>
    %361 = arith.mulf %357, %360 : vector<8x2xf32>
    %362 = math.absf %361 : vector<8x2xf32>
    %cst_185 = arith.constant 0.327591091 : f32
    %363 = vector.broadcast %cst_185 : f32 to vector<8x2xf32>
    %364 = arith.mulf %363, %362 : vector<8x2xf32>
    %cst_186 = arith.constant 1.000000e+00 : f32
    %365 = vector.broadcast %cst_186 : f32 to vector<8x2xf32>
    %366 = arith.addf %365, %364 : vector<8x2xf32>
    %367 = tpu.reciprocal %366 {approx = true} : vector<8x2xf32> -> vector<8x2xf32>
    %368 = arith.mulf %366, %367 : vector<8x2xf32>
    %cst_187 = arith.constant 2.000000e+00 : f32
    %369 = vector.broadcast %cst_187 : f32 to vector<8x2xf32>
    %370 = arith.subf %369, %368 : vector<8x2xf32>
    %371 = arith.mulf %367, %370 : vector<8x2xf32>
    %cst_188 = arith.constant 1.06140542 : f32
    %372 = vector.broadcast %cst_188 : f32 to vector<8x2xf32>
    %373 = arith.mulf %372, %371 : vector<8x2xf32>
    %cst_189 = arith.constant -1.45315206 : f32
    %374 = vector.broadcast %cst_189 : f32 to vector<8x2xf32>
    %375 = arith.addf %373, %374 : vector<8x2xf32>
    %376 = arith.mulf %375, %371 : vector<8x2xf32>
    %cst_190 = arith.constant 1.42141378 : f32
    %377 = vector.broadcast %cst_190 : f32 to vector<8x2xf32>
    %378 = arith.addf %376, %377 : vector<8x2xf32>
    %379 = arith.mulf %378, %371 : vector<8x2xf32>
    %cst_191 = arith.constant -0.284496725 : f32
    %380 = vector.broadcast %cst_191 : f32 to vector<8x2xf32>
    %381 = arith.addf %379, %380 : vector<8x2xf32>
    %382 = arith.mulf %381, %371 : vector<8x2xf32>
    %cst_192 = arith.constant 0.254829586 : f32
    %383 = vector.broadcast %cst_192 : f32 to vector<8x2xf32>
    %384 = arith.addf %382, %383 : vector<8x2xf32>
    %385 = arith.mulf %384, %371 : vector<8x2xf32>
    %cst_193 = arith.constant 0.000000e+00 : f32
    %386 = vector.broadcast %cst_193 : f32 to vector<8x2xf32>
    %387 = arith.subf %386, %362 : vector<8x2xf32>
    %388 = arith.mulf %387, %362 : vector<8x2xf32>
    %389 = math.exp %388 : vector<8x2xf32>
    %390 = arith.mulf %385, %389 : vector<8x2xf32>
    %cst_194 = arith.constant 1.000000e+00 : f32
    %391 = vector.broadcast %cst_194 : f32 to vector<8x2xf32>
    %392 = arith.subf %391, %390 : vector<8x2xf32>
    %cst_195 = arith.constant 0.000000e+00 : f32
    %393 = vector.broadcast %cst_195 : f32 to vector<8x2xf32>
    %394 = arith.cmpf oge, %361, %393 : vector<8x2xf32>
    %cst_196 = arith.constant 0.000000e+00 : f32
    %395 = vector.broadcast %cst_196 : f32 to vector<8x2xf32>
    %396 = arith.subf %395, %392 : vector<8x2xf32>
    %397 = arith.select %394, %392, %396 : vector<8x2xi1>, vector<8x2xf32>
    %cst_197 = arith.constant 1.000000e+00 : f32
    %398 = vector.broadcast %cst_197 : f32 to vector<8x2xf32>
    %399 = arith.addf %398, %397 : vector<8x2xf32>
    %400 = arith.mulf %359, %399 : vector<8x2xf32>
    %cst_198 = arith.constant 1.70150435 : f32
    %401 = vector.broadcast %cst_198 : f32 to vector<8x2xf32>
    %402 = arith.mulf %400, %401 : vector<8x2xf32>
    %c0_199 = arith.constant 0 : index
    %c0_200 = arith.constant 0 : index
    %403 = vector.load %arg13[%c0_199, %c0_200] : memref<16x8xf32, #tpu.memory_space<vmem>>, vector<16x8xf32>
    %cst_201 = arith.constant dense<0.000000e+00> : vector<16x2xf32>
    %404 = tpu.matmul %403, %402, %cst_201 {dimension_numbers = #tpu.dot_dimension_numbers<[1], [0], [0], [1], [0, 0, 1, 1], [], []>} : vector<16x8xf32>, vector<8x2xf32>, vector<16x2xf32> -> vector<16x2xf32>
    %c0_202 = arith.constant 0 : index
    %c0_203 = arith.constant 0 : index
    %405 = vector.load %arg14[%c0_202, %c0_203] : memref<16x1xf32, #tpu.memory_space<vmem>>, vector<16x1xf32>
    %406 = vector.broadcast %405 : vector<16x1xf32> to vector<16x2xf32>
    %407 = arith.addf %404, %406 : vector<16x2xf32>
    %408 = arith.negf %407 : vector<16x2xf32>
    %409 = math.exp %408 : vector<16x2xf32>
    %cst_204 = arith.constant 1.000000e+00 : f32
    %410 = vector.broadcast %cst_204 : f32 to vector<16x2xf32>
    %411 = arith.addf %410, %409 : vector<16x2xf32>
    %412 = arith.divf %410, %411 : vector<16x2xf32>
    %c0_205 = arith.constant 0 : index
    %c0_206 = arith.constant 0 : index
    %413 = vector.load %arg15[%c0_205, %c0_206] : memref<1x1xf32, #tpu.memory_space<vmem>>, vector<1x1xf32>
    %414 = vector.extract %413[0, 0] : f32 from vector<1x1xf32>
    %cst_207 = arith.constant 2.000000e+00 : f32
    %415 = arith.mulf %cst_207, %414 : f32
    %416 = vector.extract_strided_slice %412 {offsets = [0, 0], sizes = [16, 1], strides = [1, 1]} : vector<16x2xf32> to vector<16x1xf32>
    %417 = vector.broadcast %415 : f32 to vector<16x1xf32>
    %418 = arith.mulf %417, %416 : vector<16x1xf32>
    %419 = vector.extract_strided_slice %343 {offsets = [0, 0], sizes = [16, 256], strides = [1, 1]} : vector<16x512xf32> to vector<16x256xf32>
    %420 = vector.broadcast %418 : vector<16x1xf32> to vector<16x256xf32>
    %421 = arith.mulf %420, %419 : vector<16x256xf32>
    %422 = vector.extract_strided_slice %51 {offsets = [0, 0], sizes = [16, 256], strides = [1, 1]} : vector<16x512xf32> to vector<16x256xf32>
    %423 = arith.addf %421, %422 : vector<16x256xf32>
    %c0_208 = arith.constant 0 : index
    %c0_209 = arith.constant 0 : index
    %424 = vector.load %arg16[%c0_208, %c0_209] : memref<16x512xf32, #tpu.memory_space<vmem>>, vector<16x256xf32>
    tpu.vector_store %arg16[%c0_208, %c0_209], %423 {strides = array<i32>} : memref<16x512xf32, #tpu.memory_space<vmem>>, vector<16x256xf32>,
    %425 = vector.extract_strided_slice %412 {offsets = [0, 1], sizes = [16, 1], strides = [1, 1]} : vector<16x2xf32> to vector<16x1xf32>
    %426 = vector.broadcast %415 : f32 to vector<16x1xf32>
    %427 = arith.mulf %426, %425 : vector<16x1xf32>
    %428 = vector.extract_strided_slice %343 {offsets = [0, 256], sizes = [16, 256], strides = [1, 1]} : vector<16x512xf32> to vector<16x256xf32>
    %429 = vector.broadcast %427 : vector<16x1xf32> to vector<16x256xf32>
    %430 = arith.mulf %429, %428 : vector<16x256xf32>
    %431 = vector.extract_strided_slice %51 {offsets = [0, 256], sizes = [16, 256], strides = [1, 1]} : vector<16x512xf32> to vector<16x256xf32>
    %432 = arith.addf %430, %431 : vector<16x256xf32>
    %c0_210 = arith.constant 0 : index
    %c256 = arith.constant 256 : index
    %433 = vector.load %arg16[%c0_210, %c256] : memref<16x512xf32, #tpu.memory_space<vmem>>, vector<16x256xf32>
    tpu.vector_store %arg16[%c0_210, %c256], %432 {strides = array<i32>} : memref<16x512xf32, #tpu.memory_space<vmem>>, vector<16x256xf32>,
    return
  }
  func.func @transform_0(%arg0: i32) -> (i32, i32) {
    %c0_i32 = arith.constant 0 : i32
    %c0_i32_0 = arith.constant 0 : i32
    return %c0_i32, %arg0 : i32, i32
  }
  func.func @transform_1(%arg0: i32) -> (i32, i32) {
    %c0_i32 = arith.constant 0 : i32
    %c0_i32_0 = arith.constant 0 : i32
    %c0_i32_1 = arith.constant 0 : i32
    return %c0_i32, %c0_i32_0 : i32, i32
  }
  func.func @transform_2(%arg0: i32) -> (i32, i32) {
    %c0_i32 = arith.constant 0 : i32
    %c0_i32_0 = arith.constant 0 : i32
    %c0_i32_1 = arith.constant 0 : i32
    return %c0_i32, %c0_i32_0 : i32, i32
  }
  func.func @transform_3(%arg0: i32) -> (i32, i32) {
    %c0_i32 = arith.constant 0 : i32
    %c0_i32_0 = arith.constant 0 : i32
    %c0_i32_1 = arith.constant 0 : i32
    return %c0_i32, %c0_i32_0 : i32, i32
  }
  func.func @transform_4(%arg0: i32) -> (i32, i32) {
    %c0_i32 = arith.constant 0 : i32
    %c0_i32_0 = arith.constant 0 : i32
    %c0_i32_1 = arith.constant 0 : i32
    return %c0_i32, %c0_i32_0 : i32, i32
  }
  func.func @transform_5(%arg0: i32) -> (i32, i32) {
    %c0_i32 = arith.constant 0 : i32
    %c0_i32_0 = arith.constant 0 : i32
    %c0_i32_1 = arith.constant 0 : i32
    return %c0_i32, %c0_i32_0 : i32, i32
  }
  func.func @transform_6(%arg0: i32) -> (i32, i32) {
    %c0_i32 = arith.constant 0 : i32
    %c0_i32_0 = arith.constant 0 : i32
    %c0_i32_1 = arith.constant 0 : i32
    return %c0_i32, %c0_i32_0 : i32, i32
  }
  func.func @transform_7(%arg0: i32) -> (i32, i32) {
    %c0_i32 = arith.constant 0 : i32
    %c0_i32_0 = arith.constant 0 : i32
    %c0_i32_1 = arith.constant 0 : i32
    return %c0_i32, %c0_i32_0 : i32, i32
  }
  func.func @transform_8(%arg0: i32) -> (i32, i32) {
    %c0_i32 = arith.constant 0 : i32
    %c0_i32_0 = arith.constant 0 : i32
    %c0_i32_1 = arith.constant 0 : i32
    return %c0_i32, %c0_i32_0 : i32, i32
  }
  func.func @transform_9(%arg0: i32) -> (i32, i32) {
    %c0_i32 = arith.constant 0 : i32
    %c0_i32_0 = arith.constant 0 : i32
    %c0_i32_1 = arith.constant 0 : i32
    return %c0_i32, %c0_i32_0 : i32, i32
  }
  func.func @transform_10(%arg0: i32) -> (i32, i32) {
    %c0_i32 = arith.constant 0 : i32
    %c0_i32_0 = arith.constant 0 : i32
    %c0_i32_1 = arith.constant 0 : i32
    return %c0_i32, %c0_i32_0 : i32, i32
  }
  func.func @transform_11(%arg0: i32) -> (i32, i32) {
    %c0_i32 = arith.constant 0 : i32
    %c0_i32_0 = arith.constant 0 : i32
    %c0_i32_1 = arith.constant 0 : i32
    return %c0_i32, %c0_i32_0 : i32, i32
  }
  func.func @transform_12(%arg0: i32) -> (i32, i32) {
    %c0_i32 = arith.constant 0 : i32
    %c0_i32_0 = arith.constant 0 : i32
    %c0_i32_1 = arith.constant 0 : i32
    return %c0_i32, %c0_i32_0 : i32, i32
  }
  func.func @transform_13(%arg0: i32) -> (i32, i32) {
    %c0_i32 = arith.constant 0 : i32
    %c0_i32_0 = arith.constant 0 : i32
    %c0_i32_1 = arith.constant 0 : i32
    return %c0_i32, %c0_i32_0 : i32, i32
  }
  func.func @transform_14(%arg0: i32) -> (i32, i32) {
    %c0_i32 = arith.constant 0 : i32
    %c0_i32_0 = arith.constant 0 : i32
    %c0_i32_1 = arith.constant 0 : i32
    return %c0_i32, %c0_i32_0 : i32, i32
  }
  func.func @transform_15(%arg0: i32) -> (i32, i32) {
    %c0_i32 = arith.constant 0 : i32
    %c0_i32_0 = arith.constant 0 : i32
    return %c0_i32, %arg0 : i32, i32
  }
}

</mosaic_0001>

<bundles_post_ra>
// kernel: nf_block_forward.1
= control target key start
LH: loop header
LB: loop body
LE: loop exit
PB: predicated region body
PF: predicated region fallthrough
CT: control target
= control target key end

     0   :  { %v4358_v3 = vmov 0.0   ;;  %v4360_v6 = vmov 0   ;;  %v506_v16 = vlaneseq  ;;  %v4367_v21 = vmov 3   ;;  %s2811_s16 = smov 112   ;;  %s2815_s21 = smov 127   ;;  %s4340_s0 = inlined_call_operand.vmem [shape: f32[8,512], index: 0, kind: input, shape index: {}]   ;;  %s4341_s3 = inlined_call_operand.vmem [shape: f32[24,1], index: 3, kind: input, shape index: {}]   ;;  %s4342_s1 = inlined_call_operand.vmem [shape: f32[9,512], index: 1, kind: input, shape index: {}]   ;;  %s4343_s4 = inlined_call_operand.vmem [shape: f32[8,9], index: 4, kind: input, shape index: {}]   ;;  %s4344_s2 = inlined_call_operand.vmem [shape: f32[24,8], index: 2, kind: input, shape index: {}]   ;;  %s4345_s5 = inlined_call_operand.vmem [shape: f32[8,1], index: 5, kind: input, shape index: {}]   ;;  %s4346_s6 = inlined_call_operand.vmem [shape: f32[8,9], index: 6, kind: input, shape index: {}]   ;;  %s4347_s7 = inlined_call_operand.vmem [shape: f32[8,1], index: 7, kind: input, shape index: {}]   ;;  %s4348_s9 = inlined_call_operand.vmem [shape: f32[16,1], index: 9, kind: input, shape index: {}]   ;;  %s4349_s8 = inlined_call_operand.vmem [shape: f32[16,8], index: 8, kind: input, shape index: {}]   ;;  %s4350_s13 = inlined_call_operand.vmem [shape: f32[16,1], index: 13, kind: input, shape index: {}]   ;;  %s4351_s11 = inlined_call_operand.vmem [shape: f32[8,1], index: 11, kind: input, shape index: {}]   ;;  %s4352_s10 = inlined_call_operand.vmem [shape: f32[8,16], index: 10, kind: input, shape index: {}]   ;;  %s4353_s12 = inlined_call_operand.vmem [shape: f32[16,8], index: 12, kind: input, shape index: {}]   ;;  %s4354_s14 = inlined_call_operand.<no memory space> [shape: f32[1,1], index: 14, kind: input, shape index: {}]   ;;  %s4355_s15 = inlined_call_operand.vmem [shape: f32[16,512], index: 15, kind: output, shape index: {}]  }
   0x1   :  { %v2915_v0 = vld [vmem:[%s4340_s0 + $0x8] sm:$0xff]  ;;  %v2920_v1 = vld [vmem:[%s4340_s0 + $0x18] sm:$0xff]  ;;  %v2925_v2 = vld [vmem:[%s4340_s0] sm:$0xff]  ;;  %271 = vmatprep.mubr.f32.mxu0 %v4358_v3  ;;  %354 = vmatprep.mubr.f32.mxu1 %v4358_v3  ;;  %v2810_v30 = vmov 2   ;;  %v4366_v43 = vmov 6   ;;  %v4365_v54 = vmov 4  }
   0x2   :  { %v2930_v4 = vmul.f32 0.70710677, %v2915_v0  ;;  %v2933_v5 = vmul.f32 0.70710677, %v2920_v1  ;;  %2701 = vset.pattern.permute.xlu0 %v4360_v6  ;;  %v2937_v7 = vmul.f32 0.70710677, %v2925_v2  ;;  %2702 = vset.pattern.permute.xlu1 %v2810_v30 }
   0x3   :  { %v2942_v8 = vld [vmem:[%s4340_s0 + $0x10] sm:$0xff]  ;;  %v507_v24 = vshrl.u32 %v506_v16, 7  ;;  %v2970_v29 = vld [vmem:[%s4343_s4] sm:$0xff]  ;;  %s2813_s4 = smov 113   ;;  %s2817_s24 = smov 1   ;;  %vm4391_vm4 = vcmask 64512  }
   0x4   :  { %v181_v9 = vld [vmem:[%s4341_s3 + $0x10] sm:$0xff]  ;;  %v65_v10 = vand.u32 2147483647, %v2930_v4  ;;  %v67_v11 = vand.u32 2147483647, %v2933_v5  ;;  %682 = vperm.xlu1 %2702, %v2970_v29   ;;  %vm153_vm0 = vcmp.ge.f32.partialorder %v2930_v4, 0.0 }
   0x5   :  { %194 = vperm.xlu0 %2701, %v181_v9   ;;  %v2950_v12 = vand.u32 2147483647, %v2937_v7  ;;  %v2953_v13 = vmul.f32 0.70710677, %v2942_v8  ;;  %v2964_v27 = vsub.s32 2, %v507_v24  ;;  %v2974_v31 = vsub.s32 0, %v507_v24 }
   0x6   :  { %v69_v14 = vmul.f32 0.3275911, %v65_v10  ;;  %v71_v15 = vmul.f32 0.3275911, %v67_v11  ;;  %v2982_v33 = vsub.s32 1, %v507_v24  ;;  %v129_v37 = vsub.f32 0.0, %v65_v10 }
   0x7   :  { %v68_v17 = vmul.f32 0.3275911, %v2950_v12  ;;  %v2957_v18 = vand.u32 2147483647, %v2953_v13  ;;  %4392 = vst [vmem:[#allocation4_spill] sm:$0xff] %v2964_v27  ;;  %4393 = vst [vmem:[#allocation5_spill] sm:$0xff] %v2974_v31 }
   0x8   :  { %v73_v19 = vadd.f32 1.0, %v69_v14  ;;  %v75_v20 = vadd.f32 1.0, %v71_v15  ;;  %v2630_v25 = vld [vmem:[%s4342_s1 + $0x1] ss:$8 sm:$0xf]  ;;  %4394 = vst [vmem:[#allocation6_spill] sm:$0xff] %v2982_v33  ;;  %2706 = vset.pattern.permute.xlu1 %v4366_v43  ;;  %v133_v48 = vmul.f32 %v129_v37, %v65_v10 }
   0x9   :  { %2703 = vset.pattern.permute.xlu0 %v4367_v21  ;;  %v70_v22 = vmul.f32 0.3275911, %v2957_v18  ;;  %v72_v23 = vadd.f32 1.0, %v68_v17  ;;  %v574_v28 = vrot.slane %v2630_v25, %v2964_v27  ;;  %v2980_v32 = vld [vmem:[%s4342_s1 + $0x2] ss:$8 sm:$0xf]  ;;  %v566_v34 = vrot.slane %v2630_v25, %v2974_v31 }
   0xa   :  { %2723 = vrcp.f32 %v73_v19  ;;  %v570_v35 = vrot.slane %v2630_v25, %v2982_v33  ;;  %v654_v38 = vrot.slane %v2980_v32, %v2964_v27  ;;  %v131_v41 = vsub.f32 0.0, %v67_v11  ;;  %v3003_v55 = vld [vmem:[%s4342_s1 + $0x3] ss:$8 sm:$0xf]  ;;  %s2819_s27 = smov 15   ;;  %s2820_s19 = smov 16  }
   0xb   :  { %2725 = vrcp.f32 %v75_v20  ;;  %v74_v26 = vadd.f32 1.0, %v70_v22  ;;  %583 = vrot.lane.b32.xlu0 %v574_v28, %s2811_s16  ;;  %579 = vrot.lane.b32.xlu1 %v566_v34, %s2811_s16  ;;  %v2990_v42 = vsub.s32 3, %v507_v24  ;;  %v128_v50 = vsub.f32 0.0, %v2950_v12  ;;  %s2822_s23 = smov 17   ;;  %s2824_s28 = smov 111  }
   0xc   :  { %2727 = vrcp.f32 %v72_v23  ;;  %v135_v52 = vmul.f32 %v131_v41, %v67_v11  ;;  %v130_v58 = vsub.f32 0.0, %v2957_v18  ;;  %v646_v62 = vrot.slane %v2980_v32, %v2974_v31  ;;  %s2826_s17 = smov 110   ;;  %s2827_s18 = smov 96  }
   0xd   :  { %2729 = vrcp.f32 %v74_v26  ;;  %4395 = vst [vmem:[#allocation7_spill] sm:$0xff] %v2990_v42  ;;  %v578_v46 = vrot.slane %v2630_v25, %v2990_v42  ;;  %v138_v63 = vmul.f32 1.442695, %v133_v48  ;;  %v132_v10 = vmul.f32 %v128_v50, %v2950_v12  ;;  %s2828_s20 = smov 95   ;;  %s2829_s22 = smov 94  }
   0xe   :  { %v734_v11 = vrot.slane %v3003_v55, %v2964_v27  ;;  %v142_v15 = vmul.f32 1.442695, %v135_v52  ;;  %v650_v12 = vrot.slane %v2980_v32, %v2982_v33  ;;  %vm155_vm1 = vcmp.ge.f32.partialorder %v2933_v5, 0.0 }
   0xf   :  { %761 = vperm.xlu0 %2703, %v2970_v29   ;;  %581 = vrot.lane.b32.xlu1 %v570_v35, %s2811_s16  ;;  %2731 = vpow2.f32 %v138_v63  ;;  %vm152_vm2 = vcmp.ge.f32.partialorder %v2937_v7, 0.0  ;;  %vm154_vm3 = vcmp.ge.f32.partialorder %v2953_v13, 0.0  ;;  %vm587_vm9 = vcmask 916480  }
  0x10   :  { %2733 = vpow2.f32 %v142_v15  ;;  %vm667_vm10 = vcmask 924672   ;;  %vm625_vm11 = vcmask 1039360   ;;  %vm943_vm12 = vcmask 121856  }
  0x11   :  { %vm863_vm13 = vcmask 7168   ;;  %vm1023_vm14 = vcmask 130048   ;;  %vm1103_vm15 = vcmask 138240  }
  0x13   :  { %663 = vrot.lane.b32.xlu0 %v654_v38, %s2813_s4  ;;  %585 = vrot.lane.b32.xlu1 %v578_v46, %s2811_s16 }
  0x14   :  { %v2724_v36 = vpop.eup %2723  ;;  %2704 = vset.pattern.permute.xlu0 %v4365_v54 }
  0x15   :  { %v2726_v39 = vpop.eup %2725  ;;  %v81_v40 = vmul.f32 %v2724_v36, %v73_v19 }
  0x16   :  { %v83_v44 = vmul.f32 %v2726_v39, %v75_v20  ;;  %v2728_v47 = vpop.eup %2727  ;;  %v134_v20 = vmul.f32 %v130_v58, %v2957_v18  ;;  %v3032_v18 = vld [vmem:[%s4342_s1 + $0x5] ss:$8 sm:$0xf] }
  0x17   :  { %v85_v45 = vsub.f32 2.0, %v81_v40  ;;  %v80_v53 = vmul.f32 %v2728_v47, %v72_v23  ;;  %v2730_v56 = vpop.eup %2729  ;;  %799 = vperm.xlu0 %2704, %v2970_v29   ;;  %659 = vrot.lane.b32.xlu1 %v646_v62, %s2813_s4  ;;  %v846_v46 = vrot.slane %v3032_v18, %v2982_v33  ;;  %v842_v7 = vrot.slane %v3032_v18, %v2974_v31 }
  0x18   :  { %v87_v49 = vsub.f32 2.0, %v83_v44  ;;  %v82_v61 = vmul.f32 %v2730_v56, %v74_v26  ;;  %v136_v26 = vmul.f32 1.442695, %v132_v10  ;;  %v140_v38 = vmul.f32 1.442695, %v134_v20 }
  0x19   :  { %v2997_v51 = vmul.f32 %v2724_v36, %v85_v45  ;;  %v84_v60 = vsub.f32 2.0, %v80_v53  ;;  %v4364_v36 = vmov 5   ;;  %v658_v44 = vrot.slane %v2980_v32, %v2990_v42  ;;  %v2732_v10 = vpop.eup %2731 }
  0x1a   :  { %v3005_v57 = vmul.f32 %v2726_v39, %v87_v49  ;;  %v86_v17 = vsub.f32 2.0, %v82_v61  ;;  %2735 = vpow2.f32 %v136_v26  ;;  %v726_v32 = vrot.slane %v3003_v55, %v2974_v31 }
  0x1b   :  { %v93_v59 = vmul.f32 1.0614054, %v2997_v51  ;;  %v3017_v16 = vmul.f32 %v2728_v47, %v84_v60  ;;  %743 = vrot.lane.b32.xlu0 %v734_v11, %s2815_s21  ;;  %661 = vrot.lane.b32.xlu1 %v650_v12, %s2813_s4  ;;  %2737 = vpow2.f32 %v140_v38  ;;  %v3058_v60 = vld [vmem:[%s4342_s1 + $0x6] ss:$8 sm:$0xf]  ;;  %v730_v20 = vrot.slane %v3003_v55, %v2982_v33 }
  0x1c   :  { %v95_v9 = vmul.f32 1.0614054, %v3005_v57  ;;  %v3022_v24 = vmul.f32 %v2730_v56, %v86_v17  ;;  %2705 = vset.pattern.permute.xlu0 %v4364_v36 }
  0x1d   :  { %v97_v14 = vadd.f32 -1.4531521, %v93_v59  ;;  %v92_v23 = vmul.f32 1.0614054, %v3017_v16  ;;  %v854_v59 = vrot.slane %v3032_v18, %v2990_v42 }
  0x1e   :  { %v99_v19 = vadd.f32 -1.4531521, %v95_v9  ;;  %v94_v35 = vmul.f32 1.0614054, %v3022_v24  ;;  %v4363_v9 = vmov 8  }
  0x1f   :  { %v101_v22 = vmul.f32 %v97_v14, %v2997_v51  ;;  %v96_v34 = vadd.f32 -1.4531521, %v92_v23  ;;  %878 = vperm.xlu0 %2705, %v2970_v29   ;;  %665 = vrot.lane.b32.xlu1 %v658_v44, %s2813_s4  ;;  %v2734_v14 = vpop.eup %2733  ;;  %v922_v23 = vrot.slane %v3058_v60, %v2974_v31 }
  0x20   :  { %v103_v25 = vmul.f32 %v99_v19, %v3005_v57  ;;  %v98_v41 = vadd.f32 -1.4531521, %v94_v35 }
  0x21   :  { %v105_v28 = vadd.f32 1.4214138, %v101_v22  ;;  %v100_v40 = vmul.f32 %v96_v34, %v3017_v16 }
  0x22   :  { %v107_v37 = vadd.f32 1.4214138, %v103_v25  ;;  %v102_v49 = vmul.f32 %v98_v41, %v3022_v24 }
  0x23   :  { %v109_v39 = vmul.f32 %v105_v28, %v2997_v51  ;;  %v104_v48 = vadd.f32 1.4214138, %v100_v40  ;;  %857 = vrot.lane.b32.xlu0 %v846_v46, %s2817_s24  ;;  %739 = vrot.lane.b32.xlu1 %v726_v32, %s2815_s21  ;;  %v930_v40 = vrot.slane %v3058_v60, %v2964_v27 }
  0x24   :  { %v111_v45 = vmul.f32 %v107_v37, %v3005_v57  ;;  %v106_v56 = vadd.f32 1.4214138, %v102_v49  ;;  %2708 = vset.pattern.permute.xlu0 %v4363_v9 }
  0x25   :  { %v113_v47 = vadd.f32 -0.28449672, %v109_v39  ;;  %v108_v53 = vmul.f32 %v104_v48, %v3017_v16 }
  0x26   :  { %v115_v50 = vadd.f32 -0.28449672, %v111_v45  ;;  %v110_v63 = vmul.f32 %v106_v56, %v3022_v24  ;;  %v57_v45 = vmul.f32 0.5, %v2915_v0  ;;  %v3090_v0 = vld [vmem:[%s4342_s1 + $0x7] ss:$8 sm:$0xf] }
  0x27   :  { %v117_v52 = vmul.f32 %v113_v47, %v2997_v51  ;;  %v112_v62 = vadd.f32 -0.28449672, %v108_v53  ;;  %861 = vrot.lane.b32.xlu0 %v854_v59, %s2817_s24  ;;  %741 = vrot.lane.b32.xlu1 %v730_v20, %s2815_s21  ;;  %v59_v47 = vmul.f32 0.5, %v2920_v1  ;;  %v56_v1 = vmul.f32 0.5, %v2925_v2 }
  0x28   :  { %v119_v58 = vmul.f32 %v115_v50, %v3005_v57  ;;  %v114_v19 = vadd.f32 -0.28449672, %v110_v63  ;;  %v1010_v63 = vrot.slane %v3090_v0, %v2964_v27  ;;  %v4362_v20 = vmov 7  }
  0x29   :  { %v121_v61 = vadd.f32 0.2548296, %v117_v52  ;;  %v116_v17 = vmul.f32 %v112_v62, %v3017_v16  ;;  %v58_v62 = vmul.f32 0.5, %v2942_v8  ;;  %v850_v8 = vrot.slane %v3032_v18, %v2964_v27  ;;  %v177_v18 = vld [vmem:[%s4344_s2 + $0x8] sm:$0xff] }
  0x2a   :  { %v123_v11 = vadd.f32 0.2548296, %v119_v58  ;;  %v118_v26 = vmul.f32 %v114_v19, %v3022_v24  ;;  %v176_v19 = vld [vmem:[%s4344_s2] sm:$0xff] }
  0x2b   :  { %v125_v15 = vmul.f32 %v121_v61, %v2997_v51  ;;  %v120_v25 = vadd.f32 0.2548296, %v116_v17  ;;  %v2736_v51 = vpop.eup %2735  ;;  %935 = vrot.lane.b32.xlu0 %v922_v23, %s2819_s27 }
  0x2c   :  { %v127_v22 = vmul.f32 %v123_v11, %v3005_v57  ;;  %v122_v37 = vadd.f32 0.2548296, %v118_v26  ;;  %v738_v57 = vrot.slane %v3003_v55, %v2990_v42  ;;  %v2738_v38 = vpop.eup %2737  ;;  %v178_v26 = vld [vmem:[%s4344_s2 + $0x10] sm:$0xff] }
  0x2d   :  { %v145_v12 = vmul.f32 %v2732_v10, %v125_v15  ;;  %v124_v35 = vmul.f32 %v120_v25, %v3017_v16  ;;  %v926_v25 = vrot.slane %v3058_v60, %v2982_v33 }
  0x2e   :  { %v147_v28 = vmul.f32 %v2734_v14, %v127_v22  ;;  %v126_v44 = vmul.f32 %v122_v37, %v3022_v24  ;;  %745 = vrot.lane.b32.xlu1 %v738_v57, %s2815_s21  ;;  %v2636_v14 = vld [vmem:[%s4342_s1 + $0x20] ss:$8 sm:$0xf]  ;;  %v1006_v37 = vrot.slane %v3090_v0, %v2982_v33  ;;  %v1014_v57 = vrot.slane %v3090_v0, %v2990_v42 }
  0x2f   :  { %v149_v34 = vsub.f32 1.0, %v145_v12  ;;  %v144_v16 = vmul.f32 %v2736_v51, %v124_v35  ;;  %939 = vrot.lane.b32.xlu0 %v930_v40, %s2819_s27  ;;  %v1082_v22 = vrot.slane %v2636_v14, %v2974_v31  ;;  %v1090_v12 = vrot.slane %v2636_v14, %v2964_v27 }
  0x30   :  { %v151_v39 = vsub.f32 1.0, %v147_v28  ;;  %v146_v48 = vmul.f32 %v2738_v38, %v126_v44  ;;  %v934_v51 = vrot.slane %v3058_v60, %v2990_v42  ;;  %v1002_v28 = vrot.slane %v3090_v0, %v2974_v31  ;;  %v504_v60 = vld [vmem:[%s4342_s1] ss:$8 sm:$0xf] }
  0x31   :  { %v157_v41 = vsub.f32 0.0, %v149_v34  ;;  %v148_v4 = vsub.f32 1.0, %v144_v16  ;;  %v517_v35 = vrot.slane %v504_v60, %v2964_v27  ;;  %v1086_v38 = vrot.slane %v2636_v14, %v2982_v33  ;;  %v1156_v16 = vld [vmem:[%s4345_s5] sm:$0xff]  ;;  %s2825_s5 = smov 126  }
  0x32   :  { %v159_v46 = vsub.f32 0.0, %v151_v39  ;;  %v150_v53 = vsub.f32 1.0, %v146_v48  ;;  %958 = vperm.xlu1 %2706, %v2970_v29   ;;  %v513_v40 = vrot.slane %v504_v60, %v2982_v33 }
  0x33   :  { %v161_v55 = vsel %vm153_vm0, %v149_v34, %v157_v41  ;;  %v156_v52 = vsub.f32 0.0, %v148_v4  ;;  %1118 = vperm.xlu0 %2708, %v2970_v29   ;;  %v4356_v34 = vmov 1   ;;  %v521_v41 = vrot.slane %v504_v60, %v2990_v42 }
  0x34   :  { %v165_v49 = vadd.f32 1.0, %v161_v55  ;;  %v163_v50 = vsel %vm155_vm1, %v151_v39, %v159_v46  ;;  %v158_v58 = vsub.f32 0.0, %v150_v53  ;;  %v509_v39 = vrot.slane %v504_v60, %v2974_v31 }
  0x35   :  { %v167_v5 = vadd.f32 1.0, %v163_v50  ;;  %v160_v32 = vsel %vm152_vm2, %v148_v4, %v156_v52  ;;  %vm705_vm0 = vcmask 1031168   ;;  %vm530_vm1 = vcmask 908288  }
  0x36   :  { %v169_v24 = vmul.f32 %v165_v49, %v57_v45  ;;  %v164_v61 = vadd.f32 1.0, %v160_v32  ;;  %v162_v10 = vsel %vm154_vm3, %v150_v53, %v158_v58  ;;  %855 = vrot.lane.b32.xlu1 %v842_v7, %s2817_s24  ;;  %vm901_vm2 = vcmask 900096  }
  0x37   :  { %v171_v56 = vmul.f32 %v167_v5, %v59_v47  ;;  %v166_v11 = vadd.f32 1.0, %v162_v10  ;;  %1019 = vrot.lane.b32.xlu0 %v1010_v63, %s2820_s19  ;;  %2707 = vset.pattern.permute.xlu1 %v4362_v20  ;;  %vm981_vm3 = vcmask 785408  }
  0x38   :  { %v173_v59 = vmul.f32 1.7015043, %v169_v24  ;;  %v168_v13 = vmul.f32 %v164_v61, %v56_v1  ;;  %2709 = vset.pattern.permute.xlu0 %v4360_v6 }
  0x39   :  { %v175_v2 = vmul.f32 1.7015043, %v171_v56  ;;  %v170_v17 = vmul.f32 %v166_v11, %v58_v62 }
  0x3a   :  { %207 = vmatprep.subr.mxu0 %v173_v59  ;;  %v172_v15 = vmul.f32 1.7015043, %v168_v13  ;;  %859 = vrot.lane.b32.xlu1 %v850_v8, %s2817_s24 }
  0x3b   :  { %290 = vmatprep.subr.mxu1 %v175_v2  ;;  %v174_v23 = vmul.f32 1.7015043, %v170_v17  ;;  %1095 = vrot.lane.b32.xlu0 %v1082_v22, %s2822_s23 }
  0x3c   :  { %208 = vmatpush1.msra.mxu0 %v172_v15 }
  0x3d   :  { %2624 = vmatmul.mubr.msk.f32.vlgmr.msra.gmra.mrb[0].mxu0 %vm4391_vm4, %v176_v19  ;;  %291 = vmatpush1.msra.mxu1 %v174_v23 }
  0x3e   :  { %277 = vmatprep.mubr.f32.mxu0 %v4358_v3  ;;  %2627 = vmatmul.mubr.msk.f32.vlgmr.msra.gmra.mrb[0].mxu1 %vm4391_vm4, %v176_v19 }
  0x3f   :  { %360 = vmatprep.mubr.f32.mxu1 %v4358_v3  ;;  %1038 = vperm.xlu1 %2707, %v2970_v29  }
  0x40   :  { %1099 = vrot.lane.b32.xlu0 %v1090_v12, %s2822_s23 }
  0x41   :  { %2625 = vmatmul.mubr.msk.f32.gmra.mrb[2].mxu0 %vm4391_vm4, %v177_v18 }
  0x42   :  { %283 = vmatprep.mubr.f32.mxu0 %v4358_v3  ;;  %2628 = vmatmul.mubr.msk.f32.gmra.mrb[2].mxu1 %vm4391_vm4, %v177_v18 }
  0x43   :  { %366 = vmatprep.mubr.f32.mxu1 %v4358_v3  ;;  %937 = vrot.lane.b32.xlu1 %v926_v25, %s2819_s27 }
  0x44   :  { %2711 = vset.pattern.permute.xlu1 %v4360_v6  ;;  %547 = vperm.xlu0 %2709, %v2970_v29  }
  0x45   :  { %2626 = vmatmul.mubr.msk.f32.gmra.mrb[4].mxu0 %vm4391_vm4, %v178_v26 }
  0x46   :  { %2249 = vmatprep.mubr.f32.mxu0 %v4358_v3  ;;  %2629 = vmatmul.mubr.msk.f32.gmra.mrb[4].mxu1 %vm4391_vm4, %v178_v26 }
  0x47   :  { %2326 = vmatprep.mubr.f32.mxu1 %v4358_v3  ;;  %941 = vrot.lane.b32.xlu1 %v934_v51, %s2819_s27 }
  0x48   :  { %2710 = vset.pattern.permute.xlu0 %v4356_v34 }
  0x49   :  { %602 = vperm.xlu0 %2710, %v2970_v29   ;;  %v1094_v29 = vrot.slane %v2636_v14, %v2990_v42 }
  0x4b   :  { %1015 = vrot.lane.b32.xlu1 %v1002_v28, %s2820_s19 }
  0x4d   :  { %526 = vrot.lane.b32.xlu0 %v517_v35, %s2824_s28 }
  0x4f   :  { %1017 = vrot.lane.b32.xlu1 %v1006_v37, %s2820_s19 }
  0x53   :  { %1021 = vrot.lane.b32.xlu1 %v1014_v57, %s2820_s19 }
  0x57   :  { %1097 = vrot.lane.b32.xlu1 %v1086_v38, %s2822_s23 }
  0x5b   :  { %1101 = vrot.lane.b32.xlu1 %v1094_v29, %s2822_s23 }
  0x5f   :  { %522 = vrot.lane.b32.xlu1 %v509_v39, %s2824_s28 }
  0x63   :  { %524 = vrot.lane.b32.xlu1 %v513_v40, %s2824_s28 }
  0x67   :  { %528 = vrot.lane.b32.xlu1 %v521_v41, %s2824_s28 }
  0x6b   :  { %1159 = vperm.xlu1 %2711, %v1156_v16  }
  0x6f   :  { %2712 = vset.pattern.permute.xlu1 %v2810_v30 }
  0x83   :  { %v3179_v46 = vpop.permute.xlu1 %682 }
  0x84   :  { %v3175_v44 = vpop.permute.xlu0 %194 }
  0x87   :  { %v3181_v55 = vpop.permute.xlu1 %579 }
  0x88   :  { %v3177_v45 = vpop.permute.xlu0 %583  ;;  %v596_v18 = vmul.f32 0.0, %v3181_v55 }
  0x8b   :  { %v3185_v4 = vpop.permute.xlu1 %581 }
  0x8e   :  { %v3183_v47 = vpop.permute.xlu0 %761 }
  0x8f   :  { %v3189_v49 = vpop.permute.xlu1 %585 }
  0x92   :  { %v3187_v48 = vpop.permute.xlu0 %663 }
  0x93   :  { %v3193_v5 = vpop.permute.xlu1 %659 }
  0x94   :  { %v676_v52 = vmul.f32 0.0, %v3193_v5 }
  0x96   :  { %v3191_v50 = vpop.permute.xlu0 %799  ;;  %v685_v53 = vmul.f32 %v3179_v46, %v676_v52 }
  0x97   :  { %v3199_v0 = vpop.permute.xlu1 %661 }
  0x98   :  { %695 = vrot.lane.b32.xlu1 %v685_v53, %s2825_s5 }
  0x9a   :  { %v3195_v30 = vpop.permute.xlu0 %743 }
  0x9b   :  { %v3204_v1 = vpop.permute.xlu1 %665 }
  0x9e   :  { %v3201_v24 = vpop.permute.xlu0 %878 }
  0x9f   :  { %4396 = vst [vmem:[#allocation8_spill] sm:$0xff] %v3201_v24  ;;  %v3208_v32 = vpop.permute.xlu1 %739 }
  0xa0   :  { %v755_v25 = vmul.f32 0.0, %v3208_v32 }
  0xa2   :  { %v3206_v56 = vpop.permute.xlu0 %857  ;;  %v764_v60 = vmul.f32 %v3183_v47, %v755_v25 }
  0xa3   :  { %4397 = vst [vmem:[#allocation9_spill] sm:$0xff] %v3206_v56  ;;  %v3213_v59 = vpop.permute.xlu1 %741 }
  0xa6   :  { %v3210_v58 = vpop.permute.xlu0 %861 }
  0xa7   :  { %4398 = vst [vmem:[#allocation10_spill] sm:$0xff] %v3210_v58  ;;  %v876_v7 = vmul.f32 0.0, %v3210_v58  ;;  %v3219_v63 = vpop.permute.xlu1 %745 }
  0xa9   :  { %v885_v61 = vmul.f32 %v3201_v24, %v876_v7 }
  0xaa   :  { %v3216_v62 = vpop.permute.xlu0 %935 }
  0xab   :  { %899 = vrot.lane.b32.xlu1 %v885_v61, %s2826_s17 }
  0xae   :  { %v3221_v2 = vpop.permute.xlu0 %939 }
  0xb1   :  { %v3223_v10 = vpop.permute.xlu1 %958 }
  0xb2   :  { %v3225_v13 = vpop.permute.xlu0 %1118 }
  0xb3   :  { %4399 = vst [vmem:[#allocation11_spill] sm:$0xff] %v3225_v13 }
  0xb5   :  { %v3227_v11 = vpop.permute.xlu1 %855 }
  0xb6   :  { %v3229_v14 = vpop.permute.xlu0 %1019 }
  0xb7   :  { %4400 = vst [vmem:[#allocation12_spill] sm:$0xff] %v3229_v14 }
  0xb9   :  { %v3231_v8 = vpop.permute.xlu1 %859 }
  0xba   :  { %v3233_v15 = vpop.permute.xlu0 %1095 }
  0xbb   :  { %4401 = vst [vmem:[#allocation13_spill] sm:$0xff] %v3233_v15 }
  0xbe   :  { %v3235_v17 = vpop.permute.xlu1 %1038  ;;  %v3237_v19 = vpop.permute.xlu0 %1099 }
  0xbf   :  { %4402 = vst [vmem:[#allocation14_spill] sm:$0xff] %v3235_v17  ;;  %4403 = vst [vmem:[#allocation15_spill] sm:$0xff] %v3237_v19 }
  0xc2   :  { %v3239_v22 = vpop.permute.xlu1 %937 }
  0xc3   :  { %v3241_v23 = vpop.permute.xlu0 %547 }
  0xc4   :  { %4404 = vst [vmem:[#allocation16_spill] sm:$0xff] %v3241_v23 }
  0xc6   :  { %v3244_v12 = vpop.permute.xlu1 %941 }
  0xc7   :  { %4405 = vst [vmem:[#allocation17_spill] sm:$0xff] %v3244_v12  ;;  %v956_v35 = vmul.f32 0.0, %v3244_v12 }
  0xc8   :  { %v3247_v26 = vpop.permute.xlu0 %602 }
  0xc9   :  { %v605_v51 = vmul.f32 %v3247_v26, %v596_v18  ;;  %v965_v57 = vmul.f32 %v3223_v10, %v956_v35 }
  0xca   :  { %v3250_v28 = vpop.permute.xlu1 %1015 }
  0xcb   :  { %4406 = vst [vmem:[#allocation18_spill] sm:$0xff] %v3250_v28  ;;  %615 = vrot.lane.b32.xlu0 %v605_v51, %s2815_s21 }
  0xce   :  { %v3255_v37 = vpop.permute.xlu1 %1017 }
  0xcf   :  { %4407 = vst [vmem:[#allocation19_spill] sm:$0xff] %v3255_v37  ;;  %774 = vrot.lane.b32.xlu0 %v764_v60, %s2811_s16 }
  0xd2   :  { %v3259_v38 = vpop.permute.xlu1 %1021 }
  0xd3   :  { %4408 = vst [vmem:[#allocation20_spill] sm:$0xff] %v3259_v38  ;;  %v1036_v29 = vmul.f32 0.0, %v3259_v38  ;;  %979 = vrot.lane.b32.xlu0 %v965_v57, %s2827_s18 }
  0xd5   :  { %v1045_v39 = vmul.f32 %v3235_v17, %v1036_v29 }
  0xd7   :  { %1059 = vrot.lane.b32.xlu0 %v1045_v39, %s2828_s20 }
 0x110   :  { %v3265_v40 = vpop.f32.mrb[0].mxu0 }
 0x111   :  { %4409 = vst [vmem:[#allocation21_spill] sm:$0xff] %v3265_v40  ;;  %v3267_v41 = vpop.f32.mrb[1].mxu0  ;;  %v3269_v16 = vpop.f32.mrb[0].mxu1 }
 0x112   :  { %4410 = vst [vmem:[#allocation22_spill] sm:$0xff] %v3267_v41  ;;  %4411 = vst [vmem:[#allocation23_spill] sm:$0xff] %v3269_v16  ;;  %v3271_v52 = vpop.f32.mrb[1].mxu1 }
 0x113   :  { %4412 = vst [vmem:[#allocation24_spill] sm:$0xff] %v3271_v52 }
 0x114   :  { %v3273_v53 = vpop.f32.mrb[2].mxu0 }
 0x115   :  { %4413 = vst [vmem:[#allocation25_spill] sm:$0xff] %v3273_v53  ;;  %v3275_v7 = vpop.f32.mrb[3].mxu0  ;;  %v3277_v61 = vpop.f32.mrb[2].mxu1 }
 0x116   :  { %4414 = vst [vmem:[#allocation26_spill] sm:$0xff] %v3275_v7  ;;  %4415 = vst [vmem:[#allocation27_spill] sm:$0xff] %v3277_v61  ;;  %v3279_v18 = vpop.f32.mrb[3].mxu1 }
 0x117   :  { %4416 = vst [vmem:[#allocation28_spill] sm:$0xff] %v3279_v18 }
 0x118   :  { %v285_v25 = vpop.f32.mrb[4].mxu0 }
 0x119   :  { %v3282_v51 = vadd.f32 %v285_v25, %v3175_v44  ;;  %v287_v60 = vpop.f32.mrb[5].mxu0  ;;  %v368_v35 = vpop.f32.mrb[4].mxu1 }
 0x11a   :  { %v3285_v57 = vadd.f32 %v287_v60, %v3175_v44  ;;  %v3291_v39 = vadd.f32 %v368_v35, %v3175_v44  ;;  %v370_v34 = vpop.f32.mrb[5].mxu1 }
 0x11b   :  { %v3288_v29 = vmul.f32 0.70710677, %v3282_v51  ;;  %v3297_v6 = vadd.f32 %v370_v34, %v3175_v44 }
 0x11c   :  { %v3294_v3 = vmul.f32 0.70710677, %v3285_v57  ;;  %v3301_v20 = vmul.f32 0.70710677, %v3291_v39 }
 0x11d   :  { %v381_v25 = vand.u32 2147483647, %v3288_v29  ;;  %v3305_v9 = vmul.f32 0.70710677, %v3297_v6  ;;  %vm469_vm5 = vcmp.ge.f32.partialorder %v3288_v29, 0.0  ;;  %v375_v29 = vmul.f32 0.5, %v3291_v39 }
 0x11e   :  { %v382_v60 = vand.u32 2147483647, %v3294_v3  ;;  %v383_v35 = vand.u32 2147483647, %v3301_v20  ;;  %vm470_vm6 = vcmp.ge.f32.partialorder %v3294_v3, 0.0  ;;  %vm471_vm7 = vcmp.ge.f32.partialorder %v3301_v20, 0.0 }
 0x11f   :  { %v385_v36 = vmul.f32 0.3275911, %v381_v25  ;;  %v384_v43 = vand.u32 2147483647, %v3305_v9  ;;  %v445_v7 = vsub.f32 0.0, %v381_v25  ;;  %vm472_vm8 = vcmp.ge.f32.partialorder %v3305_v9, 0.0 }
 0x120   :  { %v386_v54 = vmul.f32 0.3275911, %v382_v60  ;;  %v387_v52 = vmul.f32 0.3275911, %v383_v35  ;;  %v446_v27 = vsub.f32 0.0, %v382_v60  ;;  %v447_v38 = vsub.f32 0.0, %v383_v35 }
 0x121   :  { %v389_v21 = vadd.f32 1.0, %v385_v36  ;;  %v388_v44 = vmul.f32 0.3275911, %v384_v43  ;;  %v449_v58 = vmul.f32 %v445_v7, %v381_v25  ;;  %v448_v37 = vsub.f32 0.0, %v384_v43 }
 0x122   :  { %v390_v34 = vadd.f32 1.0, %v386_v54  ;;  %v391_v16 = vadd.f32 1.0, %v387_v52  ;;  %v451_v14 = vmul.f32 %v447_v38, %v383_v35  ;;  %v376_v20 = vmul.f32 0.5, %v3297_v6 }
 0x123   :  { %2739 = vrcp.f32 %v389_v21  ;;  %v392_v18 = vadd.f32 1.0, %v388_v44  ;;  %v450_v44 = vmul.f32 %v446_v27, %v382_v60  ;;  %v453_v24 = vmul.f32 1.442695, %v449_v58 }
 0x124   :  { %2741 = vrcp.f32 %v390_v34  ;;  %v452_v7 = vmul.f32 %v448_v37, %v384_v43  ;;  %v588_v9 = vsel %vm587_vm9, %v3181_v55, %v3185_v4  ;;  %v590_v55 = vsel %vm587_vm9, %v3177_v45, %v3189_v49 }
 0x125   :  { %2743 = vrcp.f32 %v391_v16 }
 0x126   :  { %2745 = vrcp.f32 %v392_v18  ;;  %v459_v58 = vmul.f32 1.442695, %v452_v7 }
 0x127   :  { %2747 = vpow2.f32 %v453_v24 }
 0x12d   :  { %v2740_v61 = vpop.eup %2739 }
 0x12e   :  { %v2742_v41 = vpop.eup %2741  ;;  %v397_v40 = vmul.f32 %v2740_v61, %v389_v21 }
 0x12f   :  { %v398_v53 = vmul.f32 %v2742_v41, %v390_v34  ;;  %v2744_v23 = vpop.eup %2743 }
 0x130   :  { %v401_v42 = vsub.f32 2.0, %v397_v40  ;;  %v399_v33 = vmul.f32 %v2744_v23, %v391_v16  ;;  %v2746_v54 = vpop.eup %2745 }
 0x131   :  { %v402_v31 = vsub.f32 2.0, %v398_v53  ;;  %v400_v19 = vmul.f32 %v2746_v54, %v392_v18  ;;  %v455_v53 = vmul.f32 1.442695, %v450_v44 }
 0x132   :  { %v405_v36 = vmul.f32 %v2740_v61, %v401_v42  ;;  %v403_v12 = vsub.f32 2.0, %v399_v33 }
 0x133   :  { %v406_v52 = vmul.f32 %v2742_v41, %v402_v31  ;;  %v404_v34 = vsub.f32 2.0, %v400_v19  ;;  %v457_v31 = vmul.f32 1.442695, %v451_v14  ;;  %2749 = vpow2.f32 %v455_v53 }
 0x134   :  { %v409_v13 = vmul.f32 1.0614054, %v405_v36  ;;  %v407_v15 = vmul.f32 %v2744_v23, %v403_v12 }
 0x135   :  { %v410_v17 = vmul.f32 1.0614054, %v406_v52  ;;  %v408_v42 = vmul.f32 %v2746_v54, %v404_v34  ;;  %2751 = vpow2.f32 %v457_v31  ;;  %v2748_v34 = vpop.eup %2747 }
 0x136   :  { %v413_v21 = vadd.f32 -1.4531521, %v409_v13  ;;  %v411_v40 = vmul.f32 1.0614054, %v407_v15  ;;  %2753 = vpow2.f32 %v459_v58 }
 0x137   :  { %v414_v28 = vadd.f32 -1.4531521, %v410_v17  ;;  %v412_v41 = vmul.f32 1.0614054, %v408_v42 }
 0x138   :  { %v417_v16 = vmul.f32 %v413_v21, %v405_v36  ;;  %v415_v61 = vadd.f32 -1.4531521, %v411_v40 }
 0x139   :  { %v418_v56 = vmul.f32 %v414_v28, %v406_v52  ;;  %v416_v13 = vadd.f32 -1.4531521, %v412_v41 }
 0x13a   :  { %v421_v33 = vadd.f32 1.4214138, %v417_v16  ;;  %v419_v27 = vmul.f32 %v415_v61, %v407_v15 }
 0x13b   :  { %v422_v23 = vadd.f32 1.4214138, %v418_v56  ;;  %v420_v17 = vmul.f32 %v416_v13, %v408_v42 }
 0x13c   :  { %v425_v12 = vmul.f32 %v421_v33, %v405_v36  ;;  %v423_v38 = vadd.f32 1.4214138, %v419_v27 }
 0x13d   :  { %v426_v19 = vmul.f32 %v422_v23, %v406_v52  ;;  %v424_v28 = vadd.f32 1.4214138, %v420_v17  ;;  %v2750_v53 = vpop.eup %2749 }
 0x13e   :  { %v429_v18 = vadd.f32 -0.28449672, %v425_v12  ;;  %v427_v25 = vmul.f32 %v423_v38, %v407_v15 }
 0x13f   :  { %v430_v60 = vadd.f32 -0.28449672, %v426_v19  ;;  %v428_v24 = vmul.f32 %v424_v28, %v408_v42  ;;  %v2752_v41 = vpop.eup %2751  ;;  %v374_v28 = vmul.f32 0.5, %v3285_v57 }
 0x140   :  { %v433_v35 = vmul.f32 %v429_v18, %v405_v36  ;;  %v431_v43 = vadd.f32 -0.28449672, %v427_v25  ;;  %v2754_v58 = vpop.eup %2753  ;;  %v373_v25 = vmul.f32 0.5, %v3282_v51 }
 0x141   :  { %v434_v37 = vmul.f32 %v430_v60, %v406_v52  ;;  %v432_v21 = vadd.f32 -0.28449672, %v428_v24 }
 0x142   :  { %v437_v14 = vadd.f32 0.2548296, %v433_v35  ;;  %v435_v54 = vmul.f32 %v431_v43, %v407_v15 }
 0x143   :  { %v438_v56 = vadd.f32 0.2548296, %v434_v37  ;;  %v436_v7 = vmul.f32 %v432_v21, %v408_v42 }
 0x144   :  { %v441_v44 = vmul.f32 %v437_v14, %v405_v36  ;;  %v439_v40 = vadd.f32 0.2548296, %v435_v54 }
 0x145   :  { %v442_v16 = vmul.f32 %v438_v56, %v406_v52  ;;  %v440_v23 = vadd.f32 0.2548296, %v436_v7  ;;  %v668_v7 = vsel %vm667_vm10, %v3193_v5, %v3199_v0  ;;  %v670_v5 = vsel %vm667_vm10, %v3187_v48, %v3204_v1 }
 0x146   :  { %v461_v61 = vmul.f32 %v2748_v34, %v441_v44  ;;  %v443_v33 = vmul.f32 %v439_v40, %v407_v15 }
 0x147   :  { %v462_v31 = vmul.f32 %v2750_v53, %v442_v16  ;;  %v444_v19 = vmul.f32 %v440_v23, %v408_v42  ;;  %v747_v23 = vsel %vm625_vm11, %v3208_v32, %v3213_v59 }
 0x148   :  { %v465_v27 = vsub.f32 1.0, %v461_v61  ;;  %v463_v12 = vmul.f32 %v2752_v41, %v443_v33 }
 0x149   :  { %v466_v13 = vsub.f32 1.0, %v462_v31  ;;  %v464_v52 = vmul.f32 %v2754_v58, %v444_v19  ;;  %v749_v19 = vsel %vm625_vm11, %v3195_v30, %v3219_v63 }
 0x14a   :  { %v473_v38 = vsub.f32 0.0, %v465_v27  ;;  %v467_v36 = vsub.f32 1.0, %v463_v12 }
 0x14b   :  { %v474_v18 = vsub.f32 0.0, %v466_v13  ;;  %v468_v42 = vsub.f32 1.0, %v464_v52 }
 0x14c   :  { %v477_v17 = vsel %vm469_vm5, %v465_v27, %v473_v38  ;;  %v475_v60 = vsub.f32 0.0, %v467_v36  ;;  %vm1061_vm5 = vcmask 777216  }
 0x14d   :  { %v481_v15 = vadd.f32 1.0, %v477_v17  ;;  %v478_v35 = vsel %vm470_vm6, %v466_v13, %v474_v18  ;;  %v476_v56 = vsub.f32 0.0, %v468_v42  ;;  %v945_v17 = vsel %vm943_vm12, %v3239_v22, %v3221_v2 }
 0x14e   :  { %v482_v43 = vadd.f32 1.0, %v478_v35  ;;  %v479_v14 = vsel %vm471_vm7, %v467_v36, %v475_v60  ;;  %v4417_v35 = vld [vmem:[#allocation9_spill] sm:$0xff]  ;;  %vm1141_vm6 = vcmask 769024  }
 0x14f   :  { %v485_v37 = vmul.f32 %v481_v15, %v373_v25  ;;  %v483_v24 = vadd.f32 1.0, %v479_v14  ;;  %v480_v21 = vsel %vm472_vm8, %v468_v42, %v476_v56  ;;  %v4419_v14 = vld [vmem:[#allocation8_spill] sm:$0xff]  ;;  %v4421_v56 = vld [vmem:[#allocation19_spill] sm:$0xff] }
 0x150   :  { %v486_v54 = vmul.f32 %v482_v43, %v374_v28  ;;  %v484_v57 = vadd.f32 1.0, %v480_v21  ;;  %v865_v28 = vsel %vm863_vm13, %v4417_v35, %v3231_v8  ;;  %v4418_v43 = vld [vmem:[#allocation18_spill] sm:$0xff] }
 0x151   :  { %v3315_v3 = vmul.f32 1.7015043, %v485_v37  ;;  %v487_v51 = vmul.f32 %v483_v24, %v375_v29 }
 0x152   :  { %v3318_v44 = vmul.f32 1.7015043, %v486_v54  ;;  %v488_v39 = vmul.f32 %v484_v57, %v376_v20  ;;  %v4420_v54 = vld [vmem:[#allocation12_spill] sm:$0xff]  ;;  %v4422_v20 = vld [vmem:[#allocation14_spill] sm:$0xff] }
 0x153   :  { %v802_v34 = vmul.f32 %v3191_v50, %v3315_v3  ;;  %v3323_v40 = vmul.f32 1.7015043, %v487_v51  ;;  %v597_v61 = vmul.f32 %v588_v9, %v3315_v3  ;;  %v677_v31 = vmul.f32 %v668_v7, %v3315_v3 }
 0x154   :  { %v803_v16 = vmul.f32 %v3191_v50, %v3318_v44  ;;  %v3331_v53 = vmul.f32 1.7015043, %v488_v39  ;;  %v756_v38 = vmul.f32 %v747_v23, %v3315_v3  ;;  %v952_v32 = vmul.f32 %v3216_v62, %v3315_v3  ;;  %v4423_v39 = vld [vmem:[#allocation13_spill] sm:$0xff] }
 0x155   :  { %810 = vrot.lane.b32.xlu1 %v802_v34, %s2824_s28  ;;  %v804_v6 = vmul.f32 %v3191_v50, %v3323_v40  ;;  %v606_v41 = vmul.f32 %v3247_v26, %v597_v61  ;;  %v599_v27 = vmul.f32 %v590_v55, %v3323_v40  ;;  %v679_v12 = vmul.f32 %v670_v5, %v3323_v40  ;;  %v4424_v61 = vld [vmem:[#allocation15_spill] sm:$0xff] }
 0x156   :  { %812 = vrot.lane.b32.xlu0 %v803_v16, %s2824_s28  ;;  %v805_v33 = vmul.f32 %v3191_v50, %v3331_v53  ;;  %v686_v50 = vmul.f32 %v3179_v46, %v677_v31  ;;  %v765_v36 = vmul.f32 %v3183_v47, %v756_v38  ;;  %v758_v18 = vmul.f32 %v749_v19, %v3323_v40 }
 0x157   :  { %v608_v13 = vmul.f32 %v3247_v26, %v599_v27  ;;  %v688_v58 = vmul.f32 %v3179_v46, %v679_v12  ;;  %v961_v52 = vmul.f32 %v3223_v10, %v952_v32  ;;  %v954_v25 = vmul.f32 %v945_v17, %v3323_v40 }
 0x158   :  { %v767_v15 = vmul.f32 %v3183_v47, %v758_v18  ;;  %v872_v60 = vmul.f32 %v3227_v11, %v3315_v3  ;;  %v1032_v42 = vmul.f32 %v4418_v43, %v3315_v3  ;;  %v874_v24 = vmul.f32 %v865_v28, %v3323_v40 }
 0x159   :  { %814 = vrot.lane.b32.xlu1 %v804_v6, %s2824_s28  ;;  %v963_v37 = vmul.f32 %v3223_v10, %v954_v25  ;;  %v1025_v51 = vsel %vm1023_vm14, %v4421_v56, %v4420_v54  ;;  %v1112_v16 = vmul.f32 %v4423_v39, %v3315_v3  ;;  %v589_v9 = vsel %vm587_vm9, %v3185_v4, %v3177_v45  ;;  %v1098_v6 = vpop.permute.xlu1 %1097 }
 0x15a   :  { %816 = vrot.lane.b32.xlu0 %v805_v33, %s2824_s28  ;;  %v881_v29 = vmul.f32 %v4419_v14, %v872_v60  ;;  %v1034_v21 = vmul.f32 %v1025_v51, %v3323_v40  ;;  %v1041_v57 = vmul.f32 %v4422_v20, %v1032_v42  ;;  %v883_v34 = vmul.f32 %v4419_v14, %v874_v24  ;;  %v3493_v51 = vld [vmem:[%s4346_s6] sm:$0xff] }
 0x15b   :  { %v1105_v7 = vsel %vm1103_vm15, %v1098_v6, %v4424_v61  ;;  %v598_v33 = vmul.f32 %v589_v9, %v3318_v44  ;;  %v669_v45 = vsel %vm667_vm10, %v3199_v0, %v3187_v48  ;;  %v600_v5 = vmul.f32 %v3189_v49, %v3331_v53 }
 0x15c   :  { %v1043_v55 = vmul.f32 %v4422_v20, %v1034_v21  ;;  %v1114_v31 = vmul.f32 %v1105_v7, %v3323_v40  ;;  %v748_v12 = vsel %vm625_vm11, %v3213_v59, %v3195_v30  ;;  %v680_v49 = vmul.f32 %v3204_v1, %v3331_v53  ;;  %v2637_v21 = vld [vmem:[%s4342_s1 + $0x1] ss:$8 sm:$0xf] }
 0x15d   :  { %617 = vrot.lane.b32.xlu1 %v606_v41, %s2815_s21  ;;  %v4425_v41 = vld [vmem:[#allocation11_spill] sm:$0xff]  ;;  %v607_v4 = vmul.f32 %v3247_v26, %v598_v33  ;;  %v757_v48 = vmul.f32 %v748_v12, %v3318_v44  ;;  %v944_v38 = vsel %vm943_vm12, %v3216_v62, %v3239_v22  ;;  %v759_v59 = vmul.f32 %v3219_v63, %v3331_v53 }
 0x15e   :  { %697 = vrot.lane.b32.xlu0 %v686_v50, %s2825_s5  ;;  %v1121_v27 = vmul.f32 %v4425_v41, %v1112_v16  ;;  %v1123_v23 = vmul.f32 %v4425_v41, %v1114_v31  ;;  %v678_v50 = vmul.f32 %v669_v45, %v3318_v44  ;;  %v953_v19 = vmul.f32 %v944_v38, %v3318_v44  ;;  %v4431_v16 = vld [vmem:[#allocation4_spill] sm:$0xff] }
 0x15f   :  { %v766_v30 = vmul.f32 %v3183_v47, %v757_v48  ;;  %v864_v1 = vsel %vm863_vm13, %v3227_v11, %v4417_v35  ;;  %v768_v22 = vmul.f32 %v3183_v47, %v759_v59  ;;  %v1104_v25 = vsel %vm1103_vm15, %v4423_v39, %v1098_v6  ;;  %v1102_v35 = vpop.permute.xlu1 %1101  ;;  %v4432_v6 = vld [vmem:[#allocation7_spill] sm:$0xff] }
 0x160   :  { %v687_v0 = vmul.f32 %v3179_v46, %v678_v50  ;;  %v873_v63 = vmul.f32 %v864_v1, %v3318_v44  ;;  %v962_v32 = vmul.f32 %v3223_v10, %v953_v19  ;;  %v1113_v60 = vmul.f32 %v1104_v25, %v3318_v44 }
 0x161   :  { %621 = vrot.lane.b32.xlu1 %v608_v13, %s2815_s21  ;;  %v609_v13 = vmul.f32 %v3247_v26, %v600_v5  ;;  %v689_v26 = vmul.f32 %v3179_v46, %v680_v49  ;;  %v1106_v42 = vsel %vm1103_vm15, %v4424_v61, %v1102_v35  ;;  %v1116_v24 = vmul.f32 0.0, %v1102_v35  ;;  %v2639_v5 = vld [vmem:[%s4342_s1 + $0x3] ss:$8 sm:$0xf] }
 0x162   :  { %701 = vrot.lane.b32.xlu0 %v688_v58, %s2825_s5  ;;  %v4426_v58 = vld [vmem:[#allocation17_spill] sm:$0xff]  ;;  %v882_v47 = vmul.f32 %v4419_v14, %v873_v63  ;;  %v1417_v9 = vrot.slane %v2637_v21, %v4431_v16  ;;  %v1421_v61 = vrot.slane %v2637_v21, %v4432_v6  ;;  %v4433_v7 = vmov 3  }
 0x163   :  { %v946_v62 = vsel %vm943_vm12, %v3221_v2, %v4426_v58  ;;  %v1024_v2 = vsel %vm1023_vm14, %v4418_v43, %v4421_v56  ;;  %v1125_v56 = vmul.f32 %v4425_v41, %v1116_v24  ;;  %v4434_v33 = vmov 6   ;;  %v2640_v49 = vld [vmem:[%s4342_s1 + $0x5] ss:$8 sm:$0xf] }
 0x164   :  { %v955_v46 = vmul.f32 %v946_v62, %v3331_v53  ;;  %v1033_v17 = vmul.f32 %v1024_v2, %v3318_v44  ;;  %v1571_v50 = vrot.slane %v2639_v5, %v4431_v16  ;;  %v1690_v19 = vrot.slane %v2640_v49, %v4432_v6 }
 0x165   :  { %776 = vrot.lane.b32.xlu1 %v765_v36, %s2811_s16  ;;  %v4427_v36 = vld [vmem:[#allocation10_spill] sm:$0xff]  ;;  %v4437_v62 = vmov 8  }
 0x166   :  { %971 = vrot.lane.b32.xlu0 %v961_v52, %s2827_s18  ;;  %v866_v11 = vsel %vm863_vm13, %v3231_v8, %v4427_v36  ;;  %v964_v52 = vmul.f32 %v3223_v10, %v955_v46  ;;  %v4428_v8 = vld [vmem:[#allocation20_spill] sm:$0xff]  ;;  %v1042_v10 = vmul.f32 %v4422_v20, %v1033_v17 }
 0x167   :  { %v875_v18 = vmul.f32 %v866_v11, %v3331_v53 }
 0x169   :  { %780 = vrot.lane.b32.xlu1 %v767_v15, %s2811_s16  ;;  %v1026_v15 = vsel %vm1023_vm14, %v4420_v54, %v4428_v8  ;;  %v884_v28 = vmul.f32 %v4419_v14, %v875_v18  ;;  %v4438_v18 = vmov 7   ;;  %v2642_v8 = vld [vmem:[%s4342_s1 + $0x7] ss:$8 sm:$0xf] }
 0x16a   :  { %975 = vrot.lane.b32.xlu0 %v963_v37, %s2827_s18  ;;  %v1035_v43 = vmul.f32 %v1026_v15, %v3331_v53  ;;  %v1115_v37 = vmul.f32 %v1106_v42, %v3331_v53  ;;  %v1840_v15 = vrot.slane %v2642_v8, %v4431_v16 }
 0x16c   :  { %v1044_v54 = vmul.f32 %v4422_v20, %v1035_v43  ;;  %v1124_v14 = vmul.f32 %v4425_v41, %v1115_v37  ;;  %v4429_v20 = vld [vmem:[#allocation5_spill] sm:$0xff]  ;;  %v4439_v37 = vmov 0  }
 0x16d   :  { %891 = vrot.lane.b32.xlu1 %v881_v29, %s2826_s17  ;;  %v1122_v29 = vmul.f32 %v4425_v41, %v1113_v60  ;;  %v1563_v12 = vrot.slane %v2639_v5, %v4429_v20  ;;  %v2643_v43 = vld [vmem:[%s4342_s1 + $0x20] ss:$8 sm:$0xf] }
 0x16e   :  { %1051 = vrot.lane.b32.xlu0 %v1041_v57, %s2828_s20  ;;  %v1409_v57 = vrot.slane %v2637_v21, %v4429_v20 }
 0x171   :  { %895 = vrot.lane.b32.xlu1 %v883_v34, %s2826_s17  ;;  %v4430_v34 = vld [vmem:[#allocation6_spill] sm:$0xff] }
 0x172   :  { %1055 = vrot.lane.b32.xlu0 %v1043_v55, %s2828_s20  ;;  %v1413_v39 = vrot.slane %v2637_v21, %v4430_v34  ;;  %v2638_v55 = vld [vmem:[%s4342_s1 + $0x2] ss:$8 sm:$0xf]  ;;  %v1567_v48 = vrot.slane %v2639_v5, %v4430_v34  ;;  %v1682_v38 = vrot.slane %v2640_v49, %v4430_v34  ;;  %v1832_v21 = vrot.slane %v2642_v8, %v4429_v20 }
 0x173   :  { %v1486_v31 = vrot.slane %v2638_v55, %v4429_v20  ;;  %v1494_v41 = vrot.slane %v2638_v55, %v4431_v16  ;;  %v1498_v45 = vrot.slane %v2638_v55, %v4432_v6 }
 0x175   :  { %1131 = vrot.lane.b32.xlu1 %v1121_v27, %s2829_s22  ;;  %v1490_v27 = vrot.slane %v2638_v55, %v4430_v34 }
 0x176   :  { %619 = vrot.lane.b32.xlu0 %v607_v4, %s2815_s21  ;;  %v4435_v4 = vmov 4  }
 0x179   :  { %1135 = vrot.lane.b32.xlu1 %v1123_v23, %s2829_s22  ;;  %v3525_v23 = vpop.permute.xlu1 %522 }
 0x17a   :  { %623 = vrot.lane.b32.xlu0 %v609_v13, %s2815_s21 }
 0x17d   :  { %699 = vrot.lane.b32.xlu1 %v687_v0, %s2825_s5  ;;  %v3531_v13 = vpop.permute.xlu1 %524  ;;  %v4436_v0 = vmov 5  }
 0x17e   :  { %778 = vrot.lane.b32.xlu0 %v766_v30, %s2811_s16  ;;  %v3542_v30 = vpop.permute.xlu0 %526 }
 0x181   :  { %703 = vrot.lane.b32.xlu1 %v689_v26, %s2825_s5  ;;  %v3544_v59 = vpop.permute.xlu1 %528  ;;  %v1575_v26 = vrot.slane %v2639_v5, %v4432_v6 }
 0x182   :  { %782 = vrot.lane.b32.xlu0 %v768_v22, %s2811_s16  ;;  %v616_v1 = vpop.permute.xlu0 %615  ;;  %v2641_v22 = vld [vmem:[%s4342_s1 + $0x6] ss:$8 sm:$0xf] }
 0x183   :  { %v1755_v63 = vrot.slane %v2641_v22, %v4429_v20  ;;  %v1763_v11 = vrot.slane %v2641_v22, %v4431_v16  ;;  %v1759_v35 = vrot.slane %v2641_v22, %v4430_v34  ;;  %v1767_v42 = vrot.slane %v2641_v22, %v4432_v6 }
 0x185   :  { %973 = vrot.lane.b32.xlu1 %v962_v32, %s2827_s18  ;;  %v3550_v58 = vpop.permute.xlu1 %1159  ;;  %v1678_v32 = vrot.slane %v2640_v49, %v4429_v20 }
 0x186   :  { %893 = vrot.lane.b32.xlu0 %v882_v47, %s2826_s17  ;;  %v775_v46 = vpop.permute.xlu0 %774  ;;  %v1686_v47 = vrot.slane %v2640_v49, %v4431_v16  ;;  %v1913_v49 = vrot.slane %v2643_v43, %v4430_v34 }
 0x189   :  { %977 = vrot.lane.b32.xlu1 %v964_v52, %s2827_s18  ;;  %v696_v36 = vpop.permute.xlu1 %695 }
 0x18a   :  { %897 = vrot.lane.b32.xlu0 %v884_v28, %s2826_s17  ;;  %v3563_v2 = vpop.permute.xlu0 %979 }
 0x18d   :  { %1053 = vrot.lane.b32.xlu1 %v1042_v10, %s2828_s20  ;;  %v3568_v17 = vpop.permute.xlu1 %899  ;;  %v1909_v10 = vrot.slane %v2643_v43, %v4429_v20 }
 0x18e   :  { %1133 = vrot.lane.b32.xlu0 %v1122_v29, %s2829_s22  ;;  %v3571_v52 = vpop.permute.xlu0 %1059  ;;  %v539_v29 = vmul.f32 0.0, %v3525_v23 }
 0x191   :  { %1057 = vrot.lane.b32.xlu1 %v1044_v54, %s2828_s20 }
 0x192   :  { %1137 = vrot.lane.b32.xlu0 %v1124_v14, %s2829_s22  ;;  %v1917_v14 = vrot.slane %v2643_v43, %v4431_v16 }
 0x195   :  { %1139 = vrot.lane.b32.xlu1 %v1125_v56, %s2829_s22 }
 0x196   :  { %1444 = vperm.xlu0 %2710, %v3493_v51  }
 0x199   :  { %1521 = vperm.xlu1 %2712, %v3493_v51  }
 0x19a   :  { %1422 = vrot.lane.b32.xlu0 %v1409_v57, %s2811_s16  ;;  %v4440_v57 = vld [vmem:[#allocation16_spill] sm:$0xff] }
 0x19b   :  { %2713 = vset.pattern.permute.xlu0 %v4433_v7 }
 0x19d   :  { %1424 = vrot.lane.b32.xlu1 %v1413_v39, %s2811_s16  ;;  %v550_v39 = vmul.f32 %v4440_v57, %v539_v29 }
 0x19e   :  { %2716 = vset.pattern.permute.xlu1 %v4434_v33  ;;  %1426 = vrot.lane.b32.xlu0 %v1417_v9, %s2811_s16  ;;  %v1836_v33 = vrot.slane %v2642_v8, %v4430_v34 }
 0x1a1   :  { %1428 = vrot.lane.b32.xlu1 %v1421_v61, %s2811_s16 }
 0x1a2   :  { %1598 = vperm.xlu0 %2713, %v3493_v51  }
 0x1a5   :  { %1499 = vrot.lane.b32.xlu1 %v1486_v31, %s2813_s4 }
 0x1a6   :  { %1503 = vrot.lane.b32.xlu0 %v1494_v41, %s2813_s4 }
 0x1a7   :  { %2714 = vset.pattern.permute.xlu0 %v4435_v4 }
 0x1a9   :  { %1501 = vrot.lane.b32.xlu1 %v1490_v27, %s2813_s4  ;;  %v1349_v27 = vld [vmem:[%s4342_s1] ss:$8 sm:$0xf] }
 0x1aa   :  { %1636 = vperm.xlu0 %2714, %v3493_v51   ;;  %v1362_v5 = vrot.slane %v1349_v27, %v4431_v16 }
 0x1ad   :  { %1505 = vrot.lane.b32.xlu1 %v1498_v45, %s2813_s4 }
 0x1ae   :  { %1580 = vrot.lane.b32.xlu0 %v1571_v50, %s2815_s21  ;;  %v1844_v50 = vrot.slane %v2642_v8, %v4432_v6 }
 0x1af   :  { %2715 = vset.pattern.permute.xlu0 %v4436_v0 }
 0x1b1   :  { %1576 = vrot.lane.b32.xlu1 %v1563_v12, %s2815_s21 }
 0x1b2   :  { %1713 = vperm.xlu0 %2715, %v3493_v51  }
 0x1b5   :  { %1578 = vrot.lane.b32.xlu1 %v1567_v48, %s2815_s21 }
 0x1b6   :  { %1693 = vrot.lane.b32.xlu0 %v1682_v38, %s2817_s24 }
 0x1b7   :  { %2718 = vset.pattern.permute.xlu0 %v4437_v62 }
 0x1b9   :  { %1582 = vrot.lane.b32.xlu1 %v1575_v26, %s2815_s21 }
 0x1ba   :  { %1697 = vrot.lane.b32.xlu0 %v1690_v19, %s2817_s24  ;;  %v1921_v19 = vrot.slane %v2643_v43, %v4432_v6 }
 0x1bd   :  { %1790 = vperm.xlu1 %2716, %v3493_v51  }
 0x1be   :  { %1768 = vrot.lane.b32.xlu0 %v1755_v63, %s2819_s27  ;;  %v1354_v63 = vrot.slane %v1349_v27, %v4429_v20  ;;  %v1358_v20 = vrot.slane %v1349_v27, %v4430_v34 }
 0x1c1   :  { %1691 = vrot.lane.b32.xlu1 %v1678_v32, %s2817_s24 }
 0x1c2   :  { %2717 = vset.pattern.permute.xlu1 %v4438_v18  ;;  %1772 = vrot.lane.b32.xlu0 %v1763_v11, %s2819_s27  ;;  %v532_v11 = vsel %vm530_vm1, %v3531_v13, %v3542_v30 }
 0x1c5   :  { %1695 = vrot.lane.b32.xlu1 %v1686_v47, %s2817_s24 }
 0x1c6   :  { %1944 = vperm.xlu0 %2718, %v3493_v51  }
 0x1c7   :  { %v3574_v25 = vpop.permute.xlu1 %810 }
 0x1c8   :  { %v3581_v60 = vpop.permute.xlu0 %812 }
 0x1c9   :  { %1867 = vperm.xlu1 %2717, %v3493_v51  }
 0x1ca   :  { %1849 = vrot.lane.b32.xlu0 %v1840_v15, %s2820_s19  ;;  %v541_v15 = vmul.f32 %v532_v11, %v3318_v44  ;;  %v1366_v44 = vrot.slane %v1349_v27, %v4432_v6 }
 0x1cb   :  { %v3585_v28 = vpop.permute.xlu1 %814  ;;  %2719 = vset.pattern.permute.xlu0 %v4439_v37 }
 0x1cc   :  { %v3596_v24 = vpop.permute.xlu0 %816 }
 0x1cd   :  { %1770 = vrot.lane.b32.xlu1 %v1759_v35, %s2819_s27 }
 0x1ce   :  { %2720 = vset.pattern.permute.xlu1 %v4439_v37  ;;  %1922 = vrot.lane.b32.xlu0 %v1909_v10, %s2822_s23 }
 0x1cf   :  { %v618_v54 = vpop.permute.xlu1 %617 }
 0x1d0   :  { %v626_v56 = vsel %vm625_vm11, %v616_v1, %v618_v54  ;;  %v3605_v9 = vpop.permute.xlu0 %697 }
 0x1d1   :  { %1774 = vrot.lane.b32.xlu1 %v1767_v42, %s2819_s27  ;;  %v635_v7 = vadd.f32 %v626_v56, %v550_v39  ;;  %v706_v55 = vsel %vm705_vm0, %v696_v36, %v3605_v9  ;;  %v531_v36 = vsel %vm530_vm1, %v3525_v23, %v3531_v13  ;;  %v533_v13 = vsel %vm530_vm1, %v3542_v30, %v3544_v59 }
 0x1d2   :  { %1926 = vrot.lane.b32.xlu0 %v1917_v14, %s2822_s23  ;;  %v540_v8 = vmul.f32 %v531_v36, %v3315_v3  ;;  %v542_v34 = vmul.f32 %v533_v13, %v3323_v40  ;;  %v552_v30 = vmul.f32 %v4440_v57, %v541_v15  ;;  %v818_v36 = vsel %vm530_vm1, %v3574_v25, %v3581_v60 }
 0x1d3   :  { %v3607_v61 = vpop.permute.xlu1 %621  ;;  %v715_v45 = vadd.f32 %v706_v55, %v635_v7 }
 0x1d4   :  { %v3614_v31 = vpop.permute.xlu0 %701  ;;  %v551_v29 = vmul.f32 %v4440_v57, %v540_v8  ;;  %v553_v27 = vmul.f32 %v4440_v57, %v542_v34 }
 0x1d5   :  { %1845 = vrot.lane.b32.xlu1 %v1832_v21, %s2820_s19 }
 0x1d6   :  { %1391 = vperm.xlu0 %2719, %v3493_v51  }
 0x1d7   :  { %v3616_v41 = vpop.permute.xlu1 %776 }
 0x1d8   :  { %v784_v4 = vsel %vm587_vm9, %v775_v46, %v3616_v41  ;;  %v3627_v48 = vpop.permute.xlu0 %971 }
 0x1d9   :  { %1847 = vrot.lane.b32.xlu1 %v1836_v33, %s2820_s19  ;;  %v793_v12 = vadd.f32 %v784_v4, %v715_v45 }
 0x1da   :  { %1371 = vrot.lane.b32.xlu0 %v1362_v5, %s2824_s28 }
 0x1db   :  { %v3629_v0 = vpop.permute.xlu1 %780  ;;  %v826_v51 = vadd.f32 %v3574_v25, %v793_v12  ;;  %v820_v25 = vsel %vm530_vm1, %v3585_v28, %v3596_v24 }
 0x1dc   :  { %v3634_v38 = vpop.permute.xlu0 %975 }
 0x1dd   :  { %1851 = vrot.lane.b32.xlu1 %v1844_v50, %s2820_s19 }
 0x1df   :  { %v3637_v16 = vpop.permute.xlu1 %891 }
 0x1e0   :  { %v911_v26 = vadd.f32 %v3637_v16, %v826_v51  ;;  %v3642_v1 = vpop.permute.xlu0 %1051 }
 0x1e1   :  { %1924 = vrot.lane.b32.xlu1 %v1913_v49, %s2822_s23 }
 0x1e2   :  { %v991_v62 = vadd.f32 %v3627_v48, %v911_v26 }
 0x1e3   :  { %v3645_v22 = vpop.permute.xlu1 %895 }
 0x1e4   :  { %v1071_v46 = vadd.f32 %v3642_v1, %v991_v62  ;;  %v3650_v32 = vpop.permute.xlu0 %1055 }
 0x1e5   :  { %1928 = vrot.lane.b32.xlu1 %v1921_v19, %s2822_s23 }
 0x1e7   :  { %v3658_v47 = vpop.permute.xlu1 %1131 }
 0x1e8   :  { %v1151_v18 = vadd.f32 %v3658_v47, %v1071_v46  ;;  %v620_v23 = vpop.permute.xlu0 %619 }
 0x1e9   :  { %1367 = vrot.lane.b32.xlu1 %v1354_v63, %s2824_s28  ;;  %v627_v42 = vsel %vm625_vm11, %v618_v54, %v620_v23  ;;  %v628_v3 = vsel %vm625_vm11, %v620_v23, %v3607_v61  ;;  %v543_v54 = vmul.f32 %v3544_v59, %v3331_v53 }
 0x1ea   :  { %v3666_v35 = vadd.f32 %v3550_v58, %v1151_v18  ;;  %v636_v39 = vadd.f32 %v627_v42, %v551_v29  ;;  %v637_v7 = vadd.f32 %v628_v3, %v552_v30 }
 0x1eb   :  { %v3671_v43 = vpop.permute.xlu1 %1135 }
 0x1ec   :  { %v3674_v10 = vmul.f32 0.70710677, %v3666_v35  ;;  %v624_v14 = vpop.permute.xlu0 %623 }
 0x1ed   :  { %1369 = vrot.lane.b32.xlu1 %v1358_v20, %s2824_s28  ;;  %v629_v40 = vsel %vm625_vm11, %v3607_v61, %v624_v14  ;;  %v554_v61 = vmul.f32 %v4440_v57, %v543_v54  ;;  %v819_v57 = vsel %vm530_vm1, %v3581_v60, %v3585_v28 }
 0x1ee   :  { %v3683_v37 = vand.u32 2147483647, %v3674_v10  ;;  %v638_v50 = vadd.f32 %v629_v40, %v553_v27  ;;  %vm1287_vm7 = vcmp.ge.f32.partialorder %v3674_v10, 0.0 }
 0x1ef   :  { %v700_v56 = vpop.permute.xlu1 %699  ;;  %v639_v49 = vadd.f32 %v624_v14, %v554_v61 }
 0x1f0   :  { %v1182_v21 = vmul.f32 0.3275911, %v3683_v37  ;;  %v707_v6 = vsel %vm705_vm0, %v3605_v9, %v700_v56  ;;  %v708_v55 = vsel %vm705_vm0, %v700_v56, %v3614_v31  ;;  %v779_v45 = vpop.permute.xlu0 %778 }
 0x1f1   :  { %1373 = vrot.lane.b32.xlu1 %v1366_v44, %s2824_s28  ;;  %v716_v53 = vadd.f32 %v707_v6, %v636_v39  ;;  %v717_v59 = vadd.f32 %v708_v55, %v637_v7  ;;  %v785_v4 = vsel %vm587_vm9, %v3616_v41, %v779_v45  ;;  %v786_v9 = vsel %vm587_vm9, %v779_v45, %v3629_v0 }
 0x1f2   :  { %v1187_v33 = vadd.f32 1.0, %v1182_v21  ;;  %v1257_v44 = vsub.f32 0.0, %v3683_v37 }
 0x1f3   :  { %v704_v5 = vpop.permute.xlu1 %703  ;;  %v794_v51 = vadd.f32 %v785_v4, %v716_v53  ;;  %v795_v26 = vadd.f32 %v786_v9, %v717_v59 }
 0x1f4   :  { %2755 = vrcp.f32 %v1187_v33  ;;  %v709_v12 = vsel %vm705_vm0, %v3614_v31, %v704_v5  ;;  %v783_v62 = vpop.permute.xlu0 %782  ;;  %v719_v46 = vadd.f32 %v704_v5, %v639_v49  ;;  %v1262_v4 = vmul.f32 %v1257_v44, %v3683_v37 }
 0x1f5   :  { %v718_v19 = vadd.f32 %v709_v12, %v638_v50  ;;  %v787_v63 = vsel %vm587_vm9, %v3629_v0, %v783_v62  ;;  %v827_v18 = vadd.f32 %v818_v36, %v794_v51  ;;  %v828_v20 = vadd.f32 %v819_v57, %v795_v26 }
 0x1f6   :  { %v797_v23 = vadd.f32 %v783_v62, %v719_v46 }
 0x1f7   :  { %v974_v41 = vpop.permute.xlu1 %973  ;;  %v796_v31 = vadd.f32 %v787_v63, %v718_v19  ;;  %v1267_v63 = vmul.f32 1.442695, %v1262_v4 }
 0x1f8   :  { %v894_v11 = vpop.permute.xlu0 %893  ;;  %v983_v60 = vsel %vm981_vm3, %v974_v41, %v3634_v38  ;;  %v830_v39 = vadd.f32 %v3596_v24, %v797_v23 }
 0x1f9   :  { %v902_v8 = vsel %vm901_vm2, %v3637_v16, %v894_v11  ;;  %v903_v0 = vsel %vm901_vm2, %v894_v11, %v3645_v22  ;;  %v982_v16 = vsel %vm981_vm3, %v3627_v48, %v974_v41  ;;  %v829_v30 = vadd.f32 %v820_v25, %v796_v31 }
 0x1fa   :  { %v912_v13 = vadd.f32 %v902_v8, %v827_v18  ;;  %v913_v42 = vadd.f32 %v903_v0, %v828_v20  ;;  %2757 = vpow2.f32 %v1267_v63 }
 0x1fb   :  { %v978_v15 = vpop.permute.xlu1 %977 }
 0x1fc   :  { %v898_v34 = vpop.permute.xlu0 %897  ;;  %v993_v29 = vadd.f32 %v983_v60, %v913_v42  ;;  %v992_v21 = vadd.f32 %v982_v16, %v912_v13  ;;  %v985_v12 = vsel %vm981_vm3, %v978_v15, %v3563_v2 }
 0x1fd   :  { %v904_v54 = vsel %vm901_vm2, %v3645_v22, %v898_v34  ;;  %v905_v28 = vsel %vm901_vm2, %v898_v34, %v3568_v17  ;;  %v984_v22 = vsel %vm981_vm3, %v3634_v38, %v978_v15 }
 0x1fe   :  { %v2756_v3 = vpop.eup %2755  ;;  %v914_v7 = vadd.f32 %v904_v54, %v829_v30  ;;  %v915_v27 = vadd.f32 %v905_v28, %v830_v39 }
 0x1ff   :  { %v1197_v14 = vmul.f32 %v2756_v3, %v1187_v33  ;;  %v1054_v56 = vpop.permute.xlu1 %1053 }
 0x200   :  { %v1062_v6 = vsel %vm1061_vm5, %v3642_v1, %v1054_v56  ;;  %v1063_v48 = vsel %vm1061_vm5, %v1054_v56, %v3650_v32  ;;  %v1134_v53 = vpop.permute.xlu0 %1133  ;;  %v994_v45 = vadd.f32 %v984_v22, %v914_v7  ;;  %v995_v26 = vadd.f32 %v985_v12, %v915_v27 }
 0x201   :  { %v1202_v40 = vsub.f32 2.0, %v1197_v14  ;;  %v1072_v55 = vadd.f32 %v1062_v6, %v992_v21  ;;  %v1073_v33 = vadd.f32 %v1063_v48, %v993_v29  ;;  %v1142_v59 = vsel %vm1141_vm6, %v3658_v47, %v1134_v53 }
 0x202   :  { %v1143_v24 = vsel %vm1141_vm6, %v1134_v53, %v3671_v43 }
 0x203   :  { %v1207_v17 = vmul.f32 %v2756_v3, %v1202_v40  ;;  %v1058_v1 = vpop.permute.xlu1 %1057  ;;  %v1152_v9 = vadd.f32 %v1142_v59, %v1072_v55  ;;  %v1153_v5 = vadd.f32 %v1143_v24, %v1073_v33 }
 0x204   :  { %v1064_v61 = vsel %vm1061_vm5, %v3650_v32, %v1058_v1  ;;  %v1065_v51 = vsel %vm1061_vm5, %v1058_v1, %v3571_v52  ;;  %v1138_v37 = vpop.permute.xlu0 %1137  ;;  %v2758_v56 = vpop.eup %2757 }
 0x205   :  { %v1074_v50 = vadd.f32 %v1064_v61, %v994_v45  ;;  %v1212_v38 = vmul.f32 1.0614054, %v1207_v17  ;;  %v3746_v49 = vadd.f32 %v3550_v58, %v1152_v9  ;;  %v3749_v47 = vadd.f32 %v3550_v58, %v1153_v5 }
 0x206   :  { %v1144_v19 = vsel %vm1141_vm6, %v3671_v43, %v1138_v37  ;;  %v1075_v46 = vadd.f32 %v1065_v51, %v995_v26  ;;  %v1167_v9 = vmul.f32 0.5, %v3666_v35 }
 0x207   :  { %v1140_v32 = vpop.permute.xlu1 %1139  ;;  %v1217_v62 = vadd.f32 -1.4531521, %v1212_v38  ;;  %v3756_v41 = vmul.f32 0.70710677, %v3746_v49  ;;  %v3759_v2 = vmul.f32 0.70710677, %v3749_v47  ;;  %v1154_v36 = vadd.f32 %v1144_v19, %v1074_v50 }
 0x208   :  { %v1145_v57 = vsel %vm1141_vm6, %v1138_v37, %v1140_v32 }
 0x209   :  { %v1222_v31 = vmul.f32 %v1217_v62, %v1207_v17  ;;  %v1178_v52 = vand.u32 2147483647, %v3756_v41  ;;  %v1179_v11 = vand.u32 2147483647, %v3759_v2  ;;  %v3765_v43 = vadd.f32 %v3550_v58, %v1154_v36 }
 0x20a   :  { %v1155_v18 = vadd.f32 %v1145_v57, %v1075_v46  ;;  %vm1288_vm8 = vcmp.ge.f32.partialorder %v3756_v41, 0.0  ;;  %vm1289_vm4 = vcmp.ge.f32.partialorder %v3759_v2, 0.0 }
 0x20b   :  { %v1227_v20 = vadd.f32 1.4214138, %v1222_v31  ;;  %v1183_v8 = vmul.f32 0.3275911, %v1178_v52  ;;  %v1184_v0 = vmul.f32 0.3275911, %v1179_v11 }
 0x20c   :  { %v3768_v15 = vmul.f32 0.70710677, %v3765_v43  ;;  %v3771_v23 = vadd.f32 %v3550_v58, %v1155_v18  ;;  %v1258_v27 = vsub.f32 0.0, %v1178_v52  ;;  %v1259_v24 = vsub.f32 0.0, %v1179_v11 }
 0x20d   :  { %v1232_v13 = vmul.f32 %v1227_v20, %v1207_v17  ;;  %v1188_v42 = vadd.f32 1.0, %v1183_v8  ;;  %v1189_v25 = vadd.f32 1.0, %v1184_v0 }
 0x20e   :  { %v1180_v60 = vand.u32 2147483647, %v3768_v15  ;;  %v3775_v3 = vmul.f32 0.70710677, %v3771_v23  ;;  %v1263_v12 = vmul.f32 %v1258_v27, %v1178_v52  ;;  %v1264_v26 = vmul.f32 %v1259_v24, %v1179_v11 }
 0x20f   :  { %2759 = vrcp.f32 %v1188_v42  ;;  %v1237_v44 = vadd.f32 -0.28449672, %v1232_v13 }
 0x210   :  { %2761 = vrcp.f32 %v1189_v25  ;;  %v1185_v16 = vmul.f32 0.3275911, %v1180_v60  ;;  %v3778_v34 = vand.u32 2147483647, %v3775_v3  ;;  %v1260_v10 = vsub.f32 0.0, %v1180_v60 }
 0x211   :  { %v1242_v30 = vmul.f32 %v1237_v44, %v1207_v17  ;;  %v1269_v18 = vmul.f32 1.442695, %v1263_v12  ;;  %v1271_v0 = vmul.f32 1.442695, %v1264_v26 }
 0x212   :  { %v1190_v29 = vadd.f32 1.0, %v1185_v16  ;;  %v1186_v58 = vmul.f32 0.3275911, %v3778_v34  ;;  %v1261_v52 = vsub.f32 0.0, %v3778_v34  ;;  %v1265_v13 = vmul.f32 %v1260_v10, %v1180_v60 }
 0x213   :  { %v1247_v14 = vadd.f32 0.2548296, %v1242_v30 }
 0x214   :  { %2763 = vrcp.f32 %v1190_v29  ;;  %v1191_v54 = vadd.f32 1.0, %v1186_v58  ;;  %v1273_v60 = vmul.f32 1.442695, %v1265_v13 }
 0x215   :  { %v1252_v28 = vmul.f32 %v1247_v14, %v1207_v17  ;;  %v3781_v21 = vpop.permute.xlu0 %1444  ;;  %v1266_v14 = vmul.f32 %v1261_v52, %v3778_v34 }
 0x216   :  { %2765 = vrcp.f32 %v1191_v54 }
 0x217   :  { %v1277_v39 = vmul.f32 %v2758_v56, %v1252_v28  ;;  %2767 = vpow2.f32 %v1269_v18 }
 0x218   :  { %v3783_v7 = vpop.permute.xlu1 %1521  ;;  %2769 = vpow2.f32 %v1271_v0 }
 0x219   :  { %v2760_v6 = vpop.eup %2759  ;;  %v1282_v48 = vsub.f32 1.0, %v1277_v39  ;;  %v3785_v33 = vpop.permute.xlu0 %1422  ;;  %2771 = vpow2.f32 %v1273_v60 }
 0x21a   :  { %v2762_v40 = vpop.eup %2761  ;;  %v1198_v55 = vmul.f32 %v2760_v6, %v1188_v42 }
 0x21b   :  { %v1199_v22 = vmul.f32 %v2762_v40, %v1189_v25  ;;  %v1292_v53 = vsub.f32 0.0, %v1282_v48 }
 0x21c   :  { %v3787_v59 = vpop.permute.xlu1 %1424  ;;  %v1203_v17 = vsub.f32 2.0, %v1198_v55 }
 0x21d   :  { %v1204_v45 = vsub.f32 2.0, %v1199_v22  ;;  %v1297_v1 = vsel %vm1287_vm7, %v1282_v48, %v1292_v53  ;;  %v3793_v50 = vpop.permute.xlu0 %1426  ;;  %v1275_v53 = vmul.f32 1.442695, %v1266_v14  ;;  %vm1290_vm7 = vcmp.ge.f32.partialorder %v3768_v15, 0.0 }
 0x21e   :  { %v2764_v4 = vpop.eup %2763  ;;  %v3791_v5 = vmul.f32 %v2760_v6, %v1203_v17  ;;  %v1302_v61 = vadd.f32 1.0, %v1297_v1  ;;  %v1171_v15 = vmul.f32 0.5, %v3771_v23 }
 0x21f   :  { %v3795_v38 = vmul.f32 %v2762_v40, %v1204_v45  ;;  %v1200_v51 = vmul.f32 %v2764_v4, %v1190_v29  ;;  %2773 = vpow2.f32 %v1275_v53 }
 0x220   :  { %v3797_v37 = vpop.permute.xlu1 %1428  ;;  %v1307_v19 = vmul.f32 %v1302_v61, %v1167_v9  ;;  %v1213_v32 = vmul.f32 1.0614054, %v3791_v5  ;;  %v2766_v62 = vpop.eup %2765 }
 0x221   :  { %v1205_v63 = vsub.f32 2.0, %v1200_v51  ;;  %v1214_v35 = vmul.f32 1.0614054, %v3795_v38  ;;  %v1201_v46 = vmul.f32 %v2766_v62, %v1191_v54  ;;  %v3801_v31 = vpop.permute.xlu0 %1598 }
 0x222   :  { %v1312_v36 = vmul.f32 1.7015043, %v1307_v19  ;;  %v1218_v57 = vadd.f32 -1.4531521, %v1213_v32 }
 0x223   :  { %v1210_v20 = vmul.f32 %v2764_v4, %v1205_v63  ;;  %v1219_v11 = vadd.f32 -1.4531521, %v1214_v35  ;;  %v1206_v42 = vsub.f32 2.0, %v1201_v46  ;;  %v2768_v63 = vpop.eup %2767 }
 0x224   :  { %v3804_v8 = vpop.permute.xlu1 %1499  ;;  %1322 = vrot.lane.b32.xlu1 %v1312_v36, %s2822_s23  ;;  %v1223_v25 = vmul.f32 %v1218_v57, %v3791_v5  ;;  %v2770_v36 = vpop.eup %2769 }
 0x225   :  { %v1215_v44 = vmul.f32 1.0614054, %v1210_v20  ;;  %v1224_v16 = vmul.f32 %v1219_v11, %v3795_v38  ;;  %v1211_v30 = vmul.f32 %v2766_v62, %v1206_v42  ;;  %v3809_v58 = vpop.permute.xlu0 %1503 }
 0x226   :  { %v1228_v29 = vadd.f32 1.4214138, %v1223_v25 }
 0x227   :  { %v1220_v54 = vadd.f32 -1.4531521, %v1215_v44  ;;  %v1229_v28 = vadd.f32 1.4214138, %v1224_v16  ;;  %v1216_v6 = vmul.f32 1.0614054, %v1211_v30  ;;  %v2772_v16 = vpop.eup %2771 }
 0x228   :  { %v3812_v56 = vpop.permute.xlu1 %1501  ;;  %v1233_v39 = vmul.f32 %v1228_v29, %v3791_v5 }
 0x229   :  { %v1225_v48 = vmul.f32 %v1220_v54, %v1210_v20  ;;  %v1234_v40 = vmul.f32 %v1229_v28, %v3795_v38  ;;  %v1221_v22 = vadd.f32 -1.4531521, %v1216_v6  ;;  %v3816_v27 = vpop.permute.xlu0 %1636 }
 0x22a   :  { %v1238_v55 = vadd.f32 -0.28449672, %v1233_v39 }
 0x22b   :  { %v1230_v17 = vadd.f32 1.4214138, %v1225_v48  ;;  %v1239_v24 = vadd.f32 -0.28449672, %v1234_v40  ;;  %v1226_v1 = vmul.f32 %v1221_v22, %v1211_v30  ;;  %v2774_v48 = vpop.eup %2773  ;;  %v1168_v40 = vmul.f32 0.5, %v3746_v49 }
 0x22c   :  { %v3818_v34 = vpop.permute.xlu1 %1505  ;;  %v1243_v45 = vmul.f32 %v1238_v55, %v3791_v5 }
 0x22d   :  { %v1235_v4 = vmul.f32 %v1230_v17, %v1210_v20  ;;  %v1244_v9 = vmul.f32 %v1239_v24, %v3795_v38  ;;  %v1231_v12 = vadd.f32 1.4214138, %v1226_v1  ;;  %v3822_v51 = vpop.permute.xlu0 %1580 }
 0x22e   :  { %v1248_v61 = vadd.f32 0.2548296, %v1243_v45 }
 0x22f   :  { %v1240_v26 = vadd.f32 -0.28449672, %v1235_v4  ;;  %v1249_v10 = vadd.f32 0.2548296, %v1244_v9  ;;  %v1236_v62 = vmul.f32 %v1231_v12, %v1211_v30 }
 0x230   :  { %v3824_v19 = vpop.permute.xlu1 %1576  ;;  %v1253_v32 = vmul.f32 %v1248_v61, %v3791_v5 }
 0x231   :  { %v1245_v35 = vmul.f32 %v1240_v26, %v1210_v20  ;;  %v1254_v46 = vmul.f32 %v1249_v10, %v3795_v38  ;;  %v1241_v18 = vadd.f32 -0.28449672, %v1236_v62  ;;  %v3828_v52 = vpop.permute.xlu0 %1713 }
 0x232   :  { %v1278_v57 = vmul.f32 %v2768_v63, %v1253_v32 }
 0x233   :  { %v1250_v11 = vadd.f32 0.2548296, %v1245_v35  ;;  %v1279_v0 = vmul.f32 %v2770_v36, %v1254_v46  ;;  %v1246_v25 = vmul.f32 %v1241_v18, %v1211_v30  ;;  %v1438_v35 = vmul.f32 0.0, %v3785_v33 }
 0x234   :  { %v3830_v13 = vpop.permute.xlu1 %1578  ;;  %v1283_v42 = vsub.f32 1.0, %v1278_v57  ;;  %v1169_v46 = vmul.f32 0.5, %v3749_v47  ;;  %v1515_v47 = vmul.f32 0.0, %v3804_v8 }
 0x235   :  { %v3835_v5 = vsel %vm625_vm11, %v3830_v13, %v3822_v51  ;;  %v1255_v44 = vmul.f32 %v1250_v11, %v1210_v20  ;;  %v1251_v38 = vadd.f32 0.2548296, %v1246_v25  ;;  %v1284_v14 = vsub.f32 1.0, %v1279_v0  ;;  %v3840_v60 = vpop.permute.xlu0 %1693 }
 0x236   :  { %v1293_v29 = vsub.f32 0.0, %v1283_v42 }
 0x237   :  { %v1280_v54 = vmul.f32 %v2772_v16, %v1255_v44  ;;  %v1256_v6 = vmul.f32 %v1251_v38, %v1211_v30  ;;  %v1294_v20 = vsub.f32 0.0, %v1284_v14  ;;  %v1170_v30 = vmul.f32 0.5, %v3765_v43 }
 0x238   :  { %v3838_v28 = vpop.permute.xlu1 %1582  ;;  %v1298_v39 = vsel %vm1288_vm8, %v1283_v42, %v1293_v29  ;;  %vm1291_vm8 = vcmp.ge.f32.partialorder %v3775_v3, 0.0  ;;  %v1592_v3 = vmul.f32 0.0, %v3824_v19  ;;  %v1447_v42 = vmul.f32 %v3781_v21, %v1438_v35 }
 0x239   :  { %v1303_v55 = vadd.f32 1.0, %v1298_v39  ;;  %v1285_v22 = vsub.f32 1.0, %v1280_v54  ;;  %v1281_v53 = vmul.f32 %v2774_v48, %v1256_v6  ;;  %v1698_v9 = vpop.permute.xlu0 %1697  ;;  %v1299_v12 = vsel %vm1289_vm4, %v1284_v14, %v1294_v20 }
 0x23a   :  { %v1304_v2 = vadd.f32 1.0, %v1299_v12  ;;  %v1601_v16 = vmul.f32 %v3801_v31, %v1592_v3  ;;  %v1524_v38 = vmul.f32 %v3783_v7, %v1515_v47  ;;  %v1711_v54 = vmul.f32 0.0, %v1698_v9 }
 0x23b   :  { %v1308_v17 = vmul.f32 %v1303_v55, %v1168_v40  ;;  %v1295_v24 = vsub.f32 0.0, %v1285_v22  ;;  %v1286_v41 = vsub.f32 1.0, %v1281_v53 }
 0x23c   :  { %v3843_v45 = vpop.permute.xlu1 %1790  ;;  %v1309_v0 = vmul.f32 %v1304_v2, %v1169_v46  ;;  %v1720_v40 = vmul.f32 %v3828_v52, %v1711_v54 }
 0x23d   :  { %v1313_v1 = vmul.f32 1.7015043, %v1308_v17  ;;  %v1300_v4 = vsel %vm1290_vm7, %v1285_v22, %v1295_v24  ;;  %v1296_v49 = vsub.f32 0.0, %v1286_v41  ;;  %v3853_v63 = vpop.permute.xlu0 %1768  ;;  %v1981_v24 = vld [vmem:[%s4347_s7] sm:$0xff] }
 0x23e   :  { %v1305_v61 = vadd.f32 1.0, %v1300_v4  ;;  %v1314_v29 = vmul.f32 1.7015043, %v1309_v0 }
 0x23f   :  { %1324 = vrot.lane.b32.xlu0 %v1313_v1, %s2822_s23  ;;  %v1301_v32 = vsel %vm1291_vm8, %v1286_v41, %v1296_v49 }
 0x240   :  { %v3850_v26 = vpop.permute.xlu1 %1691  ;;  %v1310_v10 = vmul.f32 %v1305_v61, %v1170_v30  ;;  %v1306_v62 = vadd.f32 1.0, %v1301_v32 }
 0x241   :  { %v1773_v44 = vpop.permute.xlu0 %1772 }
 0x242   :  { %v1315_v43 = vmul.f32 1.7015043, %v1310_v10  ;;  %v1311_v36 = vmul.f32 %v1306_v62, %v1171_v15 }
 0x244   :  { %v1696_v57 = vpop.permute.xlu1 %1695  ;;  %1328 = vrot.lane.b32.xlu0 %v1315_v43, %s2822_s23  ;;  %v1316_v11 = vmul.f32 1.7015043, %v1311_v36 }
 0x245   :  { %v3861_v18 = vsel %vm863_vm13, %v3840_v60, %v1696_v57  ;;  %v3864_v23 = vsel %vm863_vm13, %v1696_v57, %v1698_v9  ;;  %v3877_v39 = vpop.permute.xlu0 %1944 }
 0x246   :  { %1330 = vrot.lane.b32.xlu1 %v1316_v11, %s2822_s23 }
 0x248   :  { %v3869_v25 = vpop.permute.xlu1 %1867  ;;  %1457 = vrot.lane.b32.xlu0 %v1447_v42, %s2815_s21 }
 0x249   :  { %v1850_v53 = vpop.permute.xlu0 %1849 }
 0x24a   :  { %1326 = vrot.lane.b32.xlu1 %v1314_v29, %s2822_s23 }
 0x24c   :  { %v3875_v14 = vpop.permute.xlu1 %1770  ;;  %1611 = vrot.lane.b32.xlu0 %v1601_v16, %s2811_s16 }
 0x24d   :  { %v3882_v6 = vsel %vm943_vm12, %v3875_v14, %v1773_v44  ;;  %v3899_v1 = vpop.permute.xlu0 %1922 }
 0x24e   :  { %1534 = vrot.lane.b32.xlu1 %v1524_v38, %s2825_s5  ;;  %v1431_v38 = vsel %vm587_vm9, %v3787_v59, %v3793_v50 }
 0x250   :  { %v1775_v48 = vpop.permute.xlu1 %1774 }
 0x251   :  { %v1788_v55 = vmul.f32 0.0, %v1775_v48  ;;  %v3887_v22 = vsel %vm943_vm12, %v1773_v44, %v1775_v48  ;;  %v1927_v49 = vpop.permute.xlu0 %1926 }
 0x252   :  { %1734 = vrot.lane.b32.xlu1 %v1720_v40, %s2826_s17 }
 0x253   :  { %v1797_v20 = vmul.f32 %v3843_v45, %v1788_v55 }
 0x254   :  { %v3890_v17 = vpop.permute.xlu1 %1845 }
 0x255   :  { %1811 = vrot.lane.b32.xlu0 %v1797_v20, %s2827_s18  ;;  %v3926_v46 = vpop.permute.xlu0 %1391 }
 0x256   :  { %1984 = vperm.xlu1 %2720, %v1981_v24   ;;  %v1430_v24 = vsel %vm587_vm9, %v3785_v33, %v3787_v59  ;;  %v1432_v33 = vsel %vm587_vm9, %v3793_v50, %v3797_v37  ;;  %v1508_v50 = vsel %vm667_vm10, %v3812_v56, %v3809_v58 }
 0x258   :  { %v3897_v41 = vpop.permute.xlu1 %1847 }
 0x259   :  { %v3903_v4 = vsel %vm1023_vm14, %v3897_v41, %v1850_v53  ;;  %v3930_v57 = vpop.permute.xlu0 %1371 }
 0x25c   :  { %v1852_v9 = vpop.permute.xlu1 %1851 }
 0x25d   :  { %v1865_v30 = vmul.f32 0.0, %v1852_v9  ;;  %v3906_v61 = vsel %vm1023_vm14, %v1850_v53, %v1852_v9 }
 0x25f   :  { %v1874_v12 = vmul.f32 %v3869_v25, %v1865_v30 }
 0x260   :  { %v3909_v10 = vpop.permute.xlu1 %1924 }
 0x261   :  { %1888 = vrot.lane.b32.xlu0 %v1874_v12, %s2828_s20  ;;  %v3914_v32 = vsel %vm1103_vm15, %v3909_v10, %v1927_v49 }
 0x264   :  { %v3916_v15 = vpop.permute.xlu1 %1928 }
 0x265   :  { %v3920_v62 = vsel %vm1103_vm15, %v1927_v49, %v3916_v15 }
 0x268   :  { %v3922_v2 = vpop.permute.xlu1 %1367 }
 0x26c   :  { %v1370_v35 = vpop.permute.xlu1 %1369 }
 0x26d   :  { %v1375_v43 = vsel %vm530_vm1, %v3922_v2, %v1370_v35  ;;  %v1376_v59 = vsel %vm530_vm1, %v1370_v35, %v3930_v57 }
 0x270   :  { %v3928_v36 = vpop.permute.xlu1 %1373 }
 0x296   :  { %v1323_v3 = vpop.permute.xlu1 %1322 }
 0x2b1   :  { %v1325_v11 = vpop.permute.xlu0 %1324 }
 0x2b2   :  { %v3933_v0 = vsel %vm1103_vm15, %v1323_v3, %v1325_v11 }
 0x2b3   :  { %v1639_v42 = vmul.f32 %v3816_v27, %v3933_v0  ;;  %v3939_v47 = vmul.f32 %v1375_v43, %v3933_v0  ;;  %v1439_v49 = vmul.f32 %v1430_v24, %v3933_v0  ;;  %v1507_v43 = vsel %vm667_vm10, %v3804_v8, %v3812_v56 }
 0x2b5   :  { %1647 = vrot.lane.b32.xlu1 %v1639_v42, %s2824_s28  ;;  %v1448_v3 = vmul.f32 %v3781_v21, %v1439_v49 }
 0x2b6   :  { %v1329_v16 = vpop.permute.xlu0 %1328 }
 0x2b8   :  { %v1331_v44 = vpop.permute.xlu1 %1330 }
 0x2b9   :  { %v3956_v20 = vsel %vm1103_vm15, %v1329_v16, %v1331_v44 }
 0x2ba   :  { %v1642_v9 = vmul.f32 %v3816_v27, %v3956_v20  ;;  %v1442_v12 = vmul.f32 %v3797_v37, %v3956_v20  ;;  %v1509_v37 = vsel %vm667_vm10, %v3809_v58, %v3818_v34  ;;  %v1519_v58 = vmul.f32 %v3818_v34, %v3956_v20 }
 0x2bb   :  { %v1596_v24 = vmul.f32 %v3838_v28, %v3956_v20  ;;  %v1586_v34 = vsel %vm625_vm11, %v3822_v51, %v3838_v28 }
 0x2bc   :  { %v1327_v29 = vpop.permute.xlu1 %1326 }
 0x2bd   :  { %v3945_v54 = vsel %vm1103_vm15, %v1325_v11, %v1327_v29  ;;  %v3948_v48 = vsel %vm1103_vm15, %v1327_v29, %v1329_v16  ;;  %v1451_v11 = vmul.f32 %v3781_v21, %v1442_v12 }
 0x2be   :  { %v1640_v40 = vmul.f32 %v3816_v27, %v3945_v54  ;;  %v1641_v55 = vmul.f32 %v3816_v27, %v3948_v48  ;;  %v1440_v53 = vmul.f32 %v1431_v38, %v3945_v54  ;;  %v1516_v27 = vmul.f32 %v1507_v43, %v3933_v0 }
 0x2bf   :  { %v1441_v42 = vmul.f32 %v1432_v33, %v3948_v48  ;;  %v3984_v8 = vmul.f32 %v1376_v59, %v3945_v54  ;;  %v1518_v16 = vmul.f32 %v1509_v37, %v3948_v48  ;;  %v1517_v29 = vmul.f32 %v1508_v50, %v3945_v54 }
 0x2c0   :  { %1649 = vrot.lane.b32.xlu0 %v1640_v40, %s2824_s28  ;;  %1651 = vrot.lane.b32.xlu1 %v1641_v55, %s2824_s28  ;;  %v1449_v30 = vmul.f32 %v3781_v21, %v1440_v53  ;;  %v1525_v35 = vmul.f32 %v3783_v7, %v1516_v27  ;;  %v1594_v40 = vmul.f32 %v3835_v5, %v3945_v54 }
 0x2c1   :  { %v1450_v44 = vmul.f32 %v3781_v21, %v1441_v42  ;;  %v1527_v38 = vmul.f32 %v3783_v7, %v1518_v16  ;;  %v1526_v56 = vmul.f32 %v3783_v7, %v1517_v29  ;;  %v1584_v21 = vsel %vm625_vm11, %v3824_v19, %v3830_v13 }
 0x2c2   :  { %v1603_v55 = vmul.f32 %v3801_v31, %v1594_v40  ;;  %v1528_v53 = vmul.f32 %v3783_v7, %v1519_v58  ;;  %v1593_v5 = vmul.f32 %v1584_v21, %v3933_v0  ;;  %v1707_v7 = vmul.f32 %v3850_v26, %v3933_v0 }
 0x2c3   :  { %v1595_v13 = vmul.f32 %v1586_v34, %v3948_v48  ;;  %v1709_v28 = vmul.f32 %v3861_v18, %v3948_v48  ;;  %v1776_v43 = vsel %vm943_vm12, %v3853_v63, %v3875_v14  ;;  %v1787_v14 = vmul.f32 %v3887_v22, %v3956_v20 }
 0x2c4   :  { %1653 = vrot.lane.b32.xlu0 %v1642_v9, %s2824_s28  ;;  %1461 = vrot.lane.b32.xlu1 %v1449_v30, %s2815_s21  ;;  %v1605_v9 = vmul.f32 %v3801_v31, %v1596_v24  ;;  %v1602_v19 = vmul.f32 %v3801_v31, %v1593_v5  ;;  %v1699_v30 = vsel %vm863_vm13, %v3850_v26, %v3840_v60 }
 0x2c5   :  { %v1716_v49 = vmul.f32 %v3828_v52, %v1707_v7  ;;  %v1604_v51 = vmul.f32 %v3801_v31, %v1595_v13  ;;  %v1708_v12 = vmul.f32 %v1699_v30, %v3945_v54  ;;  %v1718_v33 = vmul.f32 %v3828_v52, %v1709_v28 }
 0x2c6   :  { %v1785_v26 = vmul.f32 %v1776_v43, %v3945_v54  ;;  %v1710_v31 = vmul.f32 %v3864_v23, %v3956_v20  ;;  %v1784_v27 = vmul.f32 %v3853_v63, %v3933_v0  ;;  %v1853_v23 = vsel %vm1023_vm14, %v3890_v17, %v3897_v41 }
 0x2c7   :  { %v1717_v60 = vmul.f32 %v3828_v52, %v1708_v12  ;;  %v1786_v22 = vmul.f32 %v3882_v6, %v3948_v48  ;;  %v1864_v41 = vmul.f32 %v3906_v61, %v3956_v20  ;;  %v1861_v50 = vmul.f32 %v3890_v17, %v3933_v0 }
 0x2c8   :  { %1459 = vrot.lane.b32.xlu0 %v1448_v3, %s2815_s21  ;;  %1465 = vrot.lane.b32.xlu1 %v1451_v11, %s2815_s21  ;;  %v1794_v18 = vmul.f32 %v3843_v45, %v1785_v26  ;;  %v1719_v59 = vmul.f32 %v3828_v52, %v1710_v31  ;;  %v1796_v3 = vmul.f32 %v3843_v45, %v1787_v14 }
 0x2c9   :  { %v1793_v11 = vmul.f32 %v3843_v45, %v1784_v27  ;;  %v1862_v52 = vmul.f32 %v1853_v23, %v3945_v54  ;;  %v1795_v42 = vmul.f32 %v3843_v45, %v1786_v22  ;;  %v1873_v6 = vmul.f32 %v3869_v25, %v1864_v41 }
 0x2ca   :  { %v1870_v37 = vmul.f32 %v3869_v25, %v1861_v50  ;;  %v1863_v45 = vmul.f32 %v3903_v4, %v3948_v48  ;;  %v1930_v17 = vsel %vm1103_vm15, %v3899_v1, %v3909_v10  ;;  %v1940_v16 = vmul.f32 %v3914_v32, %v3948_v48  ;;  %v1535_v32 = vpop.permute.xlu1 %1534 }
 0x2cb   :  { %v1871_v63 = vmul.f32 %v3869_v25, %v1862_v52  ;;  %v1942_v4 = vmul.f32 0.0, %v3916_v15  ;;  %v1458_v15 = vpop.permute.xlu0 %1457 }
 0x2cc   :  { %1536 = vrot.lane.b32.xlu1 %v1525_v35, %s2825_s5  ;;  %1463 = vrot.lane.b32.xlu0 %v1450_v44, %s2815_s21  ;;  %v1938_v35 = vmul.f32 %v3899_v1, %v3933_v0  ;;  %v1872_v44 = vmul.f32 %v3869_v25, %v1863_v45  ;;  %v1939_v0 = vmul.f32 %v1930_v17, %v3945_v54 }
 0x2cd   :  { %v1949_v29 = vmul.f32 %v3877_v39, %v1940_v16  ;;  %v1941_v1 = vmul.f32 %v3920_v62, %v3956_v20  ;;  %v1951_v25 = vmul.f32 %v3877_v39, %v1942_v4 }
 0x2ce   :  { %v1947_v61 = vmul.f32 %v3877_v39, %v1938_v35  ;;  %v1735_v54 = vpop.permute.xlu1 %1734  ;;  %v1377_v35 = vsel %vm530_vm1, %v3930_v57, %v3928_v36 }
 0x2cf   :  { %v1950_v10 = vmul.f32 %v3877_v39, %v1941_v1 }
 0x2d0   :  { %1540 = vrot.lane.b32.xlu1 %v1527_v38, %s2825_s5  ;;  %1538 = vrot.lane.b32.xlu0 %v1526_v56, %s2825_s5  ;;  %v1948_v38 = vmul.f32 %v3877_v39, %v1939_v0  ;;  %v1612_v56 = vpop.permute.xlu0 %1611  ;;  %v1383_v39 = vmul.f32 0.0, %v3922_v2  ;;  %v1387_v2 = vmul.f32 %v3928_v36, %v3956_v20 }
 0x2d2   :  { %v1398_v14 = vmul.f32 %v3926_v46, %v1387_v2 }
 0x2d4   :  { %1615 = vrot.lane.b32.xlu1 %v1603_v55, %s2811_s16  ;;  %1542 = vrot.lane.b32.xlu0 %v1528_v53, %s2825_s5  ;;  %v1812_v58 = vpop.permute.xlu0 %1811 }
 0x2d5   :  { %v4103_v40 = vpop.permute.xlu1 %1984 }
 0x2d8   :  { %1619 = vrot.lane.b32.xlu1 %v1605_v9, %s2811_s16  ;;  %1613 = vrot.lane.b32.xlu0 %v1602_v19, %s2811_s16  ;;  %v4105_v62 = vpop.permute.xlu0 %1888  ;;  %v1394_v9 = vmul.f32 %v3926_v46, %v1383_v39 }
 0x2dc   :  { %1726 = vrot.lane.b32.xlu1 %v1716_v49, %s2826_s17  ;;  %1617 = vrot.lane.b32.xlu0 %v1604_v51, %s2811_s16 }
 0x2e0   :  { %1730 = vrot.lane.b32.xlu1 %v1718_v33, %s2826_s17  ;;  %1728 = vrot.lane.b32.xlu0 %v1717_v60, %s2826_s17 }
 0x2e4   :  { %1805 = vrot.lane.b32.xlu1 %v1794_v18, %s2827_s18  ;;  %1732 = vrot.lane.b32.xlu0 %v1719_v59, %s2826_s17 }
 0x2e8   :  { %1809 = vrot.lane.b32.xlu1 %v1796_v3, %s2827_s18  ;;  %1803 = vrot.lane.b32.xlu0 %v1793_v11, %s2827_s18 }
 0x2ec   :  { %1882 = vrot.lane.b32.xlu1 %v1871_v63, %s2828_s20  ;;  %1807 = vrot.lane.b32.xlu0 %v1795_v42, %s2827_s18 }
 0x2f0   :  { %1886 = vrot.lane.b32.xlu1 %v1873_v6, %s2828_s20  ;;  %1880 = vrot.lane.b32.xlu0 %v1870_v37, %s2828_s20  ;;  %v1396_v6 = vmul.f32 %v3926_v46, %v3984_v8 }
 0x2f4   :  { %1957 = vrot.lane.b32.xlu1 %v1947_v61, %s2829_s22  ;;  %1884 = vrot.lane.b32.xlu0 %v1872_v44, %s2828_s20  ;;  %v1395_v61 = vmul.f32 %v3926_v46, %v3939_v47  ;;  %v1386_v44 = vmul.f32 %v1377_v35, %v3948_v48 }
 0x2f6   :  { %v1397_v48 = vmul.f32 %v3926_v46, %v1386_v44 }
 0x2f8   :  { %1961 = vrot.lane.b32.xlu1 %v1949_v29, %s2829_s22  ;;  %1959 = vrot.lane.b32.xlu0 %v1948_v38, %s2829_s22 }
 0x2fc   :  { %1965 = vrot.lane.b32.xlu1 %v1951_v25, %s2829_s22  ;;  %1963 = vrot.lane.b32.xlu0 %v1950_v10, %s2829_s22 }
 0x327   :  { %v4107_v21 = vpop.permute.xlu1 %1647 }
 0x332   :  { %v4109_v55 = vpop.permute.xlu1 %1651  ;;  %v4111_v53 = vpop.permute.xlu0 %1649 }
 0x336   :  { %v1462_v24 = vpop.permute.xlu1 %1461  ;;  %v4114_v5 = vpop.permute.xlu0 %1653 }
 0x33a   :  { %v1466_v34 = vpop.permute.xlu1 %1465  ;;  %v1460_v19 = vpop.permute.xlu0 %1459 }
 0x33b   :  { %v1467_v7 = vsel %vm625_vm11, %v1458_v15, %v1460_v19  ;;  %v1480_v3 = vadd.f32 %v1466_v34, %v1398_v14  ;;  %v1468_v45 = vsel %vm625_vm11, %v1460_v19, %v1462_v24 }
 0x33c   :  { %v1476_v13 = vadd.f32 %v1467_v7, %v1394_v9  ;;  %v1477_v36 = vadd.f32 %v1468_v45, %v1395_v61 }
 0x33e   :  { %v1537_v30 = vpop.permute.xlu1 %1536  ;;  %v1464_v49 = vpop.permute.xlu0 %1463 }
 0x33f   :  { %v1544_v33 = vsel %vm705_vm0, %v1535_v32, %v1537_v30  ;;  %v1469_v50 = vsel %vm625_vm11, %v1462_v24, %v1464_v49  ;;  %v1470_v10 = vsel %vm625_vm11, %v1464_v49, %v1466_v34  ;;  %v1655_v34 = vsel %vm530_vm1, %v4107_v21, %v4111_v53 }
 0x340   :  { %v1553_v60 = vadd.f32 %v1544_v33, %v1476_v13  ;;  %v1478_v16 = vadd.f32 %v1469_v50, %v1396_v6  ;;  %v1479_v9 = vadd.f32 %v1470_v10, %v1397_v48 }
 0x342   :  { %v1541_v51 = vpop.permute.xlu1 %1540  ;;  %v1539_v28 = vpop.permute.xlu0 %1538 }
 0x343   :  { %v1546_v17 = vsel %vm705_vm0, %v1539_v28, %v1541_v51  ;;  %v1545_v8 = vsel %vm705_vm0, %v1537_v30, %v1539_v28 }
 0x344   :  { %v1555_v57 = vadd.f32 %v1546_v17, %v1478_v16  ;;  %v1554_v15 = vadd.f32 %v1545_v8, %v1477_v36 }
 0x346   :  { %v1616_v12 = vpop.permute.xlu1 %1615  ;;  %v1543_v43 = vpop.permute.xlu0 %1542 }
 0x347   :  { %v1557_v11 = vadd.f32 %v1543_v43, %v1480_v3  ;;  %v1547_v24 = vsel %vm705_vm0, %v1541_v51, %v1543_v43  ;;  %vm4441_vm0 = vcmask 64512  }
 0x348   :  { %v1556_v13 = vadd.f32 %v1547_v24, %v1479_v9 }
 0x34a   :  { %v1620_v26 = vpop.permute.xlu1 %1619  ;;  %v1614_v31 = vpop.permute.xlu0 %1613 }
 0x34b   :  { %v1621_v18 = vsel %vm587_vm9, %v1612_v56, %v1614_v31  ;;  %v1634_v63 = vadd.f32 %v1620_v26, %v1557_v11  ;;  %v1622_v32 = vsel %vm587_vm9, %v1614_v31, %v1616_v12 }
 0x34c   :  { %v1630_v59 = vadd.f32 %v1621_v18, %v1553_v60  ;;  %v1631_v19 = vadd.f32 %v1622_v32, %v1554_v15 }
 0x34d   :  { %v1667_v37 = vadd.f32 %v4114_v5, %v1634_v63 }
 0x34e   :  { %v1727_v27 = vpop.permute.xlu1 %1726  ;;  %v1618_v23 = vpop.permute.xlu0 %1617  ;;  %v1663_v47 = vadd.f32 %v4107_v21, %v1630_v59  ;;  %v1664_v2 = vadd.f32 %v1655_v34, %v1631_v19 }
 0x34f   :  { %v1623_v38 = vsel %vm587_vm9, %v1616_v12, %v1618_v23  ;;  %v1624_v46 = vsel %vm587_vm9, %v1618_v23, %v1620_v26 }
 0x350   :  { %v1745_v7 = vadd.f32 %v1727_v27, %v1663_v47  ;;  %v1633_v31 = vadd.f32 %v1624_v46, %v1556_v13 }
 0x352   :  { %v1731_v52 = vpop.permute.xlu1 %1730  ;;  %v1729_v22 = vpop.permute.xlu0 %1728 }
 0x353   :  { %v1736_v12 = vsel %vm901_vm2, %v1727_v27, %v1729_v22  ;;  %v1737_v51 = vsel %vm901_vm2, %v1729_v22, %v1731_v52 }
 0x354   :  { %v1746_v26 = vadd.f32 %v1736_v12, %v1664_v2 }
 0x356   :  { %v1806_v42 = vpop.permute.xlu1 %1805  ;;  %v1733_v41 = vpop.permute.xlu0 %1732 }
 0x357   :  { %v1739_v20 = vsel %vm901_vm2, %v1733_v41, %v1735_v54  ;;  %v1632_v54 = vadd.f32 %v1623_v38, %v1555_v57  ;;  %v1738_v22 = vsel %vm901_vm2, %v1731_v52, %v1733_v41  ;;  %vm4444_vm2 = vmmov %vm4441_vm0 }
 0x358   :  { %v1749_v0 = vadd.f32 %v1739_v20, %v1667_v37 }
 0x35a   :  { %v1810_v4 = vpop.permute.xlu1 %1809  ;;  %v1804_v29 = vpop.permute.xlu0 %1803 }
 0x35b   :  { %v1816_v1 = vsel %vm981_vm3, %v1810_v4, %v1812_v58  ;;  %v1656_v58 = vsel %vm530_vm1, %v4111_v53, %v4109_v55  ;;  %v1822_v43 = vadd.f32 %v1804_v29, %v1745_v7  ;;  %v1813_v18 = vsel %vm981_vm3, %v1804_v29, %v1806_v42 }
 0x35c   :  { %v1826_v25 = vadd.f32 %v1816_v1, %v1749_v0  ;;  %v1665_v30 = vadd.f32 %v1656_v58, %v1632_v54  ;;  %v1823_v63 = vadd.f32 %v1813_v18, %v1746_v26 }
 0x35e   :  { %v1883_v56 = vpop.permute.xlu1 %1882  ;;  %v1808_v39 = vpop.permute.xlu0 %1807  ;;  %v1747_v59 = vadd.f32 %v1737_v51, %v1665_v30 }
 0x35f   :  { %v1814_v21 = vsel %vm981_vm3, %v1806_v42, %v1808_v39  ;;  %v1815_v6 = vsel %vm981_vm3, %v1808_v39, %v1810_v4  ;;  %vm4445_vm3 = vmmov %vm4441_vm0 }
 0x360   :  { %v1824_v50 = vadd.f32 %v1814_v21, %v1747_v59 }
 0x362   :  { %v1887_v49 = vpop.permute.xlu1 %1886  ;;  %v1881_v28 = vpop.permute.xlu0 %1880 }
 0x363   :  { %v1893_v33 = vsel %vm1061_vm5, %v1887_v49, %v4105_v62  ;;  %v1899_v53 = vadd.f32 %v1881_v28, %v1822_v43  ;;  %v1890_v27 = vsel %vm1061_vm5, %v1881_v28, %v1883_v56  ;;  %v1657_v62 = vsel %vm530_vm1, %v4109_v55, %v4114_v5  ;;  %vm4442_vm1 = vmmov %vm4441_vm0 }
 0x364   :  { %v1903_v60 = vadd.f32 %v1893_v33, %v1826_v25  ;;  %v1666_v20 = vadd.f32 %v1657_v62, %v1633_v31  ;;  %v1900_v37 = vadd.f32 %v1890_v27, %v1823_v63 }
 0x366   :  { %v1958_v14 = vpop.permute.xlu1 %1957  ;;  %v1885_v23 = vpop.permute.xlu0 %1884  ;;  %v1748_v61 = vadd.f32 %v1738_v22, %v1666_v20 }
 0x367   :  { %v1976_v3 = vadd.f32 %v1958_v14, %v1899_v53  ;;  %v1891_v11 = vsel %vm1061_vm5, %v1883_v56, %v1885_v23  ;;  %v1892_v52 = vsel %vm1061_vm5, %v1885_v23, %v1887_v49  ;;  %vm4446_vm5 = vmmov %vm4441_vm0 }
 0x368   :  { %v1901_v35 = vadd.f32 %v1891_v11, %v1824_v50  ;;  %v1825_v0 = vadd.f32 %v1815_v6, %v1748_v61 }
 0x369   :  { %v4164_v42 = vadd.f32 %v4103_v40, %v1976_v3 }
 0x36a   :  { %v1962_v45 = vpop.permute.xlu1 %1961  ;;  %v1960_v17 = vpop.permute.xlu0 %1959  ;;  %v1902_v57 = vadd.f32 %v1892_v52, %v1825_v0 }
 0x36b   :  { %v4168_v44 = vmul.f32 0.70710677, %v4164_v42  ;;  %v1967_v55 = vsel %vm1141_vm6, %v1958_v14, %v1960_v17  ;;  %v1968_v5 = vsel %vm1141_vm6, %v1960_v17, %v1962_v45 }
 0x36c   :  { %v1977_v41 = vadd.f32 %v1967_v55, %v1900_v37  ;;  %v1978_v16 = vadd.f32 %v1968_v5, %v1901_v35 }
 0x36d   :  { %v2002_v29 = vand.u32 2147483647, %v4168_v44  ;;  %vm2112_vm10 = vcmp.ge.f32.partialorder %v4168_v44, 0.0 }
 0x36e   :  { %v4175_v4 = vadd.f32 %v4103_v40, %v1977_v41  ;;  %v4178_v8 = vadd.f32 %v4103_v40, %v1978_v16  ;;  %v1966_v38 = vpop.permute.xlu1 %1965  ;;  %v1964_v1 = vpop.permute.xlu0 %1963 }
 0x36f   :  { %v2007_v36 = vmul.f32 0.3275911, %v2002_v29  ;;  %v1969_v25 = vsel %vm1141_vm6, %v1962_v45, %v1964_v1  ;;  %v1970_v10 = vsel %vm1141_vm6, %v1964_v1, %v1966_v38 }
 0x370   :  { %v4183_v32 = vmul.f32 0.70710677, %v4175_v4  ;;  %v4186_v47 = vmul.f32 0.70710677, %v4178_v8  ;;  %v1979_v15 = vadd.f32 %v1969_v25, %v1902_v57  ;;  %v1980_v54 = vadd.f32 %v1970_v10, %v1903_v60 }
 0x371   :  { %v2012_v48 = vadd.f32 1.0, %v2007_v36  ;;  %v2082_v60 = vsub.f32 0.0, %v2002_v29 }
 0x372   :  { %v2003_v56 = vand.u32 2147483647, %v4183_v32  ;;  %v2004_v39 = vand.u32 2147483647, %v4186_v47  ;;  %v4191_v24 = vadd.f32 %v4103_v40, %v1979_v15  ;;  %v4194_v9 = vadd.f32 %v4103_v40, %v1980_v54 }
 0x373   :  { %2775 = vrcp.f32 %v2012_v48  ;;  %v2087_v23 = vmul.f32 %v2082_v60, %v2002_v29  ;;  %vm2113_vm4 = vcmp.ge.f32.partialorder %v4183_v32, 0.0  ;;  %vm2114_vm9 = vcmp.ge.f32.partialorder %v4186_v47, 0.0 }
 0x374   :  { %v2008_v19 = vmul.f32 0.3275911, %v2003_v56  ;;  %v2009_v58 = vmul.f32 0.3275911, %v2004_v39  ;;  %v4197_v7 = vmul.f32 0.70710677, %v4191_v24 }
 0x375   :  { %v4200_v46 = vmul.f32 0.70710677, %v4194_v9  ;;  %v2083_v26 = vsub.f32 0.0, %v2003_v56  ;;  %v2084_v3 = vsub.f32 0.0, %v2004_v39  ;;  %v2092_v45 = vmul.f32 1.442695, %v2087_v23 }
 0x376   :  { %v2013_v34 = vadd.f32 1.0, %v2008_v19  ;;  %v2014_v13 = vadd.f32 1.0, %v2009_v58  ;;  %v2005_v30 = vand.u32 2147483647, %v4197_v7  ;;  %vm2115_vm11 = vcmp.ge.f32.partialorder %v4197_v7, 0.0 }
 0x377   :  { %v2006_v49 = vand.u32 2147483647, %v4200_v46  ;;  %v2088_v50 = vmul.f32 %v2083_v26, %v2003_v56  ;;  %v2089_v17 = vmul.f32 %v2084_v3, %v2004_v39  ;;  %vm2116_vm12 = vcmp.ge.f32.partialorder %v4200_v46, 0.0 }
 0x378   :  { %2777 = vrcp.f32 %v2013_v34  ;;  %v2010_v28 = vmul.f32 0.3275911, %v2005_v30  ;;  %v2085_v61 = vsub.f32 0.0, %v2005_v30 }
 0x379   :  { %2779 = vrcp.f32 %v2014_v13  ;;  %v2011_v12 = vmul.f32 0.3275911, %v2006_v49  ;;  %v2094_v0 = vmul.f32 1.442695, %v2088_v50  ;;  %v2086_v29 = vsub.f32 0.0, %v2006_v49 }
 0x37a   :  { %v2015_v40 = vadd.f32 1.0, %v2010_v28  ;;  %v2096_v10 = vmul.f32 1.442695, %v2089_v17 }
 0x37b   :  { %v2016_v43 = vadd.f32 1.0, %v2011_v12  ;;  %v2091_v58 = vmul.f32 %v2086_v29, %v2006_v49 }
 0x37c   :  { %2781 = vrcp.f32 %v2015_v40 }
 0x37d   :  { %v2776_v51 = vpop.eup %2775  ;;  %2783 = vrcp.f32 %v2016_v43 }
 0x37e   :  { %v2022_v33 = vmul.f32 %v2776_v51, %v2012_v48  ;;  %2785 = vpow2.f32 %v2092_v45  ;;  %v2090_v48 = vmul.f32 %v2085_v61, %v2005_v30  ;;  %v2100_v30 = vmul.f32 1.442695, %v2091_v58 }
 0x37f   :  { %2787 = vpow2.f32 %v2094_v0 }
 0x380   :  { %v2027_v2 = vsub.f32 2.0, %v2022_v33  ;;  %2789 = vpow2.f32 %v2096_v10 }
 0x382   :  { %v2778_v31 = vpop.eup %2777  ;;  %v2032_v18 = vmul.f32 %v2776_v51, %v2027_v2  ;;  %v2098_v51 = vmul.f32 1.442695, %v2090_v48 }
 0x383   :  { %v2780_v21 = vpop.eup %2779  ;;  %v2023_v53 = vmul.f32 %v2778_v31, %v2013_v34 }
 0x384   :  { %v2037_v59 = vmul.f32 1.0614054, %v2032_v18  ;;  %v2024_v14 = vmul.f32 %v2780_v21, %v2014_v13  ;;  %2791 = vpow2.f32 %v2098_v51 }
 0x385   :  { %v2028_v27 = vsub.f32 2.0, %v2023_v53  ;;  %2793 = vpow2.f32 %v2100_v30  ;;  %v1992_v30 = vmul.f32 0.5, %v4164_v42  ;;  %v2145_v42 = vld [vmem:[%s4348_s9 + $0x8] sm:$0xff] }
 0x386   :  { %v2042_v11 = vadd.f32 -1.4531521, %v2037_v59  ;;  %v2029_v62 = vsub.f32 2.0, %v2024_v14  ;;  %v2782_v22 = vpop.eup %2781 }
 0x387   :  { %v2033_v63 = vmul.f32 %v2778_v31, %v2028_v27  ;;  %v2025_v37 = vmul.f32 %v2782_v22, %v2015_v40  ;;  %v2784_v35 = vpop.eup %2783 }
 0x388   :  { %v2047_v20 = vmul.f32 %v2042_v11, %v2032_v18  ;;  %v2034_v6 = vmul.f32 %v2780_v21, %v2029_v62  ;;  %v2026_v52 = vmul.f32 %v2784_v35, %v2016_v43  ;;  %v2786_v11 = vpop.eup %2785 }
 0x389   :  { %v2038_v55 = vmul.f32 1.0614054, %v2033_v63  ;;  %v2030_v41 = vsub.f32 2.0, %v2025_v37 }
 0x38a   :  { %v2052_v5 = vadd.f32 1.4214138, %v2047_v20  ;;  %v2039_v16 = vmul.f32 1.0614054, %v2034_v6  ;;  %v2031_v36 = vsub.f32 2.0, %v2026_v52 }
 0x38b   :  { %v2043_v38 = vadd.f32 -1.4531521, %v2038_v55  ;;  %v2035_v57 = vmul.f32 %v2782_v22, %v2030_v41 }
 0x38c   :  { %v2057_v1 = vmul.f32 %v2052_v5, %v2032_v18  ;;  %v2044_v25 = vadd.f32 -1.4531521, %v2039_v16  ;;  %v2036_v56 = vmul.f32 %v2784_v35, %v2031_v36  ;;  %v2788_v35 = vpop.eup %2787 }
 0x38d   :  { %v2048_v15 = vmul.f32 %v2043_v38, %v2033_v63  ;;  %v2040_v19 = vmul.f32 1.0614054, %v2035_v57  ;;  %v2790_v55 = vpop.eup %2789 }
 0x38e   :  { %v2062_v54 = vadd.f32 -0.28449672, %v2057_v1  ;;  %v2049_v39 = vmul.f32 %v2044_v25, %v2034_v6  ;;  %v2041_v12 = vmul.f32 1.0614054, %v2036_v56  ;;  %v2792_v25 = vpop.eup %2791 }
 0x38f   :  { %v2053_v34 = vadd.f32 1.4214138, %v2048_v15  ;;  %v2045_v40 = vadd.f32 -1.4531521, %v2040_v19 }
 0x390   :  { %v2067_v13 = vmul.f32 %v2062_v54, %v2032_v18  ;;  %v2054_v28 = vadd.f32 1.4214138, %v2049_v39  ;;  %v2046_v60 = vadd.f32 -1.4531521, %v2041_v12  ;;  %v2794_v54 = vpop.eup %2793  ;;  %v1993_v39 = vmul.f32 0.5, %v4175_v4 }
 0x391   :  { %v2058_v43 = vmul.f32 %v2053_v34, %v2033_v63  ;;  %v2050_v31 = vmul.f32 %v2045_v40, %v2035_v57  ;;  %v1995_v4 = vmul.f32 0.5, %v4191_v24 }
 0x392   :  { %v2072_v33 = vadd.f32 0.2548296, %v2067_v13  ;;  %v2059_v2 = vmul.f32 %v2054_v28, %v2034_v6  ;;  %v2051_v59 = vmul.f32 %v2046_v60, %v2036_v56 }
 0x393   :  { %v2063_v21 = vadd.f32 -0.28449672, %v2058_v43  ;;  %v2055_v14 = vadd.f32 1.4214138, %v2050_v31 }
 0x394   :  { %v2077_v53 = vmul.f32 %v2072_v33, %v2032_v18  ;;  %v2064_v26 = vadd.f32 -0.28449672, %v2059_v2  ;;  %v2056_v27 = vadd.f32 1.4214138, %v2051_v59 }
 0x395   :  { %v2068_v49 = vmul.f32 %v2063_v21, %v2033_v63  ;;  %v2060_v3 = vmul.f32 %v2055_v14, %v2035_v57  ;;  %v1996_v21 = vmul.f32 0.5, %v4194_v9 }
 0x396   :  { %v2069_v23 = vmul.f32 %v2064_v26, %v2034_v6  ;;  %v2102_v22 = vmul.f32 %v2786_v11, %v2077_v53  ;;  %v2061_v20 = vmul.f32 %v2056_v27, %v2036_v56 }
 0x397   :  { %v2073_v62 = vadd.f32 0.2548296, %v2068_v49  ;;  %v2065_v37 = vadd.f32 -0.28449672, %v2060_v3  ;;  %v2144_v49 = vld [vmem:[%s4348_s9] sm:$0xff] }
 0x398   :  { %v2074_v50 = vadd.f32 0.2548296, %v2069_v23  ;;  %v2066_v61 = vadd.f32 -0.28449672, %v2061_v20  ;;  %v2107_v52 = vsub.f32 1.0, %v2102_v22 }
 0x399   :  { %v2078_v45 = vmul.f32 %v2073_v62, %v2033_v63  ;;  %v2070_v18 = vmul.f32 %v2065_v37, %v2035_v57 }
 0x39a   :  { %v2079_v17 = vmul.f32 %v2074_v50, %v2034_v6  ;;  %v2071_v16 = vmul.f32 %v2066_v61, %v2036_v56  ;;  %v2117_v48 = vsub.f32 0.0, %v2107_v52  ;;  %v2142_v50 = vld [vmem:[%s4349_s8] sm:$0xff] }
 0x39b   :  { %v2103_v5 = vmul.f32 %v2788_v35, %v2078_v45  ;;  %v2075_v0 = vadd.f32 0.2548296, %v2070_v18  ;;  %v4443_v35 = vmov 0.0   ;;  %v2143_v45 = vld [vmem:[%s4349_s8 + $0x8] sm:$0xff] }
 0x39c   :  { %v2104_v41 = vmul.f32 %v2790_v55, %v2079_v17  ;;  %v2076_v1 = vadd.f32 0.2548296, %v2071_v16  ;;  %v2122_v12 = vsel %vm2112_vm10, %v2107_v52, %v2117_v48 }
 0x39d   :  { %v2108_v29 = vsub.f32 1.0, %v2103_v5  ;;  %v2080_v36 = vmul.f32 %v2075_v0, %v2035_v57  ;;  %v1994_v57 = vmul.f32 0.5, %v4178_v8  ;;  %v2127_v60 = vadd.f32 1.0, %v2122_v12 }
 0x39e   :  { %v2109_v38 = vsub.f32 1.0, %v2104_v41  ;;  %v2081_v63 = vmul.f32 %v2076_v1, %v2036_v56 }
 0x39f   :  { %v2118_v10 = vsub.f32 0.0, %v2108_v29  ;;  %v2105_v6 = vmul.f32 %v2792_v25, %v2080_v36  ;;  %v2132_v24 = vmul.f32 %v2127_v60, %v1992_v30  ;;  %v2355_v60 = vld [vmem:[%s4352_s10] sm:$0xff] }
 0x3a0   :  { %v2119_v15 = vsub.f32 0.0, %v2109_v38  ;;  %v2106_v13 = vmul.f32 %v2794_v54, %v2081_v63 }
 0x3a1   :  { %v2123_v19 = vsel %vm2113_vm4, %v2108_v29, %v2118_v10  ;;  %v2110_v28 = vsub.f32 1.0, %v2105_v6  ;;  %v2137_v46 = vmul.f32 1.7015043, %v2132_v24 }
 0x3a2   :  { %v2124_v58 = vsel %vm2114_vm9, %v2109_v38, %v2119_v15  ;;  %v2128_v34 = vadd.f32 1.0, %v2123_v19  ;;  %v2111_v51 = vsub.f32 1.0, %v2106_v13  ;;  %v180_v13 = vld [vmem:[%s4341_s3 + $0x8] sm:$0xff] }
 0x3a3   :  { %v2129_v32 = vadd.f32 1.0, %v2124_v58  ;;  %v2120_v56 = vsub.f32 0.0, %v2110_v28  ;;  %v2467_v58 = vld [vmem:[%s4350_s13] sm:$0xff] }
 0x3a4   :  { %v2133_v40 = vmul.f32 %v2128_v34, %v1993_v39  ;;  %v2121_v33 = vsub.f32 0.0, %v2111_v51  ;;  %v2468_v34 = vld [vmem:[%s4350_s13 + $0x8] sm:$0xff] }
 0x3a5   :  { %v2134_v43 = vmul.f32 %v2129_v32, %v1994_v57  ;;  %v2125_v2 = vsel %vm2115_vm11, %v2110_v28, %v2120_v56  ;;  %v2830_v28 = vmov 0.0|0.0   ;;  %v2356_v57 = vld [vmem:[%s4351_s11] sm:$0xff] }
 0x3a6   :  { %v2138_v47 = vmul.f32 1.7015043, %v2133_v40  ;;  %v2130_v44 = vadd.f32 1.0, %v2125_v2  ;;  %v2126_v8 = vsel %vm2116_vm12, %v2111_v51, %v2121_v33  ;;  %v179_v32 = vld [vmem:[%s4341_s3] sm:$0xff] }
 0x3a7   :  { %v2139_v31 = vmul.f32 1.7015043, %v2134_v43  ;;  %v2131_v7 = vadd.f32 1.0, %v2126_v8 }
 0x3a8   :  { %2163 = vrot.lane.b32.xlu0 %v2138_v47, %s2822_s23  ;;  %v2135_v53 = vmul.f32 %v2130_v44, %v1995_v4  ;;  %v20_v44 = vstv %s4354_s14 }
 0x3a9   :  { %2165 = vrot.lane.b32.xlu1 %v2139_v31, %s2822_s23  ;;  %v2136_v26 = vmul.f32 %v2131_v7, %v1996_v21  ;;  %v2465_v31 = vld [vmem:[%s4353_s12] sm:$0xff]  ;;  %21 = vst [vmem:[#allocation3] sm:$0x1] %v20_v44 }
 0x3aa   :  { %v2140_v59 = vmul.f32 1.7015043, %v2135_v53 }
 0x3ab   :  { %v2141_v14 = vmul.f32 1.7015043, %v2136_v26 }
 0x3ac   :  { %2167 = vrot.lane.b32.xlu0 %v2140_v59, %s2822_s23 }
 0x3ad   :  { %2169 = vrot.lane.b32.xlu1 %v2141_v14, %s2822_s23 }
 0x3b0   :  { %2161 = vrot.lane.b32.xlu0 %v2137_v46, %s2822_s23  ;;  %v2572_v8 = vld [vmem:[#allocation3] sm:$0x1] }
 0x3b1   :  { %2148 = vperm.xlu1 %2720, %v2144_v49   ;;  %2674 = vpush %v2572_v8  ;;  %v4449_v8 = vld [vmem:[#allocation25_spill] sm:$0xff] }
 0x3b4   :  { %2153 = vperm.xlu0 %2719, %v2145_v42  }
 0x41a   :  { %v2164_v9 = vpop.permute.xlu0 %2163 }
 0x41b   :  { %v2166_v23 = vpop.permute.xlu1 %2165 }
 0x41c   :  { %v2172_v27 = vsel %vm1103_vm15, %v2164_v9, %v2166_v23 }
 0x41d   :  { %2185 = vmatprep.subr.mxu0 %v2172_v27 }
 0x41e   :  { %v2168_v3 = vpop.permute.xlu0 %2167 }
 0x41f   :  { %v2170_v11 = vpop.permute.xlu1 %2169  ;;  %v2173_v62 = vsel %vm1103_vm15, %v2166_v23, %v2168_v3 }
 0x420   :  { %v2174_v22 = vsel %vm1103_vm15, %v2168_v3, %v2170_v11 }
 0x421   :  { %2262 = vmatprep.subr.mxu1 %v2174_v22 }
 0x422   :  { %v2162_v20 = vpop.permute.xlu0 %2161  ;;  %2263 = vmatpush1.msra.mxu1 %v2173_v62 }
 0x423   :  { %v2171_v37 = vsel %vm1103_vm15, %v2162_v20, %v2164_v9  ;;  %2646 = vmatmul.mubr.msk.f32.vlgmr.msra.gmra.mrb[6].mxu1 %vm4441_vm0, %v2142_v50  ;;  %vm2831_vm15 = vmmov 0  }
 0x424   :  { %2186 = vmatpush1.msra.mxu0 %v2171_v37  ;;  %2332 = vmatprep.mubr.f32.mxu1 %v4443_v35 }
 0x425   :  { %2644 = vmatmul.mubr.msk.f32.vlgmr.msra.gmra.mrb[6].mxu0 %vm4442_vm1, %v2142_v50  ;;  %2671 = vmatprep.subr.bf16.mxu0 %v2830_v28 }
 0x426   :  { %2255 = vmatprep.mubr.f32.mxu0 %v4443_v35 }
 0x427   :  { %2647 = vmatmul.mubr.msk.f32.gmra.mrb[8].mxu1 %vm4444_vm2, %v2143_v45 }
 0x428   :  { %2668 = vmatprep.mubr.msk.f32.mxu1 %vm4446_vm5, %v2465_v31 }
 0x429   :  { %2645 = vmatmul.mubr.msk.f32.gmra.mrb[8].mxu0 %vm4445_vm3, %v2143_v45 }
 0x42a   :  { %2663 = vmatprep.mubr.msk.f32.mxu0 %vm2831_vm15, %v4443_v35 }
 0x430   :  { %v2149_v17 = vpop.permute.xlu1 %2148 }
 0x433   :  { %v2154_v16 = vpop.permute.xlu0 %2153 }
 0x4f6   :  { %v2328_v61 = vpop.f32.mrb[6].mxu1 }
 0x4f7   :  { %v2330_v18 = vpop.f32.mrb[7].mxu1  ;;  %v4255_v63 = vadd.f32 %v2328_v61, %v2149_v17 }
 0x4f8   :  { %v2251_v55 = vpop.f32.mrb[6].mxu0  ;;  %v4257_v6 = vadd.f32 %v2330_v18, %v2149_v17 }
 0x4f9   :  { %v4241_v5 = vadd.f32 %v2251_v55, %v2149_v17  ;;  %v2253_v52 = vpop.f32.mrb[7].mxu0 }
 0x4fa   :  { %v4243_v41 = vadd.f32 %v2253_v52, %v2149_v17  ;;  %v2334_v0 = vpop.f32.mrb[8].mxu1  ;;  %v2345_v19 = vadd.f32 %v4257_v6, %v4255_v63 }
 0x4fb   :  { %v4247_v38 = vadd.f32 %v2334_v0, %v2154_v16  ;;  %v2336_v1 = vpop.f32.mrb[9].mxu1 }
 0x4fc   :  { %v2339_v29 = vadd.f32 %v4243_v41, %v4241_v5  ;;  %v2257_v36 = vpop.f32.mrb[8].mxu0  ;;  %v4249_v25 = vadd.f32 %v2336_v1, %v2154_v16 }
 0x4fd   :  { %v4251_v10 = vadd.f32 %v2257_v36, %v2154_v16  ;;  %v2259_v48 = vpop.f32.mrb[9].mxu0 }
 0x4fe   :  { %v4253_v15 = vadd.f32 %v2259_v48, %v2154_v16  ;;  %2340 = vadd.xlane.f32.xlu1 %v2339_v29  ;;  %v2348_v54 = vadd.f32 %v4249_v25, %v4247_v38  ;;  %v2466_v48 = vld [vmem:[%s4353_s12 + $0x8] sm:$0xff]  ;;  %s2675_s12 = spop %2674 }
 0x4ff   :  { %s2574_s25 = smul.f32 2.0, %s2675_s12 }
 0x500   :  { %v2342_v39 = vadd.f32 %v4253_v15, %v4251_v10 }
 0x502   :  { %2349 = vadd.xlane.f32.xlu1 %v2348_v54  ;;  %2343 = vadd.xlane.f32.xlu0 %v2342_v39 }
 0x506   :  { %2346 = vadd.xlane.f32.xlu0 %v2345_v19 }
 0x513   :  { %2471 = vperm.xlu1 %2720, %v2467_v58  }
 0x517   :  { %2476 = vperm.xlu1 %2720, %v2468_v34  }
 0x51b   :  { %189 = vperm.xlu1 %2720, %v180_v13  }
 0x51c   :  { %2359 = vperm.xlu0 %2719, %v2356_v57  }
 0x520   :  { %184 = vperm.xlu0 %2719, %v179_v32  }
 0x58b   :  { %v2341_v12 = vpop.xlane.xlu1 %2340 }
 0x58f   :  { %v2350_v40 = vpop.xlane.xlu1 %2349  ;;  %v2344_v51 = vpop.xlane.xlu0 %2343 }
 0x590   :  { %v2352_v56 = vsel %vm863_vm13, %v2344_v51, %v2350_v40 }
 0x591   :  { %v2354_v47 = vmul.f32 0.00390625, %v2352_v56  ;;  %v2575_v56 = vstv %s2574_s25 }
 0x593   :  { %v2347_v43 = vpop.xlane.xlu0 %2346  ;;  %v2472_v54 = vpop.permute.xlu1 %2471 }
 0x594   :  { %v2351_v4 = vsel %vm863_vm13, %v2341_v12, %v2347_v43 }
 0x595   :  { %v2353_v33 = vmul.f32 0.00390625, %v2351_v4 }
 0x597   :  { %v2672_v2 = vpack.c.bf16 %v2354_v47, %v2353_v33  ;;  %v2477_v39 = vpop.permute.xlu1 %2476 }
 0x599   :  { %2673 = vmatpush3.bf16.msra.mxu0 %v2672_v2  ;;  %v4448_v2 = vmov 1  }
 0x59b   :  { %v2360_v30 = vpop.permute.xlu0 %2359 }
 0x59c   :  { %2664 = vmatmul.mubr.msk.f32.vlgmr.msra.gmra.mrb[10].mxu0 %vm1023_vm14, %v2355_v60  ;;  %vm4447_vm14 = vmmov %vm4441_vm0  ;;  %v190_v60 = vpop.permute.xlu1 %189 }
 0x59f   :  { %v185_v31 = vpop.permute.xlu0 %184 }
 0x66f   :  { %v2431_v21 = vpop.f32.mrb[10].mxu0 }
 0x670   :  { %v2432_v7 = vadd.f32 %v2431_v21, %v2360_v30  ;;  %v2665_v53 = vpop.f32.mrb[11].mxu0  ;;  %v280_v30 = vadd.f32 %v4449_v8, %v190_v60  ;;  %v4450_v21 = vld [vmem:[#allocation26_spill] sm:$0xff] }
 0x672   :  { %v2436_v24 = vmul.f32 0.70710677, %v2432_v7  ;;  %v2435_v0 = vmul.f32 0.5, %v2432_v7  ;;  %v282_v7 = vadd.f32 %v4450_v21, %v190_v60 }
 0x674   :  { %v2437_v26 = vand.u32 2147483647, %v2436_v24  ;;  %vm2459_vm13 = vcmp.ge.f32.partialorder %v2436_v24, 0.0 }
 0x676   :  { %v2438_v59 = vmul.f32 0.3275911, %v2437_v26  ;;  %v2453_v42 = vsub.f32 0.0, %v2437_v26 }
 0x678   :  { %v2439_v14 = vadd.f32 1.0, %v2438_v59  ;;  %v2454_v27 = vmul.f32 %v2453_v42, %v2437_v26  ;;  %v4451_v59 = vld [vmem:[#allocation21_spill] sm:$0xff] }
 0x67a   :  { %2795 = vrcp.f32 %v2439_v14  ;;  %v2455_v62 = vmul.f32 1.442695, %v2454_v27 }
 0x67c   :  { %2797 = vpow2.f32 %v2455_v62 }
 0x684   :  { %v2796_v46 = vpop.eup %2795 }
 0x685   :  { %v2441_v49 = vmul.f32 %v2796_v46, %v2439_v14  ;;  %v274_v14 = vadd.f32 %v4451_v59, %v185_v31 }
 0x686   :  { %v2798_v61 = vpop.eup %2797 }
 0x687   :  { %v2442_v9 = vsub.f32 2.0, %v2441_v49 }
 0x689   :  { %v2443_v23 = vmul.f32 %v2796_v46, %v2442_v9  ;;  %v4452_v46 = vld [vmem:[#allocation22_spill] sm:$0xff] }
 0x68a   :  { %v276_v49 = vadd.f32 %v4452_v46, %v185_v31 }
 0x68b   :  { %v2444_v3 = vmul.f32 1.0614054, %v2443_v23 }
 0x68d   :  { %v2445_v11 = vadd.f32 -1.4531521, %v2444_v3 }
 0x68f   :  { %v2446_v22 = vmul.f32 %v2445_v11, %v2443_v23 }
 0x691   :  { %v2447_v50 = vadd.f32 1.4214138, %v2446_v22 }
 0x693   :  { %v2448_v20 = vmul.f32 %v2447_v50, %v2443_v23 }
 0x695   :  { %v2449_v37 = vadd.f32 -0.28449672, %v2448_v20 }
 0x697   :  { %v2450_v35 = vmul.f32 %v2449_v37, %v2443_v23  ;;  %v4455_v37 = vld [vmem:[#allocation23_spill] sm:$0xff] }
 0x699   :  { %v2451_v45 = vadd.f32 0.2548296, %v2450_v35  ;;  %v357_v35 = vadd.f32 %v4455_v37, %v185_v31 }
 0x69b   :  { %v2452_v17 = vmul.f32 %v2451_v45, %v2443_v23  ;;  %v4456_v45 = vld [vmem:[#allocation24_spill] sm:$0xff] }
 0x69d   :  { %v2457_v18 = vmul.f32 %v2798_v61, %v2452_v17  ;;  %v359_v17 = vadd.f32 %v4456_v45, %v185_v31 }
 0x69f   :  { %v2458_v55 = vsub.f32 1.0, %v2457_v18 }
 0x6a1   :  { %v2460_v52 = vsub.f32 0.0, %v2458_v55 }
 0x6a3   :  { %v2461_v16 = vsel %vm2459_vm13, %v2458_v55, %v2460_v52 }
 0x6a4   :  { %v2462_v29 = vadd.f32 1.0, %v2461_v16 }
 0x6a6   :  { %v2463_v1 = vmul.f32 %v2462_v29, %v2435_v0 }
 0x6a8   :  { %v2464_v36 = vmul.f32 1.7015043, %v2463_v1 }
 0x6aa   :  { %2666 = vmatprep.subr.mxu1 %v2464_v36 }
 0x6ab   :  { %2667 = vmatpush3.msra.mxu1 %v2464_v36 }
 0x6ac   :  { %2669 = vmatmul.mubr.msk.f32.vlgmr.msra.gmra.mrb[10].mxu1 %vm4447_vm14, %v2466_v48 }
 0x77f   :  { %v2670_v19 = vpop.f32.mrb[10].mxu1 }
 0x780   :  { %v2557_v58 = vadd.f32 %v2670_v19, %v2477_v39  ;;  %v2551_v34 = vpop.f32.mrb[11].mxu1 }
 0x781   :  { %v2552_v13 = vadd.f32 %v2551_v34, %v2472_v54 }
 0x782   :  { %v2652_v28 = vmul.f32 -1.442695, %v2557_v58 }
 0x783   :  { %v2651_v57 = vmul.f32 -1.442695, %v2552_v13 }
 0x784   :  { %2799 = vpow2.f32 %v2652_v28 }
 0x785   :  { %2801 = vpow2.f32 %v2651_v57 }
 0x78e   :  { %v2800_v32 = vpop.eup %2799 }
 0x78f   :  { %v2802_v12 = vpop.eup %2801  ;;  %v2567_v40 = vadd.f32 1.0, %v2800_v32 }
 0x790   :  { %v2566_v51 = vadd.f32 1.0, %v2802_v12 }
 0x791   :  { %2803 = vrcp.f32 %v2567_v40 }
 0x792   :  { %2805 = vrcp.f32 %v2566_v51 }
 0x79b   :  { %v2804_v43 = vpop.eup %2803 }
 0x79c   :  { %v2806_v4 = vpop.eup %2805  ;;  %v2577_v47 = vmul.f32 %v2804_v43, %v2575_v56 }
 0x79d   :  { %v2576_v33 = vmul.f32 %v2806_v4, %v2575_v56 }
 0x79e   :  { %2585 = vperm.xlu1 %2720, %v2577_v47  }
 0x79f   :  { %2580 = vperm.xlu0 %2719, %v2576_v33  }
 0x7a2   :  { %2722 = vset.pattern.permute.xlu1 %v4448_v2 }
 0x7a3   :  { %2605 = vperm.xlu1 %2722, %v2577_v47   ;;  %2721 = vset.pattern.permute.xlu0 %v4448_v2 }
 0x7a4   :  { %2601 = vperm.xlu0 %2721, %v2576_v33  }
 0x81d   :  { %v2586_v44 = vpop.permute.xlu1 %2585 }
 0x81e   :  { %v2590_v53 = vmul.f32 %v2586_v44, %v4251_v10  ;;  %v2591_v24 = vmul.f32 %v2586_v44, %v4253_v15  ;;  %v2581_v26 = vpop.permute.xlu0 %2580  ;;  %v4454_v15 = vld [vmem:[#allocation28_spill] sm:$0xff] }
 0x81f   :  { %v2588_v42 = vmul.f32 %v2581_v26, %v4241_v5  ;;  %v2589_v9 = vmul.f32 %v2581_v26, %v4243_v41  ;;  %v4453_v5 = vld [vmem:[#allocation27_spill] sm:$0xff]  ;;  %v365_v62 = vadd.f32 %v4454_v15, %v190_v60 }
 0x820   :  { %v2594_v23 = vadd.f32 %v2590_v53, %v280_v30  ;;  %v2595_v27 = vadd.f32 %v2591_v24, %v282_v7  ;;  %v363_v41 = vadd.f32 %v4453_v5, %v190_v60 }
 0x821   :  { %v2592_v3 = vadd.f32 %v2588_v42, %v274_v14  ;;  %v2593_v11 = vadd.f32 %v2589_v9, %v276_v49 }
 0x822   :  { %2598 = vst [vmem:[%s4355_s15 + $0x20] sm:$0xff] %v2594_v23  ;;  %2599 = vst [vmem:[%s4355_s15 + $0x28] sm:$0xff] %v2595_v27  ;;  %v2606_v10 = vpop.permute.xlu1 %2605 }
 0x823   :  { %2596 = vst [vmem:[%s4355_s15] sm:$0xff] %v2592_v3  ;;  %2597 = vst [vmem:[%s4355_s15 + $0x8] sm:$0xff] %v2593_v11  ;;  %v2610_v22 = vmul.f32 %v2606_v10, %v4247_v38  ;;  %v2611_v50 = vmul.f32 %v2606_v10, %v4249_v25  ;;  %v2602_v20 = vpop.permute.xlu0 %2601 }
 0x824   :  { %v2608_v61 = vmul.f32 %v2602_v20, %v4255_v63  ;;  %v2609_v18 = vmul.f32 %v2602_v20, %v4257_v6 }
 0x825   :  { %v2614_v55 = vadd.f32 %v2610_v22, %v363_v41  ;;  %v2615_v52 = vadd.f32 %v2611_v50, %v365_v62 }
 0x826   :  { %v2612_v16 = vadd.f32 %v2608_v61, %v357_v35  ;;  %v2613_v0 = vadd.f32 %v2609_v18, %v359_v17 }
 0x827   :  { %2618 = vst [vmem:[%s4355_s15 + $0x30] sm:$0xff] %v2614_v55  ;;  %2619 = vst [vmem:[%s4355_s15 + $0x38] sm:$0xff] %v2615_v52 }
 0x828   :  { %2616 = vst [vmem:[%s4355_s15 + $0x10] sm:$0xff] %v2612_v16  ;;  %2617 = vst [vmem:[%s4355_s15 + $0x18] sm:$0xff] %v2613_v0 }

</bundles_post_ra>
